<compile_context>
chip_gen: v6e
topology: v6e:2x2x1
jax: 0.10.0
libtpu: 0.0.40
codegen_flags: <defaults>
</compile_context>

<pallas_src>
import numpy as np
import jax
import jax.numpy as jnp
from jax.experimental import pallas as pl
from jax.experimental.pallas import tpu as pltpu

# Representative architecture sizes.
C_IN, C1, C2 = 3, 16, 32
HIDDEN_CLS = 64
IMG_H = IMG_W = 16
HO2, WO2 = IMG_H // 2, IMG_W // 2          # conv2 output grid (stride 2, pad 1)


# ---------------------------------------------------------------------------
# The single fused Pallas kernel
# ---------------------------------------------------------------------------

def _fused_kernel(p1_ref, w1_ref, b1_ref, w2_ref, b2_ref, w3_ref, b3_ref,
                  wc1_ref, bc1_ref, wc2_ref, bc2_ref, zy_ref):
    """conv1 + conv2 (both encoders, block-diag packed) + global-avg-pool +
    encoder linears + both classifier heads.  Intermediates never leave VMEM.

    p1_ref : (nb*256, 27) bf16  conv1 im2col patches, rows ordered
                                (img, rb, cb, ra, ca), (r,c) = (2ra+rb, 2ca+cb)
    zy_ref : (nb, dz+ncls) f32  [z_content | z_domain | y_content | y_domain]
    """
    nb = zy_ref.shape[0]
    dz = w3_ref.shape[1]
    c1x2 = w1_ref.shape[1]           # 2*C1 = 32
    c2x2 = w2_ref.shape[2]           # 2*C2 = 64
    hw2 = HO2 * WO2                  # 64 spatial positions after conv2

    # ---- conv1 (both encoders): one matmul + bias + relu --------------------
    h1 = jnp.dot(p1_ref[...], w1_ref[...], preferred_element_type=jnp.float32)
    h1 = jnp.maximum(h1 + b1_ref[...], 0.0).astype(jnp.bfloat16)   # (nb*256, 32)

    # Parity-major view: each trailing (ca=8, C=32) slab is exactly one 8-row
    # sublane tile of the source, so this reshape is layout-preserving.
    v = h1.reshape(nb, 2, 2, HO2, WO2, c1x2)

    # ---- conv2 (3x3, stride 2, pad 1) as 9 accumulating tap matmuls ---------
    # Tap (di, dj) needs input (2*oh+di-1, 2*ow+dj-1):
    #   di=1 -> (rb=0, ra=oh); di=2 -> (rb=1, ra=oh); di=0 -> (rb=1, ra=oh-1,
    #   zero at oh==0)  (and analogously for columns).
    zero_r = jnp.zeros((nb, 1, WO2, c1x2), jnp.bfloat16)
    zero_c = jnp.zeros((nb, HO2, 1, c1x2), jnp.bfloat16)
    acc2 = jnp.zeros((nb * hw2, c2x2), jnp.float32)
    for di in range(3):
        for dj in range(3):
            slab = v[:, (di + 1) % 2, (dj + 1) % 2]          # (nb, 8, 8, 32)
            if di == 0:   # shift oh window by -1, zero boundary at oh == 0
                slab = jnp.concatenate([zero_r, slab[:, :-1]], axis=1)
            if dj == 0:   # shift ow window by -1, zero boundary at ow == 0
                slab = jnp.concatenate([zero_c, slab[:, :, :-1]], axis=2)
            acc2 = acc2 + jnp.dot(slab.reshape(nb * hw2, c1x2),
                                  w2_ref[di * 3 + dj],
                                  preferred_element_type=jnp.float32)
    h2 = jnp.maximum(acc2 + b2_ref[...], 0.0)                # (nb*64, 64) f32

    # ---- global average pool: in-kernel mean (no pooling-operator matmul) ---
    pooled = jnp.mean(h2.reshape(nb, hw2, c2x2), axis=1)     # (nb, 64) f32

    # ---- encoder linears + classifier heads (block-diag, bf16 in / f32 acc) -
    z = jnp.dot(pooled.astype(jnp.bfloat16), w3_ref[...],
                preferred_element_type=jnp.float32) + b3_ref[...]
    h = jnp.maximum(
        jnp.dot(z.astype(jnp.bfloat16), wc1_ref[...],
                preferred_element_type=jnp.float32) + bc1_ref[...], 0.0)
    y = jnp.dot(h.astype(jnp.bfloat16), wc2_ref[...],
                preferred_element_type=jnp.float32) + bc2_ref[...]

    # merged output: [z | y]
    zy_ref[:, :dz] = z
    zy_ref[:, dz:] = y


def fused_call(patches, pk, NB):
    k1 = patches.shape[1]                 # 27
    dz = pk["w3"].shape[1]
    hid2 = pk["wc1"].shape[1]
    ncls = pk["wc2"].shape[1]
    pos = IMG_H * IMG_W                   # 256 conv1 positions per image

    # Image-block grid: keeps per-step VMEM bounded as batch grows (v7x 64 MiB
    # budget) and gives a "parallel" axis for v7x's two TensorCores.  For the
    # small demo batch this degenerates to a single full-array block.
    nb = 8 if NB % 8 == 0 else NB
    grid = (NB // nb,)

    return pl.pallas_call(
        _fused_kernel,
        out_shape=jax.ShapeDtypeStruct((NB, dz + ncls), jnp.float32),
        grid_spec=pltpu.PrefetchScalarGridSpec(
            num_scalar_prefetch=0,
            grid=grid,
            in_specs=[
                pl.BlockSpec((nb * pos, k1), lambda i: (i, 0)),
                pl.BlockSpec((k1, 2 * C1), lambda i: (0, 0)),
                pl.BlockSpec((1, 2 * C1), lambda i: (0, 0)),
                pl.BlockSpec((9, 2 * C1, 2 * C2), lambda i: (0, 0, 0)),
                pl.BlockSpec((1, 2 * C2), lambda i: (0, 0)),
                pl.BlockSpec((2 * C2, dz), lambda i: (0, 0)),
                pl.BlockSpec((1, dz), lambda i: (0, 0)),
                pl.BlockSpec((dz, hid2), lambda i: (0, 0)),
                pl.BlockSpec((1, hid2), lambda i: (0, 0)),
                pl.BlockSpec((hid2, ncls), lambda i: (0, 0)),
                pl.BlockSpec((1, ncls), lambda i: (0, 0)),
            ],
            out_specs=pl.BlockSpec((nb, dz + ncls), lambda i: (i, 0)),
        ),
        compiler_params=pltpu.CompilerParams(
            dimension_semantics=("parallel",),
            vmem_limit_bytes=32 * 1024 * 1024),
    )(patches, pk["w1"], pk["b1"], pk["w2"], pk["b2"], pk["w3"], pk["b3"],
      pk["wc1"], pk["bc1"], pk["wc2"], pk["bc2"])


# ---------------------------------------------------------------------------
# Parameters (per-module, torch-like) and one-time packing (outside jit)
# ---------------------------------------------------------------------------

def init_encoder(key, dim_z):
    k1, k2, k3, k4, k5, k6 = jax.random.split(key, 6)
    return {
        "w1": 0.1 * jax.random.normal(k1, (3 * 3 * C_IN, C1), jnp.float32),
        "b1": 0.1 * jax.random.normal(k4, (C1,), jnp.float32),
        "w2": 0.1 * jax.random.normal(k2, (3 * 3 * C1, C2), jnp.float32),
        "b2": 0.1 * jax.random.normal(k5, (C2,), jnp.float32),
        "w3": 0.1 * jax.random.normal(k3, (C2, dim_z), jnp.float32),
        "b3": 0.1 * jax.random.normal(k6, (dim_z,), jnp.float32),
    }


def init_classifier(key, dim_z, num_out):
    k1, k2, k3, k4 = jax.random.split(key, 4)
    return {
        "w1": 0.1 * jax.random.normal(k1, (dim_z, HIDDEN_CLS), jnp.float32),
        "b1": 0.1 * jax.random.normal(k3, (HIDDEN_CLS,), jnp.float32),
        "w2": 0.1 * jax.random.normal(k2, (HIDDEN_CLS, num_out), jnp.float32),
        "b2": 0.1 * jax.random.normal(k4, (num_out,), jnp.float32),
    }


def pack_params(params):
    """Runs ONCE at init (outside jit).  Concatenate / block-diagonal-pack both
    encoders and both classifiers so each layer of the whole model is a single
    matmul, and cast all matmul weights to bf16 (accumulation stays f32)."""
    pc, pd = params["content_feature"], params["domain_feature"]
    cc, dc = params["content_classifier"], params["domain_classifier"]
    dzc, dzd = pc["w3"].shape[1], pd["w3"].shape[1]
    nc, nd = cc["w2"].shape[1], dc["w2"].shape[1]

    # conv1: both encoders read the same patches -> concat along N
    w1 = jnp.concatenate([pc["w1"], pd["w1"]], axis=1)                 # (27, 32)
    b1 = jnp.concatenate([pc["b1"], pd["b1"]], axis=0)

    # conv2: block-diagonal per 3x3 tap over the concatenated channel dim
    w2c = pc["w2"].reshape(9, C1, C2)
    w2d = pd["w2"].reshape(9, C1, C2)
    w2 = jnp.zeros((9, 2 * C1, 2 * C2), jnp.float32)
    w2 = w2.at[:, :C1, :C2].set(w2c).at[:, C1:, C2:].set(w2d)          # (9,32,64)
    b2 = jnp.concatenate([pc["b2"], pd["b2"]], axis=0)

    # encoder linear: block-diagonal
    w3 = jnp.zeros((2 * C2, dzc + dzd), jnp.float32)
    w3 = w3.at[:C2, :dzc].set(pc["w3"]).at[C2:, dzc:].set(pd["w3"])
    b3 = jnp.concatenate([pc["b3"], pd["b3"]], axis=0)

    # classifier layers: block-diagonal on [z_content | z_domain]
    wc1 = jnp.zeros((dzc + dzd, 2 * HIDDEN_CLS), jnp.float32)
    wc1 = wc1.at[:dzc, :HIDDEN_CLS].set(cc["w1"]).at[dzc:, HIDDEN_CLS:].set(dc["w1"])
    bc1 = jnp.concatenate([cc["b1"], dc["b1"]], axis=0)
    wc2 = jnp.zeros((2 * HIDDEN_CLS, nc + nd), jnp.float32)
    wc2 = wc2.at[:HIDDEN_CLS, :nc].set(cc["w2"]).at[HIDDEN_CLS:, nc:].set(dc["w2"])
    bc2 = jnp.concatenate([cc["b2"], dc["b2"]], axis=0)

    packed = {
        "w1": w1.astype(jnp.bfloat16), "b1": b1.reshape(1, -1),
        "w2": w2.astype(jnp.bfloat16), "b2": b2.reshape(1, -1),
        "w3": w3.astype(jnp.bfloat16), "b3": b3.reshape(1, -1),
        "wc1": wc1.astype(jnp.bfloat16), "bc1": bc1.reshape(1, -1),
        "wc2": wc2.astype(jnp.bfloat16), "bc2": bc2.reshape(1, -1),
    }
    dims = (dzc, dzd, nc, nd)
    return packed, dims


# ---------------------------------------------------------------------------
# DomainAdaptation.forward (Pallas path)
# ---------------------------------------------------------------------------

def domain_adaptation_forward(packed, x1, x2, *, dims):
    """Mirror of DomainAdaptation.forward (infomin_layer is not used)."""
    dzc, dzd, nc, nd = dims
    x = jnp.concatenate([x1, x2], axis=0)                   # (NB, 3, 16, 16)
    num_x1 = x1.shape[0]
    NB = x.shape[0]

    # Glue: NCHW -> NHWC bf16, conv1 im2col in parity-major row order.
    xh = jnp.transpose(x, (0, 2, 3, 1)).astype(jnp.bfloat16)
    xp = jnp.pad(xh, ((0, 0), (1, 1), (1, 1), (0, 0)))
    cols = [xp[:, i:i + IMG_H, j:j + IMG_W, :] for i in range(3) for j in range(3)]
    patches = jnp.concatenate(cols, axis=-1)                 # (NB, 16, 16, 27)
    # (img, r, c) -> (img, rb, cb, ra, ca) with (r, c) = (2*ra+rb, 2*ca+cb)
    patches = patches.reshape(NB, IMG_H // 2, 2, IMG_W // 2, 2, 9 * C_IN)
    patches = patches.transpose(0, 2, 4, 1, 3, 5)
    patches = patches.reshape(NB * IMG_H * IMG_W, 9 * C_IN)

    # Single fused kernel for everything else.
    zy = fused_call(patches, packed, NB)

    z_content = zy[:, :dzc]
    z_domain = zy[:, dzc:dzc + dzd]
    y_content = zy[:, dzc + dzd:dzc + dzd + nc]
    y_domain = zy[:, dzc + dzd + nc:]
    return (z_content, z_domain,
            y_content[:num_x1], y_content[num_x1:], y_domain)


# ---------------------------------------------------------------------------
# Pure-JAX reference (unpacked, per-module), mirroring the bf16 conv inputs
# ---------------------------------------------------------------------------

def im2col(x_nhwc, k, stride, pad):
    N, H, W, C = x_nhwc.shape
    xpad = jnp.pad(x_nhwc, ((0, 0), (pad, pad), (pad, pad), (0, 0)))
    Ho = (H + 2 * pad - k) // stride + 1
    Wo = (W + 2 * pad - k) // stride + 1
    cols = []
    for di in range(k):
        for dj in range(k):
            cols.append(xpad[:, di:di + stride * Ho:stride,
                             dj:dj + stride * Wo:stride, :])
    patches = jnp.concatenate(cols, axis=-1)
    return patches.reshape(N * Ho * Wo, k * k * C), Ho, Wo


def _ref_encoder(p, x_nhwc_bf16):
    B = x_nhwc_bf16.shape[0]
    patches, Ho, Wo = im2col(x_nhwc_bf16, 3, 1, 1)
    h1 = jnp.maximum(jnp.dot(patches, p["w1"].astype(jnp.bfloat16),
                             preferred_element_type=jnp.float32) + p["b1"], 0.0)
    h1 = h1.astype(jnp.bfloat16).reshape(B, Ho, Wo, C1)
    patches2, Ho2, Wo2 = im2col(h1, 3, 2, 1)
    h2 = jnp.maximum(jnp.dot(patches2, p["w2"].astype(jnp.bfloat16),
                             preferred_element_type=jnp.float32) + p["b2"], 0.0)
    pooled = jnp.mean(h2.reshape(B, Ho2 * Wo2, C2), axis=1)
    return jnp.dot(pooled, p["w3"], preferred_element_type=jnp.float32) + p["b3"]


def _ref_classifier(p, z):
    h = jnp.maximum(jnp.dot(z, p["w1"], preferred_element_type=jnp.float32) + p["b1"], 0.0)
    return jnp.dot(h, p["w2"], preferred_element_type=jnp.float32) + p["b2"]


def reference_forward(params, x1, x2):
    x = jnp.concatenate([x1, x2], axis=0)
    num_x1 = x1.shape[0]
    xh = jnp.transpose(x, (0, 2, 3, 1)).astype(jnp.bfloat16)
    z_content = _ref_encoder(params["content_feature"], xh)
    z_domain = _ref_encoder(params["domain_feature"], xh)
    y_content_1 = _ref_classifier(params["content_classifier"], z_content[:num_x1])
    y_content_2 = _ref_classifier(params["content_classifier"], z_content[num_x1:])
    y_domain = _ref_classifier(params["domain_classifier"], z_domain)
    return z_content, z_domain, y_content_1, y_content_2, y_domain


# ---------------------------------------------------------------------------

if __name__ == "__main__":
    dim_z_content, dim_z_domain = 32, 16
    num_class, num_domain = 10, 2
    B = 2                                               # x1, x2: (2, 3, 16, 16)

    kx = jax.random.PRNGKey(0)
    kx1, kx2 = jax.random.split(kx)
    x1 = jax.random.normal(kx1, (B, C_IN, IMG_H, IMG_W), jnp.float32)
    x2 = jax.random.normal(kx2, (B, C_IN, IMG_H, IMG_W), jnp.float32)

    kp = jax.random.PRNGKey(1)
    kcf, kdf, kcc, kdc = jax.random.split(kp, 4)
    params = {
        "content_feature": init_encoder(kcf, dim_z_content),
        "domain_feature": init_encoder(kdf, dim_z_domain),
        "content_classifier": init_classifier(kcc, dim_z_content, num_class),
        "domain_classifier": init_classifier(kdc, dim_z_domain, num_domain),
    }

    # Weight packing is hoisted out of the jitted forward: runs once, eagerly.
    packed, dims = pack_params(params)
    packed = jax.block_until_ready(packed)

    fwd = jax.jit(domain_adaptation_forward, static_argnames=("dims",))
    outs = jax.block_until_ready(fwd(packed, x1, x2, dims=dims))

    z_content, z_domain, y_content_1, y_content_2, y_domain = outs
    assert z_content.shape == (2 * B, dim_z_content)
    assert z_domain.shape == (2 * B, dim_z_domain)
    assert y_content_1.shape == (B, num_class)
    assert y_content_2.shape == (B, num_class)
    assert y_domain.shape == (2 * B, num_domain)

    # Numerical check vs. plain-JAX reference.
    refs = jax.block_until_ready(jax.jit(reference_forward)(params, x1, x2))
    for got, ref in zip(outs, refs):
        np.testing.assert_allclose(np.asarray(got, np.float32),
                                   np.asarray(ref, np.float32),
                                   rtol=2e-2, atol=2e-2)

    print("KERNEL_OK")
</pallas_src>

<mosaic_0001>
module attributes {stable_mosaic.version = 11 : i64} {
  func.func @_fused_kernel(%arg0: i32, %arg1: memref<1024x27xbf16, #tpu.memory_space<vmem>>, %arg2: memref<27x32xbf16, #tpu.memory_space<vmem>>, %arg3: memref<1x32xf32, #tpu.memory_space<vmem>>, %arg4: memref<9x32x64xbf16, #tpu.memory_space<vmem>>, %arg5: memref<1x64xf32, #tpu.memory_space<vmem>>, %arg6: memref<64x48xbf16, #tpu.memory_space<vmem>>, %arg7: memref<1x48xf32, #tpu.memory_space<vmem>>, %arg8: memref<48x128xbf16, #tpu.memory_space<vmem>>, %arg9: memref<1x128xf32, #tpu.memory_space<vmem>>, %arg10: memref<128x12xbf16, #tpu.memory_space<vmem>>, %arg11: memref<1x12xf32, #tpu.memory_space<vmem>>, %arg12: memref<4x60xf32, #tpu.memory_space<vmem>>) attributes {dimension_semantics = [#tpu.dimension_semantics<parallel>], iteration_bounds = array<i64: 1>, scalar_prefetch = 0 : i64, scratch_operands = 0 : i64, tpu.core_type = #tpu.core_type<tc>, window_params = [{transform_indices = @transform_0, window_bounds = array<i64: 1024, 27>}, {pipeline_mode = #tpu.pipeline_mode<synchronous>, transform_indices = @transform_1, window_bounds = array<i64: 27, 32>}, {pipeline_mode = #tpu.pipeline_mode<synchronous>, transform_indices = @transform_2, window_bounds = array<i64: 1, 32>}, {pipeline_mode = #tpu.pipeline_mode<synchronous>, transform_indices = @transform_3, window_bounds = array<i64: 9, 32, 64>}, {pipeline_mode = #tpu.pipeline_mode<synchronous>, transform_indices = @transform_4, window_bounds = array<i64: 1, 64>}, {pipeline_mode = #tpu.pipeline_mode<synchronous>, transform_indices = @transform_5, window_bounds = array<i64: 64, 48>}, {pipeline_mode = #tpu.pipeline_mode<synchronous>, transform_indices = @transform_6, window_bounds = array<i64: 1, 48>}, {pipeline_mode = #tpu.pipeline_mode<synchronous>, transform_indices = @transform_7, window_bounds = array<i64: 48, 128>}, {pipeline_mode = #tpu.pipeline_mode<synchronous>, transform_indices = @transform_8, window_bounds = array<i64: 1, 128>}, {pipeline_mode = #tpu.pipeline_mode<synchronous>, transform_indices = @transform_9, window_bounds = array<i64: 128, 12>}, {pipeline_mode = #tpu.pipeline_mode<synchronous>, transform_indices = @transform_10, window_bounds = array<i64: 1, 12>}, {transform_indices = @transform_11, window_bounds = array<i64: 4, 60>}]} {
    %c0 = arith.constant 0 : index
    %c0_0 = arith.constant 0 : index
    %0 = vector.load %arg1[%c0, %c0_0] : memref<1024x27xbf16, #tpu.memory_space<vmem>>, vector<1024x27xbf16>
    %c0_1 = arith.constant 0 : index
    %c0_2 = arith.constant 0 : index
    %1 = vector.load %arg2[%c0_1, %c0_2] : memref<27x32xbf16, #tpu.memory_space<vmem>>, vector<27x32xbf16>
    %cst = arith.constant dense<0.000000e+00> : vector<1024x32xf32>
    %2 = tpu.matmul %0, %1, %cst {dimension_numbers = #tpu.dot_dimension_numbers<[1], [0], [0], [1], [0, 0, 1, 1], [], []>} : vector<1024x27xbf16>, vector<27x32xbf16>, vector<1024x32xf32> -> vector<1024x32xf32>
    %c0_3 = arith.constant 0 : index
    %c0_4 = arith.constant 0 : index
    %3 = vector.load %arg3[%c0_3, %c0_4] : memref<1x32xf32, #tpu.memory_space<vmem>>, vector<1x32xf32>
    %4 = vector.broadcast %3 : vector<1x32xf32> to vector<1024x32xf32>
    %5 = arith.addf %2, %4 : vector<1024x32xf32>
    %cst_5 = arith.constant 0.000000e+00 : f32
    %6 = vector.broadcast %cst_5 : f32 to vector<1024x32xf32>
    %7 = arith.maximumf %5, %6 : vector<1024x32xf32>
    %8 = arith.truncf %7 : vector<1024x32xf32> to vector<1024x32xbf16>
    %9 = vector.shape_cast %8 : vector<1024x32xbf16> to vector<4x2x2x8x8x32xbf16>
    %cst_6 = arith.constant 0.000000e+00 : bf16
    %10 = vector.broadcast %cst_6 : bf16 to vector<4x1x8x32xbf16>
    %cst_7 = arith.constant 0.000000e+00 : bf16
    %11 = vector.broadcast %cst_7 : bf16 to vector<4x8x1x32xbf16>
    %cst_8 = arith.constant 0.000000e+00 : f32
    %12 = vector.broadcast %cst_8 : f32 to vector<256x64xf32>
    %13 = vector.extract_strided_slice %9 {offsets = [0, 1, 1, 0, 0, 0], sizes = [4, 1, 1, 8, 8, 32], strides = [1, 1, 1, 1, 1, 1]} : vector<4x2x2x8x8x32xbf16> to vector<4x1x1x8x8x32xbf16>
    %14 = vector.shape_cast %13 : vector<4x1x1x8x8x32xbf16> to vector<4x8x8x32xbf16>
    %15 = vector.extract_strided_slice %14 {offsets = [0, 0, 0, 0], sizes = [4, 7, 8, 32], strides = [1, 1, 1, 1]} : vector<4x8x8x32xbf16> to vector<4x7x8x32xbf16>
    %16 = tpu.concatenate %10, %15 in 1 : vector<4x1x8x32xbf16>, vector<4x7x8x32xbf16> -> vector<4x8x8x32xbf16>
    %17 = vector.extract_strided_slice %16 {offsets = [0, 0, 0, 0], sizes = [4, 8, 7, 32], strides = [1, 1, 1, 1]} : vector<4x8x8x32xbf16> to vector<4x8x7x32xbf16>
    %18 = tpu.concatenate %11, %17 in 2 : vector<4x8x1x32xbf16>, vector<4x8x7x32xbf16> -> vector<4x8x8x32xbf16>
    %19 = vector.shape_cast %18 : vector<4x8x8x32xbf16> to vector<256x32xbf16>
    %c0_9 = arith.constant 0 : index
    %c0_10 = arith.constant 0 : index
    %c0_11 = arith.constant 0 : index
    %20 = vector.load %arg4[%c0_9, %c0_10, %c0_11] : memref<9x32x64xbf16, #tpu.memory_space<vmem>>, vector<1x32x64xbf16>
    %21 = vector.shape_cast %20 : vector<1x32x64xbf16> to vector<32x64xbf16>
    %cst_12 = arith.constant dense<0.000000e+00> : vector<256x64xf32>
    %22 = tpu.matmul %19, %21, %cst_12 {dimension_numbers = #tpu.dot_dimension_numbers<[1], [0], [0], [1], [0, 0, 1, 1], [], []>} : vector<256x32xbf16>, vector<32x64xbf16>, vector<256x64xf32> -> vector<256x64xf32>
    %23 = arith.addf %12, %22 : vector<256x64xf32>
    %24 = vector.extract_strided_slice %9 {offsets = [0, 1, 0, 0, 0, 0], sizes = [4, 1, 1, 8, 8, 32], strides = [1, 1, 1, 1, 1, 1]} : vector<4x2x2x8x8x32xbf16> to vector<4x1x1x8x8x32xbf16>
    %25 = vector.shape_cast %24 : vector<4x1x1x8x8x32xbf16> to vector<4x8x8x32xbf16>
    %26 = vector.extract_strided_slice %25 {offsets = [0, 0, 0, 0], sizes = [4, 7, 8, 32], strides = [1, 1, 1, 1]} : vector<4x8x8x32xbf16> to vector<4x7x8x32xbf16>
    %27 = tpu.concatenate %10, %26 in 1 : vector<4x1x8x32xbf16>, vector<4x7x8x32xbf16> -> vector<4x8x8x32xbf16>
    %28 = vector.shape_cast %27 : vector<4x8x8x32xbf16> to vector<256x32xbf16>
    %c1 = arith.constant 1 : index
    %c0_13 = arith.constant 0 : index
    %c0_14 = arith.constant 0 : index
    %29 = vector.load %arg4[%c1, %c0_13, %c0_14] : memref<9x32x64xbf16, #tpu.memory_space<vmem>>, vector<1x32x64xbf16>
    %30 = vector.shape_cast %29 : vector<1x32x64xbf16> to vector<32x64xbf16>
    %cst_15 = arith.constant dense<0.000000e+00> : vector<256x64xf32>
    %31 = tpu.matmul %28, %30, %cst_15 {dimension_numbers = #tpu.dot_dimension_numbers<[1], [0], [0], [1], [0, 0, 1, 1], [], []>} : vector<256x32xbf16>, vector<32x64xbf16>, vector<256x64xf32> -> vector<256x64xf32>
    %32 = arith.addf %23, %31 : vector<256x64xf32>
    %33 = vector.extract_strided_slice %9 {offsets = [0, 1, 1, 0, 0, 0], sizes = [4, 1, 1, 8, 8, 32], strides = [1, 1, 1, 1, 1, 1]} : vector<4x2x2x8x8x32xbf16> to vector<4x1x1x8x8x32xbf16>
    %34 = vector.shape_cast %33 : vector<4x1x1x8x8x32xbf16> to vector<4x8x8x32xbf16>
    %35 = vector.extract_strided_slice %34 {offsets = [0, 0, 0, 0], sizes = [4, 7, 8, 32], strides = [1, 1, 1, 1]} : vector<4x8x8x32xbf16> to vector<4x7x8x32xbf16>
    %36 = tpu.concatenate %10, %35 in 1 : vector<4x1x8x32xbf16>, vector<4x7x8x32xbf16> -> vector<4x8x8x32xbf16>
    %37 = vector.shape_cast %36 : vector<4x8x8x32xbf16> to vector<256x32xbf16>
    %c2 = arith.constant 2 : index
    %c0_16 = arith.constant 0 : index
    %c0_17 = arith.constant 0 : index
    %38 = vector.load %arg4[%c2, %c0_16, %c0_17] : memref<9x32x64xbf16, #tpu.memory_space<vmem>>, vector<1x32x64xbf16>
    %39 = vector.shape_cast %38 : vector<1x32x64xbf16> to vector<32x64xbf16>
    %cst_18 = arith.constant dense<0.000000e+00> : vector<256x64xf32>
    %40 = tpu.matmul %37, %39, %cst_18 {dimension_numbers = #tpu.dot_dimension_numbers<[1], [0], [0], [1], [0, 0, 1, 1], [], []>} : vector<256x32xbf16>, vector<32x64xbf16>, vector<256x64xf32> -> vector<256x64xf32>
    %41 = arith.addf %32, %40 : vector<256x64xf32>
    %42 = vector.extract_strided_slice %9 {offsets = [0, 0, 1, 0, 0, 0], sizes = [4, 1, 1, 8, 8, 32], strides = [1, 1, 1, 1, 1, 1]} : vector<4x2x2x8x8x32xbf16> to vector<4x1x1x8x8x32xbf16>
    %43 = vector.shape_cast %42 : vector<4x1x1x8x8x32xbf16> to vector<4x8x8x32xbf16>
    %44 = vector.extract_strided_slice %43 {offsets = [0, 0, 0, 0], sizes = [4, 8, 7, 32], strides = [1, 1, 1, 1]} : vector<4x8x8x32xbf16> to vector<4x8x7x32xbf16>
    %45 = tpu.concatenate %11, %44 in 2 : vector<4x8x1x32xbf16>, vector<4x8x7x32xbf16> -> vector<4x8x8x32xbf16>
    %46 = vector.shape_cast %45 : vector<4x8x8x32xbf16> to vector<256x32xbf16>
    %c3 = arith.constant 3 : index
    %c0_19 = arith.constant 0 : index
    %c0_20 = arith.constant 0 : index
    %47 = vector.load %arg4[%c3, %c0_19, %c0_20] : memref<9x32x64xbf16, #tpu.memory_space<vmem>>, vector<1x32x64xbf16>
    %48 = vector.shape_cast %47 : vector<1x32x64xbf16> to vector<32x64xbf16>
    %cst_21 = arith.constant dense<0.000000e+00> : vector<256x64xf32>
    %49 = tpu.matmul %46, %48, %cst_21 {dimension_numbers = #tpu.dot_dimension_numbers<[1], [0], [0], [1], [0, 0, 1, 1], [], []>} : vector<256x32xbf16>, vector<32x64xbf16>, vector<256x64xf32> -> vector<256x64xf32>
    %50 = arith.addf %41, %49 : vector<256x64xf32>
    %51 = vector.extract_strided_slice %9 {offsets = [0, 0, 0, 0, 0, 0], sizes = [4, 1, 1, 8, 8, 32], strides = [1, 1, 1, 1, 1, 1]} : vector<4x2x2x8x8x32xbf16> to vector<4x1x1x8x8x32xbf16>
    %52 = vector.shape_cast %51 : vector<4x1x1x8x8x32xbf16> to vector<4x8x8x32xbf16>
    %53 = vector.shape_cast %52 : vector<4x8x8x32xbf16> to vector<256x32xbf16>
    %c4 = arith.constant 4 : index
    %c0_22 = arith.constant 0 : index
    %c0_23 = arith.constant 0 : index
    %54 = vector.load %arg4[%c4, %c0_22, %c0_23] : memref<9x32x64xbf16, #tpu.memory_space<vmem>>, vector<1x32x64xbf16>
    %55 = vector.shape_cast %54 : vector<1x32x64xbf16> to vector<32x64xbf16>
    %cst_24 = arith.constant dense<0.000000e+00> : vector<256x64xf32>
    %56 = tpu.matmul %53, %55, %cst_24 {dimension_numbers = #tpu.dot_dimension_numbers<[1], [0], [0], [1], [0, 0, 1, 1], [], []>} : vector<256x32xbf16>, vector<32x64xbf16>, vector<256x64xf32> -> vector<256x64xf32>
    %57 = arith.addf %50, %56 : vector<256x64xf32>
    %58 = vector.extract_strided_slice %9 {offsets = [0, 0, 1, 0, 0, 0], sizes = [4, 1, 1, 8, 8, 32], strides = [1, 1, 1, 1, 1, 1]} : vector<4x2x2x8x8x32xbf16> to vector<4x1x1x8x8x32xbf16>
    %59 = vector.shape_cast %58 : vector<4x1x1x8x8x32xbf16> to vector<4x8x8x32xbf16>
    %60 = vector.shape_cast %59 : vector<4x8x8x32xbf16> to vector<256x32xbf16>
    %c5 = arith.constant 5 : index
    %c0_25 = arith.constant 0 : index
    %c0_26 = arith.constant 0 : index
    %61 = vector.load %arg4[%c5, %c0_25, %c0_26] : memref<9x32x64xbf16, #tpu.memory_space<vmem>>, vector<1x32x64xbf16>
    %62 = vector.shape_cast %61 : vector<1x32x64xbf16> to vector<32x64xbf16>
    %cst_27 = arith.constant dense<0.000000e+00> : vector<256x64xf32>
    %63 = tpu.matmul %60, %62, %cst_27 {dimension_numbers = #tpu.dot_dimension_numbers<[1], [0], [0], [1], [0, 0, 1, 1], [], []>} : vector<256x32xbf16>, vector<32x64xbf16>, vector<256x64xf32> -> vector<256x64xf32>
    %64 = arith.addf %57, %63 : vector<256x64xf32>
    %65 = vector.extract_strided_slice %9 {offsets = [0, 1, 1, 0, 0, 0], sizes = [4, 1, 1, 8, 8, 32], strides = [1, 1, 1, 1, 1, 1]} : vector<4x2x2x8x8x32xbf16> to vector<4x1x1x8x8x32xbf16>
    %66 = vector.shape_cast %65 : vector<4x1x1x8x8x32xbf16> to vector<4x8x8x32xbf16>
    %67 = vector.extract_strided_slice %66 {offsets = [0, 0, 0, 0], sizes = [4, 8, 7, 32], strides = [1, 1, 1, 1]} : vector<4x8x8x32xbf16> to vector<4x8x7x32xbf16>
    %68 = tpu.concatenate %11, %67 in 2 : vector<4x8x1x32xbf16>, vector<4x8x7x32xbf16> -> vector<4x8x8x32xbf16>
    %69 = vector.shape_cast %68 : vector<4x8x8x32xbf16> to vector<256x32xbf16>
    %c6 = arith.constant 6 : index
    %c0_28 = arith.constant 0 : index
    %c0_29 = arith.constant 0 : index
    %70 = vector.load %arg4[%c6, %c0_28, %c0_29] : memref<9x32x64xbf16, #tpu.memory_space<vmem>>, vector<1x32x64xbf16>
    %71 = vector.shape_cast %70 : vector<1x32x64xbf16> to vector<32x64xbf16>
    %cst_30 = arith.constant dense<0.000000e+00> : vector<256x64xf32>
    %72 = tpu.matmul %69, %71, %cst_30 {dimension_numbers = #tpu.dot_dimension_numbers<[1], [0], [0], [1], [0, 0, 1, 1], [], []>} : vector<256x32xbf16>, vector<32x64xbf16>, vector<256x64xf32> -> vector<256x64xf32>
    %73 = arith.addf %64, %72 : vector<256x64xf32>
    %74 = vector.extract_strided_slice %9 {offsets = [0, 1, 0, 0, 0, 0], sizes = [4, 1, 1, 8, 8, 32], strides = [1, 1, 1, 1, 1, 1]} : vector<4x2x2x8x8x32xbf16> to vector<4x1x1x8x8x32xbf16>
    %75 = vector.shape_cast %74 : vector<4x1x1x8x8x32xbf16> to vector<4x8x8x32xbf16>
    %76 = vector.shape_cast %75 : vector<4x8x8x32xbf16> to vector<256x32xbf16>
    %c7 = arith.constant 7 : index
    %c0_31 = arith.constant 0 : index
    %c0_32 = arith.constant 0 : index
    %77 = vector.load %arg4[%c7, %c0_31, %c0_32] : memref<9x32x64xbf16, #tpu.memory_space<vmem>>, vector<1x32x64xbf16>
    %78 = vector.shape_cast %77 : vector<1x32x64xbf16> to vector<32x64xbf16>
    %cst_33 = arith.constant dense<0.000000e+00> : vector<256x64xf32>
    %79 = tpu.matmul %76, %78, %cst_33 {dimension_numbers = #tpu.dot_dimension_numbers<[1], [0], [0], [1], [0, 0, 1, 1], [], []>} : vector<256x32xbf16>, vector<32x64xbf16>, vector<256x64xf32> -> vector<256x64xf32>
    %80 = arith.addf %73, %79 : vector<256x64xf32>
    %81 = vector.extract_strided_slice %9 {offsets = [0, 1, 1, 0, 0, 0], sizes = [4, 1, 1, 8, 8, 32], strides = [1, 1, 1, 1, 1, 1]} : vector<4x2x2x8x8x32xbf16> to vector<4x1x1x8x8x32xbf16>
    %82 = vector.shape_cast %81 : vector<4x1x1x8x8x32xbf16> to vector<4x8x8x32xbf16>
    %83 = vector.shape_cast %82 : vector<4x8x8x32xbf16> to vector<256x32xbf16>
    %c8 = arith.constant 8 : index
    %c0_34 = arith.constant 0 : index
    %c0_35 = arith.constant 0 : index
    %84 = vector.load %arg4[%c8, %c0_34, %c0_35] : memref<9x32x64xbf16, #tpu.memory_space<vmem>>, vector<1x32x64xbf16>
    %85 = vector.shape_cast %84 : vector<1x32x64xbf16> to vector<32x64xbf16>
    %cst_36 = arith.constant dense<0.000000e+00> : vector<256x64xf32>
    %86 = tpu.matmul %83, %85, %cst_36 {dimension_numbers = #tpu.dot_dimension_numbers<[1], [0], [0], [1], [0, 0, 1, 1], [], []>} : vector<256x32xbf16>, vector<32x64xbf16>, vector<256x64xf32> -> vector<256x64xf32>
    %87 = arith.addf %80, %86 : vector<256x64xf32>
    %c0_37 = arith.constant 0 : index
    %c0_38 = arith.constant 0 : index
    %88 = vector.load %arg5[%c0_37, %c0_38] : memref<1x64xf32, #tpu.memory_space<vmem>>, vector<1x64xf32>
    %89 = vector.broadcast %88 : vector<1x64xf32> to vector<256x64xf32>
    %90 = arith.addf %87, %89 : vector<256x64xf32>
    %cst_39 = arith.constant 0.000000e+00 : f32
    %91 = vector.broadcast %cst_39 : f32 to vector<256x64xf32>
    %92 = arith.maximumf %90, %91 : vector<256x64xf32>
    %93 = vector.shape_cast %92 : vector<256x64xf32> to vector<4x64x64xf32>
    %cst_40 = arith.constant dense<0.000000e+00> : vector<4x64xf32>
    %94 = vector.multi_reduction <add>, %93, %cst_40 [1] : vector<4x64x64xf32> to vector<4x64xf32>
    %cst_41 = arith.constant 6.400000e+01 : f32
    %95 = vector.broadcast %cst_41 : f32 to vector<4x64xf32>
    %96 = arith.divf %94, %95 : vector<4x64xf32>
    %97 = arith.truncf %96 : vector<4x64xf32> to vector<4x64xbf16>
    %c0_42 = arith.constant 0 : index
    %c0_43 = arith.constant 0 : index
    %98 = vector.load %arg6[%c0_42, %c0_43] : memref<64x48xbf16, #tpu.memory_space<vmem>>, vector<64x48xbf16>
    %cst_44 = arith.constant dense<0.000000e+00> : vector<4x48xf32>
    %99 = tpu.matmul %97, %98, %cst_44 {dimension_numbers = #tpu.dot_dimension_numbers<[1], [0], [0], [1], [0, 0, 1, 1], [], []>} : vector<4x64xbf16>, vector<64x48xbf16>, vector<4x48xf32> -> vector<4x48xf32>
    %c0_45 = arith.constant 0 : index
    %c0_46 = arith.constant 0 : index
    %100 = vector.load %arg7[%c0_45, %c0_46] : memref<1x48xf32, #tpu.memory_space<vmem>>, vector<1x48xf32>
    %101 = vector.broadcast %100 : vector<1x48xf32> to vector<4x48xf32>
    %102 = arith.addf %99, %101 : vector<4x48xf32>
    %103 = arith.truncf %102 : vector<4x48xf32> to vector<4x48xbf16>
    %c0_47 = arith.constant 0 : index
    %c0_48 = arith.constant 0 : index
    %104 = vector.load %arg8[%c0_47, %c0_48] : memref<48x128xbf16, #tpu.memory_space<vmem>>, vector<48x128xbf16>
    %cst_49 = arith.constant dense<0.000000e+00> : vector<4x128xf32>
    %105 = tpu.matmul %103, %104, %cst_49 {dimension_numbers = #tpu.dot_dimension_numbers<[1], [0], [0], [1], [0, 0, 1, 1], [], []>} : vector<4x48xbf16>, vector<48x128xbf16>, vector<4x128xf32> -> vector<4x128xf32>
    %c0_50 = arith.constant 0 : index
    %c0_51 = arith.constant 0 : index
    %106 = vector.load %arg9[%c0_50, %c0_51] : memref<1x128xf32, #tpu.memory_space<vmem>>, vector<1x128xf32>
    %107 = vector.broadcast %106 : vector<1x128xf32> to vector<4x128xf32>
    %108 = arith.addf %105, %107 : vector<4x128xf32>
    %cst_52 = arith.constant 0.000000e+00 : f32
    %109 = vector.broadcast %cst_52 : f32 to vector<4x128xf32>
    %110 = arith.maximumf %108, %109 : vector<4x128xf32>
    %111 = arith.truncf %110 : vector<4x128xf32> to vector<4x128xbf16>
    %c0_53 = arith.constant 0 : index
    %c0_54 = arith.constant 0 : index
    %112 = vector.load %arg10[%c0_53, %c0_54] : memref<128x12xbf16, #tpu.memory_space<vmem>>, vector<128x12xbf16>
    %cst_55 = arith.constant dense<0.000000e+00> : vector<4x12xf32>
    %113 = tpu.matmul %111, %112, %cst_55 {dimension_numbers = #tpu.dot_dimension_numbers<[1], [0], [0], [1], [0, 0, 1, 1], [], []>} : vector<4x128xbf16>, vector<128x12xbf16>, vector<4x12xf32> -> vector<4x12xf32>
    %c0_56 = arith.constant 0 : index
    %c0_57 = arith.constant 0 : index
    %114 = vector.load %arg11[%c0_56, %c0_57] : memref<1x12xf32, #tpu.memory_space<vmem>>, vector<1x12xf32>
    %115 = vector.broadcast %114 : vector<1x12xf32> to vector<4x12xf32>
    %116 = arith.addf %113, %115 : vector<4x12xf32>
    %c0_58 = arith.constant 0 : index
    %c0_59 = arith.constant 0 : index
    %117 = vector.load %arg12[%c0_58, %c0_59] : memref<4x60xf32, #tpu.memory_space<vmem>>, vector<4x48xf32>
    tpu.vector_store %arg12[%c0_58, %c0_59], %102 {strides = array<i32>} : memref<4x60xf32, #tpu.memory_space<vmem>>, vector<4x48xf32>,
    %c0_60 = arith.constant 0 : index
    %c48 = arith.constant 48 : index
    %118 = vector.load %arg12[%c0_60, %c48] : memref<4x60xf32, #tpu.memory_space<vmem>>, vector<4x12xf32>
    tpu.vector_store %arg12[%c0_60, %c48], %116 {strides = array<i32>} : memref<4x60xf32, #tpu.memory_space<vmem>>, vector<4x12xf32>,
    return
  }
  func.func @transform_0(%arg0: i32) -> (i32, i32) {
    %c0_i32 = arith.constant 0 : i32
    %c0_i32_0 = arith.constant 0 : i32
    return %arg0, %c0_i32 : i32, i32
  }
  func.func @transform_1(%arg0: i32) -> (i32, i32) {
    %c0_i32 = arith.constant 0 : i32
    %c0_i32_0 = arith.constant 0 : i32
    %c0_i32_1 = arith.constant 0 : i32
    return %c0_i32, %c0_i32_0 : i32, i32
  }
  func.func @transform_2(%arg0: i32) -> (i32, i32) {
    %c0_i32 = arith.constant 0 : i32
    %c0_i32_0 = arith.constant 0 : i32
    %c0_i32_1 = arith.constant 0 : i32
    return %c0_i32, %c0_i32_0 : i32, i32
  }
  func.func @transform_3(%arg0: i32) -> (i32, i32, i32) {
    %c0_i32 = arith.constant 0 : i32
    %c0_i32_0 = arith.constant 0 : i32
    %c0_i32_1 = arith.constant 0 : i32
    %c0_i32_2 = arith.constant 0 : i32
    return %c0_i32, %c0_i32_0, %c0_i32_1 : i32, i32, i32
  }
  func.func @transform_4(%arg0: i32) -> (i32, i32) {
    %c0_i32 = arith.constant 0 : i32
    %c0_i32_0 = arith.constant 0 : i32
    %c0_i32_1 = arith.constant 0 : i32
    return %c0_i32, %c0_i32_0 : i32, i32
  }
  func.func @transform_5(%arg0: i32) -> (i32, i32) {
    %c0_i32 = arith.constant 0 : i32
    %c0_i32_0 = arith.constant 0 : i32
    %c0_i32_1 = arith.constant 0 : i32
    return %c0_i32, %c0_i32_0 : i32, i32
  }
  func.func @transform_6(%arg0: i32) -> (i32, i32) {
    %c0_i32 = arith.constant 0 : i32
    %c0_i32_0 = arith.constant 0 : i32
    %c0_i32_1 = arith.constant 0 : i32
    return %c0_i32, %c0_i32_0 : i32, i32
  }
  func.func @transform_7(%arg0: i32) -> (i32, i32) {
    %c0_i32 = arith.constant 0 : i32
    %c0_i32_0 = arith.constant 0 : i32
    %c0_i32_1 = arith.constant 0 : i32
    return %c0_i32, %c0_i32_0 : i32, i32
  }
  func.func @transform_8(%arg0: i32) -> (i32, i32) {
    %c0_i32 = arith.constant 0 : i32
    %c0_i32_0 = arith.constant 0 : i32
    %c0_i32_1 = arith.constant 0 : i32
    return %c0_i32, %c0_i32_0 : i32, i32
  }
  func.func @transform_9(%arg0: i32) -> (i32, i32) {
    %c0_i32 = arith.constant 0 : i32
    %c0_i32_0 = arith.constant 0 : i32
    %c0_i32_1 = arith.constant 0 : i32
    return %c0_i32, %c0_i32_0 : i32, i32
  }
  func.func @transform_10(%arg0: i32) -> (i32, i32) {
    %c0_i32 = arith.constant 0 : i32
    %c0_i32_0 = arith.constant 0 : i32
    %c0_i32_1 = arith.constant 0 : i32
    return %c0_i32, %c0_i32_0 : i32, i32
  }
  func.func @transform_11(%arg0: i32) -> (i32, i32) {
    %c0_i32 = arith.constant 0 : i32
    %c0_i32_0 = arith.constant 0 : i32
    return %arg0, %c0_i32 : i32, i32
  }
}

</mosaic_0001>

<bundles_post_ra>
// kernel: domain_adaptation_forward.1
= control target key start
LH: loop header
LB: loop body
LE: loop exit
PB: predicated region body
PF: predicated region fallthrough
CT: control target
= control target key end

     0   :  { %vm702_vm0 = vcmask 1044480   ;;  %vm703_vm1 = vcmask 1045504   ;;  %v6666_v1 = vmov 65535   ;;  %vm509_vm2 = vcmask 220160   ;;  %s9078_s1 = inlined_call_operand.vmem [shape: bf16[27,32], index: 1, kind: input, shape index: {}]   ;;  %s9079_s0 = inlined_call_operand.vmem [shape: bf16[1024,27], index: 0, kind: input, shape index: {}]   ;;  %s9080_s3 = inlined_call_operand.vmem [shape: bf16[9,32,64], index: 3, kind: input, shape index: {}]   ;;  %s9081_s2 = inlined_call_operand.vmem [shape: f32[1,32], index: 2, kind: input, shape index: {}]   ;;  %s9082_s5 = inlined_call_operand.vmem [shape: bf16[64,48], index: 5, kind: input, shape index: {}]   ;;  %s9083_s7 = inlined_call_operand.vmem [shape: bf16[48,128], index: 7, kind: input, shape index: {}]   ;;  %s9084_s4 = inlined_call_operand.vmem [shape: f32[1,64], index: 4, kind: input, shape index: {}]   ;;  %s9085_s9 = inlined_call_operand.vmem [shape: bf16[128,12], index: 9, kind: input, shape index: {}]   ;;  %s9086_s6 = inlined_call_operand.vmem [shape: f32[1,48], index: 6, kind: input, shape index: {}]   ;;  %s9087_s11 = inlined_call_operand.vmem [shape: f32[4,60], index: 11, kind: output, shape index: {}]   ;;  %s9088_s8 = inlined_call_operand.vmem [shape: f32[1,128], index: 8, kind: input, shape index: {}]   ;;  %s9089_s10 = inlined_call_operand.vmem [shape: f32[1,12], index: 10, kind: input, shape index: {}]  }
   0x1   :  { %v6566_v0 = vld [vmem:[%s9078_s1 + $0x8] sm:$0x3f]   ;;  %v704_v2 = vsel %vm702_vm0, 4294967295, %v6666_v1  ;;  %v6568_v4 = vld [vmem:[%s9079_s0] sm:$0xff]   ;;  %v6570_v8 = vld [vmem:[%s9079_s0 + $0x10] sm:$0xff]   ;;  %vm1898_vm3 = vcmask 1040384  }
   0x2   :  { %v705_v3 = vsel %vm703_vm1, %v704_v2, 0  ;;  %v6567_v6 = vld [vmem:[%s9078_s1] sm:$0xff]   ;;  %6067 = vmatprep.mubr.msk.bf16.mxu0 %vm509_vm2, %v6568_v4  ;;  %v6569_v7 = vld [vmem:[%s9079_s0 + $0x8] sm:$0xff]   ;;  %v6571_v9 = vld [vmem:[%s9079_s0 + $0x18] sm:$0xff]   ;;  %vm1899_vm4 = vsmask.f32 256 }
   0x3   :  { %v707_v5 = vand.u32 %v6566_v0, %v705_v3  ;;  %v6572_v10 = vld [vmem:[%s9079_s0 + $0x20] sm:$0xff]   ;;  %v6573_v11 = vld [vmem:[%s9079_s0 + $0x28] sm:$0xff]   ;;  %v6574_v12 = vld [vmem:[%s9079_s0 + $0x30] sm:$0xff]   ;;  %vm1969_vm6 = vcmask 261120   ;;  %vm6669_vm7 = vmmov 0   ;;  %vm4895_vm8 = vcmask 523264  }
   0x4   :  { %v6575_v13 = vld [vmem:[%s9079_s0 + $0x38] sm:$0xff]   ;;  %v6576_v14 = vld [vmem:[%s9079_s0 + $0x40] sm:$0xff]   ;;  %v6577_v15 = vld [vmem:[%s9079_s0 + $0x48] sm:$0xff]   ;;  %vm5012_vm9 = vcmask 1041409   ;;  %vm5014_vm10 = vcmask 1042434   ;;  %vm5016_vm11 = vcmask 1043459  }
   0x5   :  { %6063 = vmatprep.subr.bf16.mxu0 %v707_v5  ;;  %v6578_v16 = vld [vmem:[%s9079_s0 + $0x50] sm:$0xff]   ;;  %v6579_v17 = vld [vmem:[%s9079_s0 + $0x58] sm:$0xff]   ;;  %v6580_v18 = vld [vmem:[%s9079_s0 + $0x60] sm:$0xff]   ;;  %vm5275_vm12 = vcmask 388096   ;;  %vm5118_vm13 = vcmask 392192   ;;  %vm5281_vm14 = vcmask 486784  }
   0x6   :  { %6064 = vmatpush3.bf16.msra.mxu0 %v707_v5  ;;  %v6581_v19 = vld [vmem:[%s9079_s0 + $0x68] sm:$0xff]   ;;  %v6582_v20 = vld [vmem:[%s9079_s0 + $0x70] sm:$0xff]   ;;  %v6583_v21 = vld [vmem:[%s9079_s0 + $0x78] sm:$0xff]  }
   0x7   :  { %6065 = vmatprep.subr.bf16.mxu0 %v6567_v6  ;;  %v6584_v22 = vld [vmem:[%s9079_s0 + $0x80] sm:$0xff]   ;;  %v6585_v23 = vld [vmem:[%s9079_s0 + $0x88] sm:$0xff]   ;;  %v6586_v24 = vld [vmem:[%s9079_s0 + $0x90] sm:$0xff]  }
   0x8   :  { %v6587_v25 = vld [vmem:[%s9079_s0 + $0x98] sm:$0xff]   ;;  %v6588_v26 = vld [vmem:[%s9079_s0 + $0xa0] sm:$0xff]   ;;  %v6589_v27 = vld [vmem:[%s9079_s0 + $0xa8] sm:$0xff]  }
   0x9   :  { %v6590_v28 = vld [vmem:[%s9079_s0 + $0xb0] sm:$0xff]   ;;  %v6591_v29 = vld [vmem:[%s9079_s0 + $0xb8] sm:$0xff]   ;;  %v6592_v30 = vld [vmem:[%s9079_s0 + $0xc0] sm:$0xff]  }
   0xa   :  { %6066 = vmatpush3.bf16.msra.mxu0 %v6567_v6  ;;  %v6593_v31 = vld [vmem:[%s9079_s0 + $0xc8] sm:$0xff]   ;;  %v6594_v32 = vld [vmem:[%s9079_s0 + $0xd0] sm:$0xff]   ;;  %v6595_v33 = vld [vmem:[%s9079_s0 + $0xd8] sm:$0xff]  }
   0xb   :  { %v6596_v34 = vld [vmem:[%s9079_s0 + $0xe0] sm:$0xff]   ;;  %v6597_v35 = vld [vmem:[%s9079_s0 + $0xe8] sm:$0xff]   ;;  %v6628_v36 = vld [vmem:[%s9080_s3 + $0x18] sm:$0xff]  }
   0xc   :  { %v6598_v37 = vld [vmem:[%s9079_s0 + $0xf0] sm:$0xff]   ;;  %6195 = vmatprep.subr.bf16.mxu1 %v6628_v36  ;;  %v6599_v39 = vld [vmem:[%s9079_s0 + $0xf8] sm:$0xff]   ;;  %v6600_v40 = vld [vmem:[%s9079_s0 + $0x100] sm:$0xff]  }
   0xd   :  { %6068 = vmatmul.mubr.msk.bf16.vlgmr.msra.gmra.mxu0 %vm509_vm2, %v6569_v7  ;;  %6196 = vmatpush3.bf16.msra.mxu1 %v6628_v36  ;;  %v6629_v38 = vld [vmem:[%s9080_s3 + $0x10] sm:$0xff]   ;;  %v6634_v41 = vld [vmem:[%s9080_s3 + $0x48] sm:$0xff]   ;;  %v6635_v44 = vld [vmem:[%s9080_s3 + $0x40] sm:$0xff]  }
   0xe   :  { %6071 = vmatprep.mubr.msk.bf16.mxu0 %vm509_vm2, %v6570_v8  ;;  %6197 = vmatprep.subr.bf16.mxu1 %v6629_v38  ;;  %v6601_v42 = vld [vmem:[%s9079_s0 + $0x108] sm:$0xff]   ;;  %v6602_v43 = vld [vmem:[%s9079_s0 + $0x110] sm:$0xff]   ;;  %v6603_v45 = vld [vmem:[%s9079_s0 + $0x118] sm:$0xff]  }
   0xf   :  { %6339 = vmatprep.subr.bf16.mxu0 %v6634_v41  ;;  %v6604_v46 = vld [vmem:[%s9079_s0 + $0x120] sm:$0xff]   ;;  %v6605_v47 = vld [vmem:[%s9079_s0 + $0x128] sm:$0xff]   ;;  %v6606_v48 = vld [vmem:[%s9079_s0 + $0x130] sm:$0xff]  }
  0x10   :  { %6340 = vmatpush3.bf16.msra.mxu0 %v6634_v41  ;;  %v6607_v49 = vld [vmem:[%s9079_s0 + $0x138] sm:$0xff]   ;;  %v6608_v50 = vld [vmem:[%s9079_s0 + $0x140] sm:$0xff]   ;;  %v6609_v51 = vld [vmem:[%s9079_s0 + $0x148] sm:$0xff]  }
  0x11   :  { %6198 = vmatpush3.bf16.msra.mxu1 %v6629_v38  ;;  %6341 = vmatprep.subr.bf16.mxu0 %v6635_v44  ;;  %v6610_v52 = vld [vmem:[%s9079_s0 + $0x150] sm:$0xff]   ;;  %v6611_v53 = vld [vmem:[%s9079_s0 + $0x158] sm:$0xff]   ;;  %v6612_v54 = vld [vmem:[%s9079_s0 + $0x160] sm:$0xff]  }
  0x12   :  { %v6613_v55 = vld [vmem:[%s9079_s0 + $0x168] sm:$0xff]   ;;  %v6614_v56 = vld [vmem:[%s9079_s0 + $0x170] sm:$0xff]   ;;  %v6615_v57 = vld [vmem:[%s9079_s0 + $0x178] sm:$0xff]  }
  0x13   :  { %v6616_v58 = vld [vmem:[%s9079_s0 + $0x180] sm:$0xff]   ;;  %v6617_v59 = vld [vmem:[%s9079_s0 + $0x188] sm:$0xff]   ;;  %v6618_v60 = vld [vmem:[%s9079_s0 + $0x190] sm:$0xff]  }
  0x14   :  { %6342 = vmatpush3.bf16.msra.mxu0 %v6635_v44  ;;  %v6619_v0 = vld [vmem:[%s9079_s0 + $0x198] sm:$0xff]   ;;  %v6620_v1 = vld [vmem:[%s9079_s0 + $0x1a0] sm:$0xff]   ;;  %v6621_v6 = vld [vmem:[%s9079_s0 + $0x1a8] sm:$0xff]  }
  0x15   :  { %6072 = vmatmul.mubr.msk.bf16.gmra.mxu0 %vm509_vm2, %v6571_v9  ;;  %v6622_v7 = vld [vmem:[%s9079_s0 + $0x1b0] sm:$0xff]   ;;  %v6986_v9 = vld [vmem:[%s9081_s2] ss:$0 sm:$0xff]  ;;  %v6625_v41 = vld [vmem:[%s9079_s0 + $0x1c8] sm:$0xff]  }
  0x16   :  { %6075 = vmatprep.mubr.msk.bf16.mxu0 %vm509_vm2, %v6572_v10  ;;  %vm7035_vm5 = vmand %vm1898_vm3, %vm1899_vm4 }
  0x1d   :  { %6076 = vmatmul.mubr.msk.bf16.gmra.mxu0 %vm509_vm2, %v6573_v11 }
  0x1e   :  { %6079 = vmatprep.mubr.msk.bf16.mxu0 %vm509_vm2, %v6574_v12 }
  0x25   :  { %6080 = vmatmul.mubr.msk.bf16.gmra.mxu0 %vm509_vm2, %v6575_v13 }
  0x26   :  { %6083 = vmatprep.mubr.msk.bf16.mxu0 %vm509_vm2, %v6576_v14 }
  0x2d   :  { %6084 = vmatmul.mubr.msk.bf16.gmra.mxu0 %vm509_vm2, %v6577_v15 }
  0x2e   :  { %6087 = vmatprep.mubr.msk.bf16.mxu0 %vm509_vm2, %v6578_v16  ;;  %v6623_v16 = vld [vmem:[%s9079_s0 + $0x1b8] sm:$0xff]  }
  0x35   :  { %6088 = vmatmul.mubr.msk.bf16.gmra.mxu0 %vm509_vm2, %v6579_v17 }
  0x36   :  { %6091 = vmatprep.mubr.msk.bf16.mxu0 %vm509_vm2, %v6580_v18 }
  0x3d   :  { %6092 = vmatmul.mubr.msk.bf16.gmra.mxu0 %vm509_vm2, %v6581_v19 }
  0x3e   :  { %6095 = vmatprep.mubr.msk.bf16.mxu0 %vm509_vm2, %v6582_v20  ;;  %v6624_v20 = vld [vmem:[%s9079_s0 + $0x1c0] sm:$0xff]  }
  0x45   :  { %6096 = vmatmul.mubr.msk.bf16.gmra.mxu0 %vm509_vm2, %v6583_v21 }
  0x46   :  { %6099 = vmatprep.mubr.msk.bf16.mxu0 %vm509_vm2, %v6584_v22 }
  0x4d   :  { %6100 = vmatmul.mubr.msk.bf16.gmra.mxu0 %vm509_vm2, %v6585_v23 }
  0x4e   :  { %6103 = vmatprep.mubr.msk.bf16.mxu0 %vm509_vm2, %v6586_v24 }
  0x55   :  { %6104 = vmatmul.mubr.msk.bf16.gmra.mxu0 %vm509_vm2, %v6587_v25 }
  0x56   :  { %6107 = vmatprep.mubr.msk.bf16.mxu0 %vm509_vm2, %v6588_v26 }
  0x5d   :  { %6108 = vmatmul.mubr.msk.bf16.gmra.mxu0 %vm509_vm2, %v6589_v27 }
  0x5e   :  { %6111 = vmatprep.mubr.msk.bf16.mxu0 %vm509_vm2, %v6590_v28 }
  0x65   :  { %6112 = vmatmul.mubr.msk.bf16.gmra.mxu0 %vm509_vm2, %v6591_v29 }
  0x66   :  { %6115 = vmatprep.mubr.msk.bf16.mxu0 %vm509_vm2, %v6592_v30 }
  0x6d   :  { %6116 = vmatmul.mubr.msk.bf16.gmra.mxu0 %vm509_vm2, %v6593_v31 }
  0x6e   :  { %6119 = vmatprep.mubr.msk.bf16.mxu0 %vm509_vm2, %v6594_v32 }
  0x75   :  { %6120 = vmatmul.mubr.msk.bf16.gmra.mxu0 %vm509_vm2, %v6595_v33 }
  0x76   :  { %6123 = vmatprep.mubr.msk.bf16.mxu0 %vm509_vm2, %v6596_v34 }
  0x7d   :  { %6124 = vmatmul.mubr.msk.bf16.gmra.mxu0 %vm509_vm2, %v6597_v35 }
  0x7e   :  { %6127 = vmatprep.mubr.msk.bf16.mxu0 %vm509_vm2, %v6598_v37 }
  0x85   :  { %6128 = vmatmul.mubr.msk.bf16.gmra.mxu0 %vm509_vm2, %v6599_v39 }
  0x86   :  { %6131 = vmatprep.mubr.msk.bf16.mxu0 %vm509_vm2, %v6600_v40 }
  0x8d   :  { %6132 = vmatmul.mubr.msk.bf16.gmra.mxu0 %vm509_vm2, %v6601_v42 }
  0x8e   :  { %6135 = vmatprep.mubr.msk.bf16.mxu0 %vm509_vm2, %v6602_v43 }
  0x95   :  { %6136 = vmatmul.mubr.msk.bf16.gmra.mxu0 %vm509_vm2, %v6603_v45 }
  0x96   :  { %6139 = vmatprep.mubr.msk.bf16.mxu0 %vm509_vm2, %v6604_v46  ;;  %v6626_v46 = vld [vmem:[%s9079_s0 + $0x1d0] sm:$0xff]  }
  0x9d   :  { %6140 = vmatmul.mubr.msk.bf16.gmra.mxu0 %vm509_vm2, %v6605_v47 }
  0x9e   :  { %6143 = vmatprep.mubr.msk.bf16.mxu0 %vm509_vm2, %v6606_v48 }
  0xa5   :  { %6144 = vmatmul.mubr.msk.bf16.gmra.mxu0 %vm509_vm2, %v6607_v49 }
  0xa6   :  { %6147 = vmatprep.mubr.msk.bf16.mxu0 %vm509_vm2, %v6608_v50 }
  0xad   :  { %6148 = vmatmul.mubr.msk.bf16.gmra.mxu0 %vm509_vm2, %v6609_v51 }
  0xae   :  { %6151 = vmatprep.mubr.msk.bf16.mxu0 %vm509_vm2, %v6610_v52 }
  0xb5   :  { %6152 = vmatmul.mubr.msk.bf16.gmra.mxu0 %vm509_vm2, %v6611_v53 }
  0xb6   :  { %6155 = vmatprep.mubr.msk.bf16.mxu0 %vm509_vm2, %v6612_v54 }
  0xbd   :  { %6156 = vmatmul.mubr.msk.bf16.gmra.mxu0 %vm509_vm2, %v6613_v55 }
  0xbe   :  { %6159 = vmatprep.mubr.msk.bf16.mxu0 %vm509_vm2, %v6614_v56 }
  0xc5   :  { %6160 = vmatmul.mubr.msk.bf16.gmra.mxu0 %vm509_vm2, %v6615_v57 }
  0xc6   :  { %6163 = vmatprep.mubr.msk.bf16.mxu0 %vm509_vm2, %v6616_v58 }
  0xcd   :  { %v6951_v61 = vpop.f32.mrf.mxu0  ;;  %6164 = vmatmul.mubr.msk.bf16.gmra.mxu0 %vm509_vm2, %v6617_v59 }
  0xce   :  { %6167 = vmatprep.mubr.msk.bf16.mxu0 %vm509_vm2, %v6618_v60 }
  0xcf   :  { %v6955_v62 = vpop.f32.mrf.mxu0 }
  0xd1   :  { %v6957_v63 = vpop.f32.mrf.mxu0 }
  0xd3   :  { %v6965_v2 = vpop.f32.mrf.mxu0 }
  0xd5   :  { %v6967_v3 = vpop.f32.mrf.mxu0  ;;  %6168 = vmatmul.mubr.msk.bf16.gmra.mxu0 %vm509_vm2, %v6619_v0 }
  0xd6   :  { %6171 = vmatprep.mubr.msk.bf16.mxu0 %vm509_vm2, %v6620_v1 }
  0xd7   :  { %v6971_v4 = vpop.f32.mrf.mxu0 }
  0xd9   :  { %v6973_v5 = vpop.f32.mrf.mxu0 }
  0xdb   :  { %v6981_v8 = vpop.f32.mrf.mxu0 }
  0xdd   :  { %v6077_v10 = vpop.f32.mrf.mxu0  ;;  %6172 = vmatmul.mubr.msk.bf16.gmra.mxu0 %vm509_vm2, %v6621_v6 }
  0xde   :  { %v784_v11 = vadd.f32 %v6077_v10, %v6986_v9  ;;  %6175 = vmatprep.mubr.msk.bf16.mxu0 %vm509_vm2, %v6622_v7 }
  0xdf   :  { %v775_v12 = vpop.f32.mrf.mxu0 }
  0xe0   :  { %v6991_v13 = vmax.f32 %v784_v11, 0.0  ;;  %v776_v14 = vadd.f32 %v6986_v9, %v775_v12 }
  0xe1   :  { %v6078_v15 = vpop.f32.mrf.mxu0 }
  0xe2   :  { %9160 = vst [vmem:[#allocation2_spill] sm:$0xff] %v6991_v13  ;;  %v5783_v17 = vpack.c.bf16 %v6991_v13, %v6991_v13  ;;  %v6999_v18 = vmax.f32 %v776_v14, 0.0  ;;  %v787_v19 = vadd.f32 %v6078_v15, %v6986_v9 }
  0xe3   :  { %v778_v21 = vpop.f32.mrf.mxu0 }
  0xe4   :  { %9161 = vst [vmem:[#allocation3_spill] sm:$0xff] %v6999_v18  ;;  %v2795_v22 = vshrl.u32 %v5783_v17, 16  ;;  %v5781_v23 = vpack.c.bf16 %v6999_v18, %v6999_v18  ;;  %v7007_v24 = vmax.f32 %v787_v19, 0.0  ;;  %v779_v25 = vadd.f32 %v6986_v9, %v778_v21 }
  0xe5   :  { %v6081_v26 = vpop.f32.mrf.mxu0  ;;  %6176 = vmatmul.mubr.msk.bf16.gmra.mxu0 %vm509_vm2, %v6623_v16  ;;  %v2798_v34 = vshll.u32 %v5783_v17, 16 }
  0xe6   :  { %9162 = vst [vmem:[#allocation4_spill] sm:$0xff] %v7007_v24  ;;  %v2797_v27 = vrot.slane %v2795_v22, 7  ;;  %v2781_v28 = vshrl.u32 %v5781_v23, 16  ;;  %6179 = vmatprep.mubr.msk.bf16.mxu0 %vm509_vm2, %v6624_v20  ;;  %v5784_v30 = vpack.c.bf16 %v7007_v24, %v7007_v24  ;;  %v7016_v31 = vmax.f32 %v779_v25, 0.0  ;;  %v6627_v25 = vld [vmem:[%s9079_s0 + $0x1d8] sm:$0xff]  }
  0xe7   :  { %v800_v32 = vadd.f32 %v6081_v26, %v6986_v9  ;;  %v791_v33 = vpop.f32.mrf.mxu0  ;;  %v2784_v43 = vshll.u32 %v5781_v23, 16 }
  0xe8   :  { %9163 = vst [vmem:[#allocation5_spill] sm:$0xff] %v7016_v31  ;;  %v792_v35 = vadd.f32 %v6986_v9, %v791_v33  ;;  %v2783_v36 = vrot.slane %v2781_v28, 7  ;;  %v2802_v37 = vshrl.u32 %v5784_v30, 16  ;;  %v5782_v39 = vpack.c.bf16 %v7016_v31, %v7016_v31  ;;  %v6630_v33 = vld [vmem:[%s9079_s0 + $0x1e0] sm:$0xff]  }
  0xe9   :  { %v6082_v40 = vpop.f32.mrf.mxu0  ;;  %v2800_v42 = vor.u32 %v2798_v34, %v2797_v27  ;;  %v7027_v44 = vmax.f32 %v800_v32, 0.0  ;;  %v2805_v49 = vshll.u32 %v5784_v30, 16 }
  0xea   :  { %v7029_v45 = vmax.f32 %v792_v35, 0.0  ;;  %v2804_v48 = vrot.slane %v2802_v37, 7  ;;  %v2788_v50 = vshrl.u32 %v5782_v39, 16  ;;  %v803_v51 = vadd.f32 %v6082_v40, %v6986_v9 }
  0xeb   :  { %9164 = vst [vmem:[#allocation6_spill] sm:$0xff] %v7027_v44  ;;  %v794_v52 = vpop.f32.mrf.mxu0  ;;  %v5787_v53 = vpack.c.bf16 %v7027_v44, %v7027_v44  ;;  %v2786_v56 = vor.u32 %v2784_v43, %v2783_v36  ;;  %v3038_v0 = vsel %vm7035_vm5, 0, %v2800_v42  ;;  %v2791_v1 = vshll.u32 %v5782_v39, 16 }
  0xec   :  { %9165 = vst [vmem:[#allocation7_spill] sm:$0xff] %v7029_v45  ;;  %v5785_v54 = vpack.c.bf16 %v7029_v45, %v7029_v45  ;;  %v795_v55 = vadd.f32 %v6986_v9, %v794_v52  ;;  %v2807_v57 = vor.u32 %v2805_v49, %v2804_v48  ;;  %v2790_v58 = vrot.slane %v2788_v50, 7 }
  0xed   :  { %v7045_v59 = vmax.f32 %v803_v51, 0.0  ;;  %v6085_v60 = vpop.f32.mrf.mxu0  ;;  %6180 = vmatmul.mubr.msk.bf16.gmra.mxu0 %vm509_vm2, %v6625_v41  ;;  %v2823_v6 = vshrl.u32 %v5787_v53, 16  ;;  %v2826_v20 = vshll.u32 %v5787_v53, 16  ;;  %v3036_v26 = vsel %vm7035_vm5, 0, %v2786_v56 }
  0xee   :  { %6183 = vmatprep.mubr.msk.bf16.mxu0 %vm509_vm2, %v6626_v46  ;;  %v3039_v7 = vsel %vm7035_vm5, 0, %v2807_v57  ;;  %v2809_v10 = vshrl.u32 %v5785_v54, 16  ;;  %v2793_v16 = vor.u32 %v2791_v1, %v2790_v58  ;;  %v7059_v19 = vmax.f32 %v795_v55, 0.0 }
  0xef   :  { %9168 = vst [vmem:[#allocation8_spill] sm:$0xff] %v7045_v59  ;;  %v5788_v12 = vpack.c.bf16 %v7045_v59, %v7045_v59  ;;  %v807_v14 = vpop.f32.mrf.mxu0  ;;  %v7057_v15 = vcombine.low %v3038_v0, %v3039_v7  ;;  %v2825_v17 = vrot.slane %v2823_v6, 7  ;;  %v816_v22 = vadd.f32 %v6085_v60, %v6986_v9 }
  0xf0   :  { %9170 = vst [vmem:[#allocation10_spill] sm:$0xff] %v7059_v19  ;;  %v2812_v27 = vshll.u32 %v5785_v54, 16  ;;  %v5786_v30 = vpack.c.bf16 %v7059_v19, %v7059_v19  ;;  %v808_v32 = vadd.f32 %v6986_v9, %v807_v14  ;;  %v2811_v34 = vrot.slane %v2809_v10, 7 }
  0xf1   :  { %9169 = vst [vmem:[#allocation9_spill] sm:$0xff] %v7057_v15  ;;  %v2830_v21 = vshrl.u32 %v5788_v12, 16  ;;  %v6086_v23 = vpop.f32.mrf.mxu0  ;;  %v2833_v36 = vshll.u32 %v5788_v12, 16  ;;  %v2828_v40 = vor.u32 %v2826_v20, %v2825_v17  ;;  %v3037_v43 = vsel %vm7035_vm5, 0, %v2793_v16  ;;  %v6631_v16 = vld [vmem:[%s9079_s0 + $0x1e8] sm:$0xff]  }
  0xf2   :  { %v819_v37 = vadd.f32 %v6086_v23, %v6986_v9  ;;  %v2816_v41 = vshrl.u32 %v5786_v30, 16  ;;  %v1272_v48 = vmax.f32 %v816_v22, 0.0  ;;  %v7080_v51 = vcombine.low %v3036_v26, %v3037_v43 }
  0xf3   :  { %v2832_v35 = vrot.slane %v2830_v21, 7  ;;  %v810_v39 = vpop.f32.mrf.mxu0  ;;  %v2819_v53 = vshll.u32 %v5786_v30, 16  ;;  %v1270_v54 = vmax.f32 %v808_v32, 0.0  ;;  %v2814_v56 = vor.u32 %v2812_v27, %v2811_v34 }
  0xf4   :  { %v811_v42 = vadd.f32 %v6986_v9, %v810_v39  ;;  %v1273_v49 = vmax.f32 %v819_v37, 0.0  ;;  %9171 = vst [vmem:[#allocation11_spill] sm:$0xff] %v7080_v51  ;;  %v2818_v52 = vrot.slane %v2816_v41, 7  ;;  %v3042_v6 = vsel %vm7035_vm5, 0, %v2828_v40 }
  0xf5   :  { %v2835_v46 = vor.u32 %v2833_v36, %v2832_v35  ;;  %v6089_v50 = vpop.f32.mrf.mxu0  ;;  %6184 = vmatmul.mubr.msk.bf16.gmra.mxu0 %vm509_vm2, %v6627_v25  ;;  %v747_v7 = vadd.f32 %v6986_v9, %v6965_v2  ;;  %v9090_v23 = vmov 0   ;;  %v6632_v25 = vld [vmem:[%s9079_s0 + $0x1f0] sm:$0xff]   ;;  %v7110_v26 = vadd.f32 %v6951_v61, %v6986_v9 }
  0xf6   :  { %v1271_v55 = vmax.f32 %v811_v42, 0.0  ;;  %6187 = vmatprep.mubr.msk.bf16.mxu0 %vm509_vm2, %v6630_v33  ;;  %v7083_v57 = vpack.c.bf16 %v1273_v49, %v1272_v48  ;;  %v2821_v0 = vor.u32 %v2819_v53, %v2818_v52  ;;  %v832_v10 = vadd.f32 %v6089_v50, %v6986_v9 }
  0xf7   :  { %v823_v58 = vpop.f32.mrf.mxu0  ;;  %v3043_v60 = vsel %vm7035_vm5, 0, %v2835_v46  ;;  %v744_v27 = vadd.f32 %v6986_v9, %v6955_v62  ;;  %v3040_v32 = vsel %vm7035_vm5, 0, %v2814_v56  ;;  %v755_v61 = vadd.f32 %v6957_v63, %v6986_v9 }
  0xf8   :  { %9172 = vst [vmem:[#allocation12_spill] sm:$0xff] %v7083_v57  ;;  %v7087_v1 = vpack.c.bf16 %v1271_v55, %v1270_v54  ;;  %v824_v12 = vadd.f32 %v6986_v9, %v823_v58  ;;  %v7098_v17 = vcombine.low %v3042_v6, %v3043_v60  ;;  %v1528_v20 = vunpack.c.l.b16 %v7083_v57  ;;  %v6633_v6 = vld [vmem:[%s9079_s0 + $0x1f8] sm:$0xff]  }
  0xf9   :  { %v6090_v14 = vpop.f32.mrf.mxu0  ;;  %v3041_v33 = vsel %vm7035_vm5, 0, %v2821_v0  ;;  %v1255_v39 = vmax.f32 %v747_v7, 0.0  ;;  %v1276_v62 = vmax.f32 %v832_v10, 0.0  ;;  %v1256_v46 = vmax.f32 %v7110_v26, 0.0 }
  0xfa   :  { %9173 = vst [vmem:[#allocation13_spill] sm:$0xff] %v7087_v1  ;;  %9174 = vst [vmem:[#allocation14_spill] sm:$0xff] %v7098_v17  ;;  %v1527_v21 = vunpack.c.h.b16 %v7087_v1  ;;  %v835_v22 = vadd.f32 %v6090_v14, %v6986_v9  ;;  %v5450_v2 = vcombine.low %v9090_v23, %v7087_v1  ;;  %v7120_v37 = vcombine.low %v3040_v32, %v3041_v33 }
  0xfb   :  { %v826_v30 = vpop.f32.mrf.mxu0  ;;  %v1274_v41 = vmax.f32 %v824_v12, 0.0  ;;  %v1254_v48 = vmax.f32 %v744_v27, 0.0  ;;  %v768_v49 = vadd.f32 %v6967_v3, %v6986_v9  ;;  %v771_v52 = vadd.f32 %v6973_v5, %v6986_v9 }
  0xfc   :  { %v1277_v34 = vmax.f32 %v835_v22, 0.0  ;;  %v827_v35 = vadd.f32 %v6986_v9, %v826_v30  ;;  %6199 = vmatprep.mubr.msk.bf16.mxu1 %vm1969_vm6, %v5450_v2  ;;  %v1942_v36 = vpack.c.b16 %v1528_v20, %v1527_v21  ;;  %9175 = vst [vmem:[#allocation15_spill] sm:$0xff] %v7120_v37  ;;  %v1257_v56 = vmax.f32 %v755_v61, 0.0 }
  0xfd   :  { %v6093_v40 = vpop.f32.mrf.mxu0  ;;  %6188 = vmatmul.mubr.msk.bf16.gmra.mxu0 %vm509_vm2, %v6631_v16  ;;  %v1382_v58 = vpack.c.bf16 %v1255_v39, %v1254_v48  ;;  %v760_v60 = vadd.f32 %v6986_v9, %v6971_v4  ;;  %v763_v0 = vadd.f32 %v6986_v9, %v6981_v8  ;;  %v1260_v14 = vmax.f32 %v768_v49, 0.0 }
  0xfe   :  { %v1275_v42 = vmax.f32 %v827_v35, 0.0  ;;  %v848_v43 = vadd.f32 %v6093_v40, %v6986_v9  ;;  %6200 = vmatmul.mubr.msk.bf16.vlgmr.msra.gmra.mxu1 %vm1969_vm6, %v1942_v36  ;;  %6191 = vmatprep.mubr.msk.bf16.mxu0 %vm509_vm2, %v6632_v25  ;;  %v7131_v63 = vpack.c.bf16 %v1277_v34, %v1276_v62  ;;  %v1529_v16 = vunpack.c.h.b16 %v7083_v57 }
  0xff   :  { %v839_v50 = vpop.f32.mrf.mxu0  ;;  %v1261_v8 = vmax.f32 %v771_v52, 0.0  ;;  %v1259_v26 = vmax.f32 %v763_v0, 0.0  ;;  %v1258_v34 = vmax.f32 %v760_v60, 0.0 }
 0x100   :  { %9176 = vst [vmem:[#allocation16_spill] sm:$0xff] %v7131_v63  ;;  %v7135_v53 = vpack.c.bf16 %v1275_v42, %v1274_v41  ;;  %v1280_v54 = vmax.f32 %v848_v43, 0.0  ;;  %v840_v55 = vadd.f32 %v6986_v9, %v839_v50  ;;  %v1532_v20 = vunpack.c.l.b16 %v7131_v63 }
 0x101   :  { %v6094_v3 = vpop.f32.mrf.mxu0  ;;  %v1383_v43 = vpack.c.bf16 %v1257_v56, %v1256_v46  ;;  %v7157_v48 = vpack.c.bf16 %v1261_v8, %v1260_v14  ;;  %v1384_v52 = vpack.c.bf16 %v1259_v26, %v1258_v34 }
 0x102   :  { %9177 = vst [vmem:[#allocation17_spill] sm:$0xff] %v7135_v53  ;;  %v1530_v5 = vunpack.c.l.b16 %v7135_v53  ;;  %v1531_v7 = vunpack.c.h.b16 %v7135_v53  ;;  %v5755_v10 = vpack.c.bf16 %v1280_v54, %v1280_v54  ;;  %v1278_v12 = vmax.f32 %v840_v55, 0.0 }
 0x103   :  { %v851_v4 = vadd.f32 %v6094_v3, %v6986_v9  ;;  %v842_v21 = vpop.f32.mrf.mxu0 }
 0x104   :  { %v1688_v22 = vshrl.u32 %v5755_v10, 16  ;;  %v5753_v2 = vpack.c.bf16 %v1278_v12, %v1278_v12  ;;  %v843_v25 = vadd.f32 %v6986_v9, %v842_v21  ;;  %v1943_v32 = vpack.c.b16 %v1530_v5, %v1529_v16 }
 0x105   :  { %v1281_v27 = vmax.f32 %v851_v4, 0.0  ;;  %v6097_v30 = vpop.f32.mrf.mxu0  ;;  %6192 = vmatmul.mubr.msk.bf16.gmra.mxu0 %vm509_vm2, %v6633_v6  ;;  %v1944_v33 = vpack.c.b16 %v1532_v20, %v1531_v7  ;;  %v1691_v39 = vshll.u32 %v5755_v10, 16 }
 0x106   :  { %v1690_v35 = vrot.slane %v1688_v22, 7  ;;  %v1674_v36 = vshrl.u32 %v5753_v2, 16  ;;  %v1279_v61 = vmax.f32 %v843_v25, 0.0  ;;  %6343 = vmatprep.mubr.msk.bf16.mxu0 %vm1969_vm6, %v1382_v58  ;;  %v864_v41 = vadd.f32 %v6097_v30, %v6986_v9  ;;  %6203 = vmatprep.mubr.msk.bf16.mxu1 %vm1969_vm6, %v1943_v32 }
 0x107   :  { %v7153_v62 = vpack.c.bf16 %v1281_v27, %v1280_v54  ;;  %v5756_v40 = vpack.c.bf16 %v1281_v27, %v1281_v27  ;;  %v855_v42 = vpop.f32.mrf.mxu0  ;;  %6204 = vmatmul.mubr.msk.bf16.gmra.mxu1 %vm1969_vm6, %v1944_v33  ;;  %v1677_v58 = vshll.u32 %v5753_v2, 16 }
 0x108   :  { %v7159_v49 = vpack.c.bf16 %v1279_v61, %v1278_v12  ;;  %v5754_v50 = vpack.c.bf16 %v1279_v61, %v1279_v61  ;;  %v1693_v55 = vor.u32 %v1691_v39, %v1690_v35  ;;  %v1676_v0 = vrot.slane %v1674_v36, 7 }
 0x109   :  { %v1695_v60 = vshrl.u32 %v5756_v40, 16  ;;  %v6098_v54 = vpop.f32.mrf.mxu0  ;;  %v1536_v3 = vunpack.c.l.b16 %v7153_v62  ;;  %v1698_v46 = vshll.u32 %v5756_v40, 16  ;;  %v1284_v56 = vmax.f32 %v864_v41, 0.0 }
 0x10a   :  { %v1535_v6 = vunpack.c.h.b16 %v7159_v49  ;;  %v1681_v5 = vshrl.u32 %v5754_v50, 16  ;;  %v856_v10 = vadd.f32 %v6986_v9, %v855_v42  ;;  %v1537_v14 = vunpack.c.h.b16 %v7153_v62 }
 0x10b   :  { %v1697_v7 = vrot.slane %v1695_v60, 7  ;;  %v858_v12 = vpop.f32.mrf.mxu0  ;;  %v867_v20 = vadd.f32 %v6098_v54, %v6986_v9  ;;  %v7172_v21 = vsel %vm7035_vm5, 0, %v1693_v55  ;;  %v5759_v22 = vpack.c.bf16 %v1284_v56, %v1284_v56 }
 0x10c   :  { %v7166_v16 = vpack.c.b16 %v1536_v3, %v1535_v6  ;;  %v859_v4 = vadd.f32 %v6986_v9, %v858_v12  ;;  %v1282_v2 = vmax.f32 %v856_v10, 0.0  ;;  %v1679_v26 = vor.u32 %v1677_v58, %v1676_v0 }
 0x10d   :  { %v1700_v8 = vor.u32 %v1698_v46, %v1697_v7  ;;  %v6101_v25 = vpop.f32.mrf.mxu0  ;;  %6344 = vmatmul.mubr.msk.bf16.vlgmr.msra.gmra.mxu0 %vm1969_vm6, %v1383_v43  ;;  %v1683_v27 = vrot.slane %v1681_v5, 7  ;;  %v1285_v30 = vmax.f32 %v867_v20, 0.0  ;;  %v1684_v34 = vshll.u32 %v5754_v50, 16 }
 0x10e   :  { %9178 = vst [vmem:[#allocation18_spill] sm:$0xff] %v7166_v16  ;;  %v1283_v32 = vmax.f32 %v859_v4, 0.0  ;;  %6347 = vmatprep.mubr.msk.bf16.mxu0 %vm1969_vm6, %v1384_v52  ;;  %v1716_v35 = vshrl.u32 %v5759_v22, 16  ;;  %v5757_v36 = vpack.c.bf16 %v1282_v2, %v1282_v2  ;;  %v1719_v55 = vshll.u32 %v5759_v22, 16 }
 0x10f   :  { %v7178_v33 = vsel %vm7035_vm5, 0, %v1700_v8  ;;  %v871_v61 = vpop.f32.mrf.mxu0  ;;  %v7182_v40 = vpack.c.bf16 %v1285_v30, %v1284_v56  ;;  %v5813_v41 = vpack.c.bf16 %v1285_v30, %v1285_v30  ;;  %v1686_v54 = vor.u32 %v1684_v34, %v1683_v27 }
 0x110   :  { %v7184_v42 = vpack.c.bf16 %v1283_v32, %v1282_v2  ;;  %v1718_v43 = vrot.slane %v1716_v35, 7  ;;  %v1702_v58 = vshrl.u32 %v5757_v36, 16  ;;  %v5758_v52 = vpack.c.bf16 %v1283_v32, %v1283_v32 }
 0x111   :  { %v6102_v60 = vpop.f32.mrf.mxu0  ;;  %v3959_v0 = vshrl.u32 %v5813_v41, 16  ;;  %v880_v50 = vadd.f32 %v6101_v25, %v6986_v9  ;;  %v7189_v3 = vsel %vm7035_vm5, 0, %v1679_v26  ;;  %v1705_v7 = vshll.u32 %v5757_v36, 16 }
 0x112   :  { %v1721_v6 = vor.u32 %v1719_v55, %v1718_v43  ;;  %v1704_v5 = vrot.slane %v1702_v58, 7  ;;  %v1709_v46 = vshrl.u32 %v5758_v52, 16  ;;  %v1540_v10 = vunpack.c.l.b16 %v7182_v40 }
 0x113   :  { %v874_v56 = vpop.f32.mrf.mxu0  ;;  %v3961_v12 = vrot.slane %v3959_v0, 7  ;;  %v3962_v20 = vshll.u32 %v5813_v41, 16  ;;  %v872_v4 = vadd.f32 %v6986_v9, %v871_v61  ;;  %v1712_v2 = vshll.u32 %v5758_v52, 16 }
 0x114   :  { %v1707_v8 = vor.u32 %v1705_v7, %v1704_v5  ;;  %v1711_v22 = vrot.slane %v1709_v46, 7  ;;  %v883_v25 = vadd.f32 %v6102_v60, %v6986_v9  ;;  %v1538_v30 = vunpack.c.l.b16 %v7184_v42 }
 0x115   :  { %v6105_v27 = vpop.f32.mrf.mxu0  ;;  %6348 = vmatmul.mubr.msk.bf16.gmra.mxu0 %vm1969_vm6, %v7157_v48  ;;  %v3964_v26 = vor.u32 %v3962_v20, %v3961_v12  ;;  %v1288_v32 = vmax.f32 %v880_v50, 0.0  ;;  %v875_v34 = vadd.f32 %v6986_v9, %v874_v56  ;;  %v7200_v35 = vsel %vm7035_vm5, 0, %v1721_v6 }
 0x116   :  { %v1714_v36 = vor.u32 %v1712_v2, %v1711_v22  ;;  %v1289_v61 = vmax.f32 %v883_v25, 0.0  ;;  %v7204_v43 = vsel %vm7035_vm5, 0, %v1686_v54  ;;  %v1286_v55 = vmax.f32 %v872_v4, 0.0  ;;  %v6636_v54 = vld [vmem:[%s9080_s3 + $0x8] sm:$0xff]  }
 0x117   :  { %v887_v41 = vpop.f32.mrf.mxu0  ;;  %v3990_v48 = vsel %vm7035_vm5, 0, %v3964_v26  ;;  %v1287_v58 = vmax.f32 %v875_v34, 0.0  ;;  %v7210_v52 = vsel %vm7035_vm5, 0, %v1707_v8  ;;  %v1539_v0 = vunpack.c.h.b16 %v7184_v42  ;;  %6231 = vmatprep.subr.bf16.mxu1 %v6636_v54 }
 0x118   :  { %v7213_v60 = vcombine.low %v7200_v35, %v3990_v48  ;;  %v1399_v7 = vpack.c.bf16 %v1289_v61, %v1288_v32  ;;  %v888_v56 = vadd.f32 %v6986_v9, %v887_v41  ;;  %v7226_v12 = vsel %vm7035_vm5, 0, %v1714_v36  ;;  %6232 = vmatpush3.bf16.msra.mxu1 %v6636_v54 }
 0x119   :  { %v6106_v50 = vpop.f32.mrf.mxu0  ;;  %v1398_v46 = vpack.c.bf16 %v1287_v58, %v1286_v55  ;;  %v7239_v26 = vpack.c.b16 %v1538_v30, %v1537_v14  ;;  %v896_v32 = vadd.f32 %v6105_v27, %v6986_v9  ;;  %v7243_v36 = vpack.c.b16 %v1540_v10, %v1539_v0 }
 0x11a   :  { %v899_v20 = vadd.f32 %v6106_v50, %v6986_v9  ;;  %v1290_v61 = vmax.f32 %v888_v56, 0.0 }
 0x11b   :  { %v890_v4 = vpop.f32.mrf.mxu0  ;;  %6351 = vmatprep.mubr.msk.bf16.mxu0 %vm1969_vm6, %v1398_v46  ;;  %9179 = vst [vmem:[#allocation19_spill] sm:$0xff] %v7239_v26  ;;  %9180 = vst [vmem:[#allocation20_spill] sm:$0xff] %v7243_v36  ;;  %v1292_v54 = vmax.f32 %v896_v32, 0.0 }
 0x11c   :  { %v891_v25 = vadd.f32 %v6986_v9, %v890_v4  ;;  %v1293_v55 = vmax.f32 %v899_v20, 0.0 }
 0x11d   :  { %v6109_v34 = vpop.f32.mrf.mxu0  ;;  %6352 = vmatmul.mubr.msk.bf16.gmra.mxu0 %vm1969_vm6, %v1399_v7 }
 0x11e   :  { %v1291_v41 = vmax.f32 %v891_v25, 0.0  ;;  %v912_v48 = vadd.f32 %v6109_v34, %v6986_v9  ;;  %v1401_v30 = vpack.c.bf16 %v1293_v55, %v1292_v54  ;;  %v6637_v25 = vld [vmem:[%s9080_s3 + $0x68] sm:$0xff]  }
 0x11f   :  { %v903_v58 = vpop.f32.mrf.mxu0  ;;  %6411 = vmatprep.subr.bf16.mxu0 %v6637_v25 }
 0x120   :  { %v1400_v50 = vpack.c.bf16 %v1291_v41, %v1290_v61  ;;  %v7246_v46 = vmax.f32 %v912_v48, 0.0  ;;  %v904_v14 = vadd.f32 %v6986_v9, %v903_v58  ;;  %6412 = vmatpush3.bf16.msra.mxu0 %v6637_v25 }
 0x121   :  { %v6110_v4 = vpop.f32.mrf.mxu0 }
 0x122   :  { %9181 = vst [vmem:[#allocation21_spill] sm:$0xff] %v7246_v46  ;;  %v915_v27 = vadd.f32 %v6110_v4, %v6986_v9  ;;  %6355 = vmatprep.mubr.msk.bf16.mxu0 %vm1969_vm6, %v1400_v50  ;;  %v5791_v10 = vpack.c.bf16 %v7246_v46, %v7246_v46  ;;  %v7260_v32 = vmax.f32 %v904_v14, 0.0 }
 0x123   :  { %v906_v0 = vpop.f32.mrf.mxu0 }
 0x124   :  { %v7253_v7 = vmax.f32 %v915_v27, 0.0  ;;  %v907_v56 = vadd.f32 %v6986_v9, %v906_v0  ;;  %9183 = vst [vmem:[#allocation23_spill] sm:$0xff] %v7260_v32  ;;  %v2851_v61 = vshrl.u32 %v5791_v10, 16  ;;  %v2854_v54 = vshll.u32 %v5791_v10, 16 }
 0x125   :  { %v6113_v20 = vpop.f32.mrf.mxu0  ;;  %6356 = vmatmul.mubr.msk.bf16.gmra.mxu0 %vm1969_vm6, %v1401_v30 }
 0x126   :  { %9182 = vst [vmem:[#allocation22_spill] sm:$0xff] %v7253_v7  ;;  %v5792_v41 = vpack.c.bf16 %v7253_v7, %v7253_v7  ;;  %v7266_v48 = vmax.f32 %v907_v56, 0.0  ;;  %v928_v55 = vadd.f32 %v6113_v20, %v6986_v9  ;;  %v2853_v30 = vrot.slane %v2851_v61, 7 }
 0x127   :  { %v919_v58 = vpop.f32.mrf.mxu0 }
 0x128   :  { %9184 = vst [vmem:[#allocation24_spill] sm:$0xff] %v7266_v48  ;;  %v2858_v50 = vshrl.u32 %v5792_v41, 16  ;;  %v7271_v14 = vmax.f32 %v928_v55, 0.0  ;;  %v920_v0 = vadd.f32 %v6986_v9, %v919_v58  ;;  %v6638_v55 = vld [vmem:[%s9080_s3 + $0x60] sm:$0xff]   ;;  %v2861_v29 = vshll.u32 %v5792_v41, 16 }
 0x129   :  { %v6114_v4 = vpop.f32.mrf.mxu0  ;;  %6413 = vmatprep.subr.bf16.mxu0 %v6638_v55 }
 0x12a   :  { %9185 = vst [vmem:[#allocation25_spill] sm:$0xff] %v7271_v14  ;;  %v931_v27 = vadd.f32 %v6114_v4, %v6986_v9  ;;  %v2860_v56 = vrot.slane %v2858_v50, 7  ;;  %v5795_v20 = vpack.c.bf16 %v7271_v14, %v7271_v14  ;;  %v7283_v61 = vmax.f32 %v920_v0, 0.0  ;;  %6414 = vmatpush3.bf16.msra.mxu0 %v6638_v55 }
 0x12b   :  { %v922_v34 = vpop.f32.mrf.mxu0 }
 0x12c   :  { %v7277_v11 = vmax.f32 %v931_v27, 0.0  ;;  %v923_v25 = vadd.f32 %v6986_v9, %v922_v34  ;;  %v2879_v4 = vshrl.u32 %v5795_v20, 16  ;;  %9187 = vst [vmem:[#allocation27_spill] sm:$0xff] %v7283_v61  ;;  %v2856_v34 = vor.u32 %v2854_v54, %v2853_v30 }
 0x12d   :  { %v6117_v28 = vpop.f32.mrf.mxu0  ;;  %v2863_v2 = vor.u32 %v2861_v29, %v2860_v56  ;;  %v2882_v6 = vshll.u32 %v5795_v20, 16 }
 0x12e   :  { %9186 = vst [vmem:[#allocation26_spill] sm:$0xff] %v7277_v11  ;;  %v5796_v50 = vpack.c.bf16 %v7277_v11, %v7277_v11  ;;  %v7289_v27 = vmax.f32 %v923_v25, 0.0  ;;  %v2881_v22 = vrot.slane %v2879_v4, 7  ;;  %v944_v0 = vadd.f32 %v6117_v28, %v6986_v9 }
 0x12f   :  { %v935_v38 = vpop.f32.mrf.mxu0  ;;  %v3047_v54 = vsel %vm7035_vm5, 0, %v2863_v2  ;;  %v3046_v28 = vsel %vm7035_vm5, 0, %v2856_v34 }
 0x130   :  { %9188 = vst [vmem:[#allocation28_spill] sm:$0xff] %v7289_v27  ;;  %v2886_v10 = vshrl.u32 %v5796_v50, 16  ;;  %v936_v58 = vadd.f32 %v6986_v9, %v935_v38  ;;  %v2884_v39 = vor.u32 %v2882_v6, %v2881_v22  ;;  %v2889_v25 = vshll.u32 %v5796_v50, 16 }
 0x131   :  { %v6118_v8 = vpop.f32.mrf.mxu0  ;;  %v1304_v56 = vmax.f32 %v944_v0, 0.0  ;;  %v7301_v6 = vcombine.low %v3046_v28, %v3047_v54 }
 0x132   :  { %v2888_v5 = vrot.slane %v2886_v10, 7  ;;  %v947_v23 = vadd.f32 %v6118_v8, %v6986_v9  ;;  %v1302_v4 = vmax.f32 %v936_v58, 0.0 }
 0x133   :  { %v938_v63 = vpop.f32.mrf.mxu0  ;;  %9189 = vst [vmem:[#allocation29_spill] sm:$0xff] %v7301_v6 }
 0x134   :  { %v939_v29 = vadd.f32 %v6986_v9, %v938_v63  ;;  %v2891_v30 = vor.u32 %v2889_v25, %v2888_v5  ;;  %v1305_v20 = vmax.f32 %v947_v23, 0.0  ;;  %v3050_v63 = vsel %vm7035_vm5, 0, %v2884_v39  ;;  %v6639_v23 = vld [vmem:[%s9080_s3] sm:$0xff]  }
 0x135   :  { %v6121_v55 = vpop.f32.mrf.mxu0  ;;  %6233 = vmatprep.subr.bf16.mxu1 %v6639_v23 }
 0x136   :  { %v1303_v38 = vmax.f32 %v939_v29, 0.0  ;;  %v7303_v22 = vpack.c.bf16 %v1305_v20, %v1304_v56  ;;  %v3051_v2 = vsel %vm7035_vm5, 0, %v2891_v30  ;;  %v960_v58 = vadd.f32 %v6121_v55, %v6986_v9  ;;  %6234 = vmatpush3.bf16.msra.mxu1 %v6639_v23 }
 0x137   :  { %v951_v8 = vpop.f32.mrf.mxu0  ;;  %v7314_v50 = vcombine.low %v3050_v63, %v3051_v2  ;;  %v9193_v29 = vmov 0  }
 0x138   :  { %9190 = vst [vmem:[#allocation30_spill] sm:$0xff] %v7303_v22  ;;  %v7309_v5 = vpack.c.bf16 %v1303_v38, %v1302_v4  ;;  %v952_v34 = vadd.f32 %v6986_v9, %v951_v8  ;;  %v1560_v0 = vunpack.c.l.b16 %v7303_v22  ;;  %v1308_v28 = vmax.f32 %v960_v58, 0.0 }
 0x139   :  { %9192 = vst [vmem:[#allocation32_spill] sm:$0xff] %v7314_v50  ;;  %v6122_v10 = vpop.f32.mrf.mxu0 }
 0x13a   :  { %9191 = vst [vmem:[#allocation31_spill] sm:$0xff] %v7309_v5  ;;  %v1559_v39 = vunpack.c.h.b16 %v7309_v5  ;;  %v963_v25 = vadd.f32 %v6122_v10, %v6986_v9  ;;  %v5451_v54 = vcombine.low %v9193_v29, %v7309_v5  ;;  %v1306_v38 = vmax.f32 %v952_v34, 0.0 }
 0x13b   :  { %v954_v30 = vpop.f32.mrf.mxu0  ;;  %v1561_v34 = vunpack.c.h.b16 %v7303_v22 }
 0x13c   :  { %v1309_v56 = vmax.f32 %v963_v25, 0.0  ;;  %v955_v20 = vadd.f32 %v6986_v9, %v954_v30  ;;  %6207 = vmatprep.mubr.msk.bf16.mxu1 %vm1969_vm6, %v5451_v54  ;;  %v1946_v55 = vpack.c.b16 %v1560_v0, %v1559_v39 }
 0x13d   :  { %v6125_v4 = vpop.f32.mrf.mxu0 }
 0x13e   :  { %v1307_v8 = vmax.f32 %v955_v20, 0.0  ;;  %v976_v63 = vadd.f32 %v6125_v4, %v6986_v9  ;;  %6208 = vmatmul.mubr.msk.bf16.gmra.mxu1 %vm1969_vm6, %v1946_v55  ;;  %v7327_v2 = vpack.c.bf16 %v1309_v56, %v1308_v28 }
 0x13f   :  { %v967_v10 = vpop.f32.mrf.mxu0 }
 0x140   :  { %9194 = vst [vmem:[#allocation33_spill] sm:$0xff] %v7327_v2  ;;  %v7329_v41 = vpack.c.bf16 %v1307_v8, %v1306_v38  ;;  %v1312_v23 = vmax.f32 %v976_v63, 0.0  ;;  %v968_v58 = vadd.f32 %v6986_v9, %v967_v10  ;;  %v1564_v39 = vunpack.c.l.b16 %v7327_v2 }
 0x141   :  { %v6126_v25 = vpop.f32.mrf.mxu0 }
 0x142   :  { %9195 = vst [vmem:[#allocation34_spill] sm:$0xff] %v7329_v41  ;;  %v1562_v30 = vunpack.c.l.b16 %v7329_v41  ;;  %v1563_v54 = vunpack.c.h.b16 %v7329_v41  ;;  %v5762_v0 = vpack.c.bf16 %v1312_v23, %v1312_v23  ;;  %v979_v20 = vadd.f32 %v6126_v25, %v6986_v9 }
 0x143   :  { %v970_v56 = vpop.f32.mrf.mxu0  ;;  %v7338_v53 = vmax.f32 %v968_v58, 0.0 }
 0x144   :  { %v1737_v55 = vshrl.u32 %v5762_v0, 16  ;;  %v971_v28 = vadd.f32 %v6986_v9, %v970_v56  ;;  %v1313_v4 = vmax.f32 %v979_v20, 0.0  ;;  %v1947_v8 = vpack.c.b16 %v1562_v30, %v1561_v34 }
 0x145   :  { %v6129_v38 = vpop.f32.mrf.mxu0  ;;  %v1948_v63 = vpack.c.b16 %v1564_v39, %v1563_v54  ;;  %v1740_v57 = vshll.u32 %v5762_v0, 16 }
 0x146   :  { %v1739_v5 = vrot.slane %v1737_v55, 7  ;;  %v7340_v41 = vmax.f32 %v971_v28, 0.0  ;;  %v7342_v10 = vpack.c.bf16 %v1313_v4, %v1312_v23  ;;  %v5763_v22 = vpack.c.bf16 %v1313_v4, %v1313_v4  ;;  %6211 = vmatprep.mubr.msk.bf16.mxu1 %vm1969_vm6, %v1947_v8 }
 0x147   :  { %v992_v2 = vadd.f32 %v6129_v38, %v6986_v9  ;;  %v983_v25 = vpop.f32.mrf.mxu0  ;;  %6212 = vmatmul.mubr.msk.bf16.gmra.mxu1 %vm1969_vm6, %v1948_v63 }
 0x148   :  { %v7348_v20 = vpack.c.bf16 %v7340_v41, %v7338_v53  ;;  %v1744_v30 = vshrl.u32 %v5763_v22, 16  ;;  %v1742_v58 = vor.u32 %v1740_v57, %v1739_v5  ;;  %v1747_v39 = vshll.u32 %v5763_v22, 16 }
 0x149   :  { %v6130_v54 = vpop.f32.mrf.mxu0  ;;  %v1316_v23 = vmax.f32 %v992_v2, 0.0  ;;  %v984_v56 = vadd.f32 %v6986_v9, %v983_v25 }
 0x14a   :  { %v1746_v34 = vrot.slane %v1744_v30, 7  ;;  %v995_v28 = vadd.f32 %v6130_v54, %v6986_v9  ;;  %v7358_v57 = vsel %vm7035_vm5, 0, %v1742_v58 }
 0x14b   :  { %v986_v55 = vpop.f32.mrf.mxu0  ;;  %v5766_v38 = vpack.c.bf16 %v1316_v23, %v1316_v23  ;;  %v1314_v8 = vmax.f32 %v984_v56, 0.0 }
 0x14c   :  { %v987_v4 = vadd.f32 %v6986_v9, %v986_v55  ;;  %v1749_v0 = vor.u32 %v1747_v39, %v1746_v34  ;;  %v1317_v14 = vmax.f32 %v995_v28, 0.0 }
 0x14d   :  { %v6133_v1 = vpop.f32.mrf.mxu0  ;;  %v1765_v5 = vshrl.u32 %v5766_v38, 16  ;;  %v5764_v2 = vpack.c.bf16 %v1314_v8, %v1314_v8  ;;  %v1768_v56 = vshll.u32 %v5766_v38, 16 }
 0x14e   :  { %v7354_v11 = vmax.f32 %v987_v4, 0.0  ;;  %v7362_v22 = vsel %vm7035_vm5, 0, %v1749_v0  ;;  %v7366_v30 = vpack.c.bf16 %v1317_v14, %v1316_v23  ;;  %v5814_v54 = vpack.c.bf16 %v1317_v14, %v1317_v14 }
 0x14f   :  { %v999_v63 = vpop.f32.mrf.mxu0  ;;  %v1767_v39 = vrot.slane %v1765_v5, 7  ;;  %v1751_v58 = vshrl.u32 %v5764_v2, 16  ;;  %v1754_v46 = vshll.u32 %v5764_v2, 16  ;;  %v1008_v23 = vadd.f32 %v6133_v1, %v6986_v9 }
 0x150   :  { %9196 = vst [vmem:[#allocation35_spill] sm:$0xff] %v7366_v30  ;;  %v7369_v34 = vpack.c.bf16 %v7354_v11, %v1314_v8  ;;  %v3966_v28 = vshrl.u32 %v5814_v54, 16  ;;  %v3969_v59 = vshll.u32 %v5814_v54, 16  ;;  %v1000_v45 = vadd.f32 %v6986_v9, %v999_v63 }
 0x151   :  { %v6134_v55 = vpop.f32.mrf.mxu0  ;;  %v1770_v4 = vor.u32 %v1768_v56, %v1767_v39  ;;  %v1753_v0 = vrot.slane %v1751_v58, 7  ;;  %v1567_v5 = vunpack.c.h.b16 %v7348_v20  ;;  %v1320_v58 = vmax.f32 %v1008_v23, 0.0 }
 0x152   :  { %v3968_v44 = vrot.slane %v3966_v28, 7  ;;  %v1011_v14 = vadd.f32 %v6134_v55, %v6986_v9  ;;  %v1570_v2 = vunpack.c.l.b16 %v7369_v34  ;;  %v1318_v1 = vmax.f32 %v1000_v45, 0.0  ;;  %v7394_v28 = vld [vmem:[%s9080_s3 + $0x28] sm:$0xff]  }
 0x153   :  { %v1002_v7 = vpop.f32.mrf.mxu0  ;;  %v1756_v25 = vor.u32 %v1754_v46, %v1753_v0  ;;  %v7378_v39 = vsel %vm7035_vm5, 0, %v1770_v4  ;;  %v1569_v45 = vunpack.c.h.b16 %v7342_v10  ;;  %v1572_v0 = vunpack.c.l.b16 %v7366_v30  ;;  %6267 = vmatprep.subr.bf16.mxu1 %v7394_v28 }
 0x154   :  { %v3971_v19 = vor.u32 %v3969_v59, %v3968_v44  ;;  %v1003_v38 = vadd.f32 %v6986_v9, %v1002_v7  ;;  %v1321_v54 = vmax.f32 %v1011_v14, 0.0  ;;  %v1571_v7 = vunpack.c.h.b16 %v7369_v34 }
 0x155   :  { %v6137_v8 = vpop.f32.mrf.mxu0  ;;  %v7385_v44 = vsel %vm7035_vm5, 0, %v1756_v25 }
 0x156   :  { %v3991_v46 = vsel %vm7035_vm5, 0, %v3971_v19  ;;  %v1319_v63 = vmax.f32 %v1003_v38, 0.0  ;;  %v1568_v19 = vunpack.c.l.b16 %v7342_v10  ;;  %v1415_v14 = vpack.c.bf16 %v1321_v54, %v1320_v58 }
 0x157   :  { %v1015_v56 = vpop.f32.mrf.mxu0  ;;  %v7388_v59 = vcombine.low %v7378_v39, %v3991_v46 }
 0x158   :  { %v1414_v4 = vpack.c.bf16 %v1319_v63, %v1318_v1  ;;  %v1016_v25 = vadd.f32 %v6986_v9, %v1015_v56  ;;  %v7406_v24 = vpack.c.b16 %v1568_v19, %v1567_v5  ;;  %v7408_v1 = vpack.c.b16 %v1570_v2, %v1569_v45 }
 0x159   :  { %v6138_v55 = vpop.f32.mrf.mxu0  ;;  %v1024_v56 = vadd.f32 %v6137_v8, %v6986_v9  ;;  %v7412_v63 = vpack.c.b16 %v1572_v0, %v1571_v7  ;;  %v7423_v7 = vld [vmem:[%s9081_s2] ss:$0 sm:$0xff] }
 0x15a   :  { %v1027_v38 = vadd.f32 %v6138_v55, %v6986_v9  ;;  %6359 = vmatprep.mubr.msk.bf16.mxu0 %vm1969_vm6, %v1414_v4  ;;  %9197 = vst [vmem:[#allocation36_spill] sm:$0xff] %v7406_v24  ;;  %9198 = vst [vmem:[#allocation37_spill] sm:$0xff] %v7408_v1  ;;  %v1322_v58 = vmax.f32 %v1016_v25, 0.0 }
 0x15b   :  { %v1018_v46 = vpop.f32.mrf.mxu0  ;;  %6360 = vmatmul.mubr.msk.bf16.gmra.mxu0 %vm1969_vm6, %v1415_v14  ;;  %9199 = vst [vmem:[#allocation38_spill] sm:$0xff] %v7412_v63  ;;  %v1324_v5 = vmax.f32 %v1024_v56, 0.0 }
 0x15c   :  { %v1019_v13 = vadd.f32 %v6986_v9, %v1018_v46  ;;  %v1325_v23 = vmax.f32 %v1027_v38, 0.0 }
 0x15d   :  { %v6141_v54 = vpop.f32.mrf.mxu0 }
 0x15e   :  { %v1323_v55 = vmax.f32 %v1019_v13, 0.0  ;;  %v1040_v18 = vadd.f32 %v6141_v54, %v6986_v9  ;;  %v1417_v45 = vpack.c.bf16 %v1325_v23, %v1324_v5 }
 0x15f   :  { %v1031_v31 = vpop.f32.mrf.mxu0 }
 0x160   :  { %v1416_v4 = vpack.c.bf16 %v1323_v55, %v1322_v58  ;;  %v7415_v50 = vmax.f32 %v1040_v18, 0.0  ;;  %v1032_v8 = vadd.f32 %v6986_v9, %v1031_v31  ;;  %v7434_v9 = vld [vmem:[%s9080_s3 + $0x88] sm:$0xff]  }
 0x161   :  { %v6142_v19 = vpop.f32.mrf.mxu0  ;;  %6483 = vmatprep.subr.bf16.mxu0 %v7434_v9 }
 0x162   :  { %9200 = vst [vmem:[#allocation39_spill] sm:$0xff] %v7415_v50  ;;  %v5799_v2 = vpack.c.bf16 %v7415_v50, %v7415_v50  ;;  %v1043_v13 = vadd.f32 %v7423_v7, %v6142_v19  ;;  %6363 = vmatprep.mubr.msk.bf16.mxu0 %vm1969_vm6, %v1416_v4  ;;  %v7436_v31 = vmax.f32 %v1032_v8, 0.0 }
 0x163   :  { %v1034_v25 = vpop.f32.mrf.mxu0  ;;  %6364 = vmatmul.mubr.msk.bf16.gmra.mxu0 %vm1969_vm6, %v1417_v45 }
 0x164   :  { %v2907_v18 = vshrl.u32 %v5799_v2, 16  ;;  %v7427_v0 = vmax.f32 %v1043_v13, 0.0  ;;  %v1035_v14 = vadd.f32 %v7423_v7, %v1034_v25  ;;  %9202 = vst [vmem:[#allocation41_spill] sm:$0xff] %v7436_v31  ;;  %v2910_v4 = vshll.u32 %v5799_v2, 16 }
 0x165   :  { %v6145_v38 = vpop.f32.mrf.mxu0 }
 0x166   :  { %9201 = vst [vmem:[#allocation40_spill] sm:$0xff] %v7427_v0  ;;  %v2909_v23 = vrot.slane %v2907_v18, 7  ;;  %v5800_v56 = vpack.c.bf16 %v7427_v0, %v7427_v0  ;;  %v7442_v54 = vmax.f32 %v1035_v14, 0.0  ;;  %v1056_v58 = vadd.f32 %v7423_v7, %v6145_v38 }
 0x167   :  { %v1047_v55 = vpop.f32.mrf.mxu0 }
 0x168   :  { %9203 = vst [vmem:[#allocation42_spill] sm:$0xff] %v7442_v54  ;;  %v2914_v5 = vshrl.u32 %v5800_v56, 16  ;;  %v7448_v13 = vmax.f32 %v1056_v58, 0.0  ;;  %v2912_v45 = vor.u32 %v2910_v4, %v2909_v23  ;;  %v2917_v18 = vshll.u32 %v5800_v56, 16 }
 0x169   :  { %v6146_v8 = vpop.f32.mrf.mxu0  ;;  %v1048_v50 = vadd.f32 %v7423_v7, %v1047_v55 }
 0x16a   :  { %9204 = vst [vmem:[#allocation43_spill] sm:$0xff] %v7448_v13  ;;  %v2916_v25 = vrot.slane %v2914_v5, 7  ;;  %v1059_v46 = vadd.f32 %v7423_v7, %v6146_v8  ;;  %v5803_v38 = vpack.c.bf16 %v7448_v13, %v7448_v13  ;;  %v3054_v23 = vsel %vm7035_vm5, 0, %v2912_v45 }
 0x16b   :  { %v1050_v14 = vpop.f32.mrf.mxu0 }
 0x16c   :  { %v1051_v2 = vadd.f32 %v7423_v7, %v1050_v14  ;;  %v2919_v0 = vor.u32 %v2917_v18, %v2916_v25  ;;  %v7455_v6 = vmax.f32 %v1059_v46, 0.0  ;;  %v2935_v17 = vshrl.u32 %v5803_v38, 16 }
 0x16d   :  { %v6149_v19 = vpop.f32.mrf.mxu0  ;;  %v7467_v46 = vmax.f32 %v1048_v50, 0.0  ;;  %v2938_v18 = vshll.u32 %v5803_v38, 16 }
 0x16e   :  { %9205 = vst [vmem:[#allocation44_spill] sm:$0xff] %v7455_v6  ;;  %v3055_v56 = vsel %vm7035_vm5, 0, %v2919_v0  ;;  %v5804_v4 = vpack.c.bf16 %v7455_v6, %v7455_v6  ;;  %v2937_v8 = vrot.slane %v2935_v17, 7  ;;  %v7469_v25 = vmax.f32 %v1051_v2, 0.0 }
 0x16f   :  { %v1063_v55 = vpop.f32.mrf.mxu0  ;;  %v7465_v5 = vcombine.low %v3054_v23, %v3055_v56  ;;  %9207 = vst [vmem:[#allocation46_spill] sm:$0xff] %v7467_v46  ;;  %v1072_v45 = vadd.f32 %v7423_v7, %v6149_v19 }
 0x170   :  { %9208 = vst [vmem:[#allocation47_spill] sm:$0xff] %v7469_v25  ;;  %v2942_v14 = vshrl.u32 %v5804_v4, 16  ;;  %v1064_v58 = vadd.f32 %v7423_v7, %v1063_v55  ;;  %v2940_v13 = vor.u32 %v2938_v18, %v2937_v8  ;;  %v2945_v54 = vshll.u32 %v5804_v4, 16 }
 0x171   :  { %9206 = vst [vmem:[#allocation45_spill] sm:$0xff] %v7465_v5  ;;  %v6150_v31 = vpop.f32.mrf.mxu0  ;;  %v1336_v56 = vmax.f32 %v1072_v45, 0.0 }
 0x172   :  { %v2944_v6 = vrot.slane %v2942_v14, 7  ;;  %v1075_v23 = vadd.f32 %v7423_v7, %v6150_v31  ;;  %v1334_v37 = vmax.f32 %v1064_v58, 0.0  ;;  %v3058_v15 = vsel %vm7035_vm5, 0, %v2940_v13 }
 0x173   :  { %v1066_v17 = vpop.f32.mrf.mxu0 }
 0x174   :  { %v1067_v50 = vadd.f32 %v7423_v7, %v1066_v17  ;;  %v2947_v2 = vor.u32 %v2945_v54, %v2944_v6  ;;  %v1337_v38 = vmax.f32 %v1075_v23, 0.0 }
 0x175   :  { %v6153_v5 = vpop.f32.mrf.mxu0 }
 0x176   :  { %v1335_v19 = vmax.f32 %v1067_v50, 0.0  ;;  %v3059_v55 = vsel %vm7035_vm5, 0, %v2947_v2  ;;  %v7481_v8 = vpack.c.bf16 %v1337_v38, %v1336_v56  ;;  %v1088_v54 = vadd.f32 %v7423_v7, %v6153_v5 }
 0x177   :  { %v1079_v4 = vpop.f32.mrf.mxu0  ;;  %v7483_v18 = vcombine.low %v3058_v15, %v3059_v55 }
 0x178   :  { %9209 = vst [vmem:[#allocation48_spill] sm:$0xff] %v7481_v8  ;;  %v7485_v31 = vpack.c.bf16 %v1335_v19, %v1334_v37  ;;  %v1592_v6 = vunpack.c.l.b16 %v7481_v8  ;;  %v1080_v45 = vadd.f32 %v7423_v7, %v1079_v4  ;;  %v1340_v2 = vmax.f32 %v1088_v54, 0.0 }
 0x179   :  { %9210 = vst [vmem:[#allocation49_spill] sm:$0xff] %v7483_v18  ;;  %v6154_v14 = vpop.f32.mrf.mxu0  ;;  %v1593_v54 = vunpack.c.h.b16 %v7481_v8 }
 0x17a   :  { %9211 = vst [vmem:[#allocation50_spill] sm:$0xff] %v7485_v31  ;;  %v1591_v58 = vunpack.c.h.b16 %v7485_v31  ;;  %v1091_v13 = vadd.f32 %v7423_v7, %v6154_v14  ;;  %v5452_v23 = vcombine.low %v9193_v29, %v7485_v31  ;;  %v1338_v5 = vmax.f32 %v1080_v45, 0.0 }
 0x17b   :  { %v1082_v17 = vpop.f32.mrf.mxu0 }
 0x17c   :  { %v1341_v50 = vmax.f32 %v1091_v13, 0.0  ;;  %v1083_v15 = vadd.f32 %v7423_v7, %v1082_v17  ;;  %6215 = vmatprep.mubr.msk.bf16.mxu1 %vm1969_vm6, %v5452_v23  ;;  %v1950_v37 = vpack.c.b16 %v1592_v6, %v1591_v58 }
 0x17d   :  { %v6157_v56 = vpop.f32.mrf.mxu0 }
 0x17e   :  { %v1339_v38 = vmax.f32 %v1083_v15, 0.0  ;;  %6216 = vmatmul.mubr.msk.bf16.gmra.mxu1 %vm1969_vm6, %v1950_v37  ;;  %v7497_v19 = vpack.c.bf16 %v1341_v50, %v1340_v2  ;;  %v1104_v14 = vadd.f32 %v7423_v7, %v6157_v56 }
 0x17f   :  { %v1095_v55 = vpop.f32.mrf.mxu0 }
 0x180   :  { %9212 = vst [vmem:[#allocation51_spill] sm:$0xff] %v7497_v19  ;;  %v7499_v4 = vpack.c.bf16 %v1339_v38, %v1338_v5  ;;  %v1096_v6 = vadd.f32 %v7423_v7, %v1095_v55  ;;  %v1596_v58 = vunpack.c.l.b16 %v7497_v19  ;;  %v7509_v15 = vmax.f32 %v1104_v14, 0.0 }
 0x181   :  { %v6158_v0 = vpop.f32.mrf.mxu0 }
 0x182   :  { %9213 = vst [vmem:[#allocation52_spill] sm:$0xff] %v7499_v4  ;;  %v1594_v13 = vunpack.c.l.b16 %v7499_v4  ;;  %v1595_v17 = vunpack.c.h.b16 %v7499_v4  ;;  %v1107_v45 = vadd.f32 %v7423_v7, %v6158_v0  ;;  %v7513_v38 = vmax.f32 %v1096_v6, 0.0 }
 0x183   :  { %v1098_v23 = vpop.f32.mrf.mxu0 }
 0x184   :  { %v1099_v50 = vadd.f32 %v7423_v7, %v1098_v23  ;;  %v7511_v37 = vmax.f32 %v1107_v45, 0.0  ;;  %v1951_v56 = vpack.c.b16 %v1594_v13, %v1593_v54  ;;  %v1952_v5 = vpack.c.b16 %v1596_v58, %v1595_v17 }
 0x185   :  { %v6161_v2 = vpop.f32.mrf.mxu0 }
 0x186   :  { %v7515_v4 = vmax.f32 %v1099_v50, 0.0  ;;  %v7519_v55 = vpack.c.bf16 %v7511_v37, %v7509_v15  ;;  %6219 = vmatprep.mubr.msk.bf16.mxu1 %vm1969_vm6, %v1951_v56  ;;  %v1120_v13 = vadd.f32 %v7423_v7, %v6161_v2 }
 0x187   :  { %v1111_v0 = vpop.f32.mrf.mxu0  ;;  %6220 = vmatmul.mubr.msk.bf16.gmra.mxu1 %vm1969_vm6, %v1952_v5 }
 0x188   :  { %v7524_v14 = vpack.c.bf16 %v7515_v4, %v7513_v38  ;;  %v1112_v17 = vadd.f32 %v7423_v7, %v1111_v0  ;;  %v7531_v50 = vmax.f32 %v1120_v13, 0.0  ;;  %v5760_v13 = vpack.c.bf16 %v7338_v53, %v7338_v53 }
 0x189   :  { %v6162_v45 = vpop.f32.mrf.mxu0  ;;  %v1601_v24 = vunpack.c.h.b16 %v7519_v55 }
 0x18a   :  { %9214 = vst [vmem:[#allocation53_spill] sm:$0xff] %v7524_v14  ;;  %v1123_v54 = vadd.f32 %v7423_v7, %v6162_v45  ;;  %v7533_v56 = vmax.f32 %v1112_v17, 0.0  ;;  %v1723_v61 = vshrl.u32 %v5760_v13, 16  ;;  %v1599_v53 = vunpack.c.h.b16 %v7524_v14 }
 0x18b   :  { %v1114_v6 = vpop.f32.mrf.mxu0 }
 0x18c   :  { %v1115_v58 = vadd.f32 %v7423_v7, %v1114_v6  ;;  %v7535_v19 = vmax.f32 %v1123_v54, 0.0  ;;  %v5761_v54 = vpack.c.bf16 %v7340_v41, %v7340_v41  ;;  %v1725_v14 = vrot.slane %v1723_v61, 7 }
 0x18d   :  { %v6165_v23 = vpop.f32.mrf.mxu0 }
 0x18e   :  { %v7537_v8 = vmax.f32 %v1115_v58, 0.0  ;;  %v7541_v2 = vpack.c.bf16 %v7535_v19, %v7531_v50  ;;  %v5765_v58 = vpack.c.bf16 %v7354_v11, %v7354_v11  ;;  %v1136_v31 = vadd.f32 %v7423_v7, %v6165_v23 }
 0x18f   :  { %v1127_v5 = vpop.f32.mrf.mxu0  ;;  %v1730_v41 = vshrl.u32 %v5761_v54, 16 }
 0x190   :  { %9215 = vst [vmem:[#allocation54_spill] sm:$0xff] %v7541_v2  ;;  %v7545_v0 = vpack.c.bf16 %v7537_v8, %v7533_v56  ;;  %v1128_v17 = vadd.f32 %v7423_v7, %v1127_v5  ;;  %v1758_v63 = vshrl.u32 %v5765_v58, 16  ;;  %v1352_v1 = vmax.f32 %v1136_v31, 0.0 }
 0x191   :  { %v6166_v45 = vpop.f32.mrf.mxu0  ;;  %v1604_v36 = vunpack.c.l.b16 %v7541_v2  ;;  %v1732_v30 = vrot.slane %v1730_v41, 7  ;;  %v1726_v2 = vshll.u32 %v5760_v13, 16 }
 0x192   :  { %9216 = vst [vmem:[#allocation55_spill] sm:$0xff] %v7545_v0  ;;  %v1139_v18 = vadd.f32 %v7423_v7, %v6166_v45  ;;  %v1602_v5 = vunpack.c.l.b16 %v7545_v0  ;;  %v1350_v32 = vmax.f32 %v1128_v17, 0.0  ;;  %v1603_v11 = vunpack.c.h.b16 %v7545_v0 }
 0x193   :  { %v1130_v6 = vpop.f32.mrf.mxu0  ;;  %v1600_v45 = vunpack.c.l.b16 %v7519_v55  ;;  %v1728_v41 = vor.u32 %v1726_v2, %v1725_v14  ;;  %v7592_v14 = vpack.c.bf16 %v7509_v15, %v7509_v15 }
 0x194   :  { %v1131_v25 = vadd.f32 %v7423_v7, %v1130_v6  ;;  %v1353_v27 = vmax.f32 %v1139_v18, 0.0  ;;  %v7569_v31 = vpack.c.b16 %v1602_v5, %v1601_v24  ;;  %v1761_v24 = vshll.u32 %v5765_v58, 16 }
 0x195   :  { %v6169_v46 = vpop.f32.mrf.mxu0  ;;  %v7567_v0 = vpack.c.b16 %v1600_v45, %v1599_v53 }
 0x196   :  { %v1351_v48 = vmax.f32 %v1131_v25, 0.0  ;;  %v1431_v26 = vpack.c.bf16 %v1353_v27, %v1352_v1  ;;  %9217 = vst [vmem:[#allocation56_spill] sm:$0xff] %v7569_v31  ;;  %v1760_v27 = vrot.slane %v1758_v63, 7 }
 0x197   :  { %v1143_v51 = vpop.f32.mrf.mxu0 }
 0x198   :  { %v1430_v6 = vpack.c.bf16 %v1351_v48, %v1350_v32  ;;  %v1144_v18 = vadd.f32 %v7423_v7, %v1143_v51  ;;  %v1152_v32 = vadd.f32 %v7423_v7, %v6169_v46  ;;  %v7573_v48 = vpack.c.b16 %v1604_v36, %v1603_v11 }
 0x199   :  { %v6170_v23 = vpop.f32.mrf.mxu0  ;;  %v1669_v46 = vrot.slane %v9193_v29, 7  ;;  %v1763_v11 = vor.u32 %v1761_v24, %v1760_v27  ;;  %v5767_v27 = vpack.c.bf16 %v7513_v38, %v7513_v38 }
 0x19a   :  { %v1155_v16 = vadd.f32 %v7423_v7, %v6170_v23  ;;  %6367 = vmatprep.mubr.msk.bf16.mxu0 %vm1969_vm6, %v1430_v6  ;;  %9218 = vst [vmem:[#allocation57_spill] sm:$0xff] %v7573_v48  ;;  %v1354_v1 = vmax.f32 %v1144_v18, 0.0  ;;  %v1356_v31 = vmax.f32 %v1152_v32, 0.0 }
 0x19b   :  { %v1146_v17 = vpop.f32.mrf.mxu0  ;;  %6368 = vmatmul.mubr.msk.bf16.gmra.mxu0 %vm1969_vm6, %v1431_v26 }
 0x19c   :  { %v1147_v25 = vadd.f32 %v7423_v7, %v1146_v17  ;;  %v1733_v17 = vshll.u32 %v5761_v54, 16  ;;  %v1357_v53 = vmax.f32 %v1155_v16, 0.0 }
 0x19d   :  { %v6173_v51 = vpop.f32.mrf.mxu0 }
 0x19e   :  { %v1355_v23 = vmax.f32 %v1147_v25, 0.0  ;;  %v1168_v6 = vadd.f32 %v7423_v7, %v6173_v51  ;;  %v1735_v26 = vor.u32 %v1733_v17, %v1732_v30  ;;  %v1433_v16 = vpack.c.bf16 %v1357_v53, %v1356_v31 }
 0x19f   :  { %v1159_v45 = vpop.f32.mrf.mxu0  ;;  %v7588_v30 = vsel %vm7035_vm5, 0, %v1669_v46  ;;  %v7598_v31 = vsel %vm7035_vm5, 0, %v1728_v41  ;;  %v1786_v41 = vshrl.u32 %v7592_v14, 16 }
 0x1a0   :  { %v1432_v5 = vpack.c.bf16 %v1355_v23, %v1354_v1  ;;  %v7576_v61 = vmax.f32 %v1168_v6, 0.0  ;;  %v1160_v18 = vadd.f32 %v7423_v7, %v1159_v45  ;;  %v7602_v51 = vsel %vm7035_vm5, 0, %v1735_v26 }
 0x1a1   :  { %v6174_v36 = vpop.f32.mrf.mxu0  ;;  %v9222_v23 = vcombine.low %v7189_v3, %v7204_v43  ;;  %v7616_v6 = vsel %vm7035_vm5, 0, %v1763_v11  ;;  %v6642_v11 = vld [vmem:[%s9080_s3 + $0x80] sm:$0xff]  }
 0x1a2   :  { %9219 = vst [vmem:[#allocation58_spill] sm:$0xff] %v7576_v61  ;;  %v5807_v63 = vpack.c.bf16 %v7576_v61, %v7576_v61  ;;  %v1171_v13 = vadd.f32 %v7423_v7, %v6174_v36  ;;  %6371 = vmatprep.mubr.msk.bf16.mxu0 %vm1969_vm6, %v1432_v5  ;;  %v7606_v1 = vmax.f32 %v1160_v18, 0.0 }
 0x1a3   :  { %v1162_v54 = vpop.f32.mrf.mxu0  ;;  %6372 = vmatmul.mubr.msk.bf16.gmra.mxu0 %vm1969_vm6, %v1433_v16  ;;  %v7632_v16 = vpack.c.bf16 %v7511_v37, %v7511_v37 }
 0x1a4   :  { %v2963_v58 = vshrl.u32 %v5807_v63, 16  ;;  %v7584_v25 = vmax.f32 %v1171_v13, 0.0  ;;  %v1163_v2 = vadd.f32 %v7423_v7, %v1162_v54  ;;  %9221 = vst [vmem:[#allocation60_spill] sm:$0xff] %v7606_v1  ;;  %6415 = vmatprep.mubr.msk.bf16.mxu0 %vm1969_vm6, %v9222_v23  ;;  %v2966_v26 = vshll.u32 %v5807_v63, 16 }
 0x1a5   :  { %v6177_v32 = vpop.f32.mrf.mxu0  ;;  %v1772_v13 = vshrl.u32 %v5767_v27, 16  ;;  %v1793_v61 = vshrl.u32 %v7632_v16, 16 }
 0x1a6   :  { %9220 = vst [vmem:[#allocation59_spill] sm:$0xff] %v7584_v25  ;;  %v2965_v17 = vrot.slane %v2963_v58, 7  ;;  %v5808_v53 = vpack.c.bf16 %v7584_v25, %v7584_v25  ;;  %v7620_v45 = vmax.f32 %v1163_v2, 0.0  ;;  %v1184_v38 = vadd.f32 %v7423_v7, %v6177_v32 }
 0x1a7   :  { %v1175_v24 = vpop.f32.mrf.mxu0  ;;  %v7647_v58 = vrot.slane %v1786_v41, 7  ;;  %v1774_v46 = vrot.slane %v1772_v13, 7 }
 0x1a8   :  { %9223 = vst [vmem:[#allocation61_spill] sm:$0xff] %v7620_v45  ;;  %v2970_v36 = vshrl.u32 %v5808_v53, 16  ;;  %v7634_v54 = vmax.f32 %v1184_v38, 0.0  ;;  %v2968_v2 = vor.u32 %v2966_v26, %v2965_v17  ;;  %v2973_v23 = vshll.u32 %v5808_v53, 16 }
 0x1a9   :  { %v6178_v18 = vpop.f32.mrf.mxu0  ;;  %v1176_v38 = vadd.f32 %v7423_v7, %v1175_v24  ;;  %v1775_v17 = vshll.u32 %v5767_v27, 16  ;;  %v7658_v24 = vpack.c.bf16 %v7515_v4, %v7515_v4  ;;  %v9227_v27 = vcombine.low %v7210_v52, %v7226_v12 }
 0x1aa   :  { %9224 = vst [vmem:[#allocation62_spill] sm:$0xff] %v7634_v54  ;;  %v2972_v32 = vrot.slane %v2970_v36, 7  ;;  %v1187_v63 = vadd.f32 %v7423_v7, %v6178_v18  ;;  %v5811_v37 = vpack.c.bf16 %v7634_v54, %v7634_v54  ;;  %v9226_v36 = vcombine.low %v7172_v21, %v7178_v33 }
 0x1ab   :  { %v1178_v15 = vpop.f32.mrf.mxu0  ;;  %v3062_v41 = vsel %vm7035_vm5, 0, %v2968_v2  ;;  %v1796_v2 = vshll.u32 %v7632_v16, 16  ;;  %v1779_v54 = vshrl.u32 %v7658_v24, 16 }
 0x1ac   :  { %v1179_v5 = vadd.f32 %v7423_v7, %v1178_v15  ;;  %v2975_v53 = vor.u32 %v2973_v23, %v2972_v32  ;;  %v7649_v26 = vmax.f32 %v1187_v63, 0.0  ;;  %6416 = vmatmul.mubr.msk.bf16.vlgmr.msra.gmra.mxu0 %vm1969_vm6, %v9226_v36  ;;  %v2991_v15 = vshrl.u32 %v5811_v37, 16 }
 0x1ad   :  { %v6181_v18 = vpop.f32.mrf.mxu0  ;;  %6419 = vmatprep.mubr.msk.bf16.mxu0 %vm1969_vm6, %v9227_v27  ;;  %6484 = vmatpush3.bf16.msra.mxu0 %v7434_v9  ;;  %v7675_v27 = vmax.f32 %v1176_v38, 0.0  ;;  %v2994_v25 = vshll.u32 %v5811_v37, 16  ;;  %v1777_v32 = vor.u32 %v1775_v17, %v1774_v46  ;;  %v1795_v37 = vrot.slane %v1793_v61, 7 }
 0x1ae   :  { %9225 = vst [vmem:[#allocation63_spill] sm:$0xff] %v7649_v26  ;;  %v3063_v13 = vsel %vm7035_vm5, 0, %v2975_v53  ;;  %v5812_v4 = vpack.c.bf16 %v7649_v26, %v7649_v26  ;;  %6485 = vmatprep.subr.bf16.mxu0 %v6642_v11  ;;  %v2993_v36 = vrot.slane %v2991_v15, 7  ;;  %v7677_v9 = vmax.f32 %v1179_v5, 0.0 }
 0x1af   :  { %v1191_v23 = vpop.f32.mrf.mxu0  ;;  %v7673_v63 = vcombine.low %v3062_v41, %v3063_v13  ;;  %9229 = vst [vmem:[#allocation65_spill] sm:$0xff] %v7675_v27  ;;  %v1200_v53 = vadd.f32 %v7423_v7, %v6181_v18  ;;  %v7688_v18 = vpack.c.bf16 %v7531_v50, %v7531_v50  ;;  %v7692_v46 = vpack.c.bf16 %v7533_v56, %v7533_v56 }
 0x1b0   :  { %9230 = vst [vmem:[#allocation66_spill] sm:$0xff] %v7677_v9  ;;  %v2998_v1 = vshrl.u32 %v5812_v4, 16  ;;  %v1192_v41 = vadd.f32 %v7423_v7, %v1191_v23  ;;  %v2996_v38 = vor.u32 %v2994_v25, %v2993_v36  ;;  %v3001_v5 = vshll.u32 %v5812_v4, 16 }
 0x1b1   :  { %9228 = vst [vmem:[#allocation64_spill] sm:$0xff] %v7673_v63  ;;  %v6182_v45 = vpop.f32.mrf.mxu0  ;;  %6486 = vmatpush3.bf16.msra.mxu0 %v6642_v11  ;;  %v7697_v11 = vpack.c.bf16 %v7537_v8, %v7537_v8  ;;  %v1782_v50 = vshll.u32 %v7658_v24, 16  ;;  %v9231_v56 = vcombine.low %v7598_v31, %v7602_v51  ;;  %v5815_v8 = vpack.c.bf16 %v7535_v19, %v7535_v19 }
 0x1b2   :  { %v3000_v15 = vrot.slane %v2998_v1, 7  ;;  %v1203_v13 = vadd.f32 %v7423_v7, %v6182_v45  ;;  %v1368_v1 = vmax.f32 %v1200_v53, 0.0  ;;  %v1781_v45 = vrot.slane %v1779_v54, 7 }
 0x1b3   :  { %v1194_v16 = vpop.f32.mrf.mxu0  ;;  %v1366_v23 = vmax.f32 %v1192_v41, 0.0  ;;  %v3066_v53 = vsel %vm7035_vm5, 0, %v2996_v38  ;;  %v1798_v24 = vor.u32 %v1796_v2, %v1795_v37  ;;  %v1814_v41 = vshrl.u32 %v7688_v18, 16 }
 0x1b4   :  { %v1195_v17 = vadd.f32 %v7423_v7, %v1194_v16  ;;  %v3003_v25 = vor.u32 %v3001_v5, %v3000_v15  ;;  %v1369_v4 = vmax.f32 %v1203_v13, 0.0  ;;  %6420 = vmatmul.mubr.msk.bf16.gmra.mxu0 %vm1969_vm6, %v7213_v60  ;;  %v1800_v16 = vshrl.u32 %v7692_v46, 16 }
 0x1b5   :  { %v6185_v61 = vpop.f32.mrf.mxu0  ;;  %6423 = vmatprep.mubr.msk.bf16.mxu0 %vm1969_vm6, %v9231_v56  ;;  %v1807_v19 = vshrl.u32 %v7697_v11, 16  ;;  %v7737_v26 = vsel %vm7035_vm5, 0, %v1798_v24 }
 0x1b6   :  { %v1367_v36 = vmax.f32 %v1195_v17, 0.0  ;;  %v3067_v60 = vsel %vm7035_vm5, 0, %v3003_v25  ;;  %v7712_v15 = vpack.c.bf16 %v1369_v4, %v1368_v1  ;;  %v1216_v38 = vadd.f32 %v7423_v7, %v6185_v61 }
 0x1b7   :  { %v1207_v54 = vpop.f32.mrf.mxu0  ;;  %v7715_v5 = vcombine.low %v3066_v53, %v3067_v60  ;;  %v9235_v4 = vshll.u32 %v7592_v14, 16  ;;  %v3973_v53 = vshrl.u32 %v5815_v8, 16  ;;  %v7733_v61 = vsel %vm7035_vm5, 0, %v1777_v32 }
 0x1b8   :  { %9232 = vst [vmem:[#allocation67_spill] sm:$0xff] %v7712_v15  ;;  %v7717_v13 = vpack.c.bf16 %v1367_v36, %v1366_v23  ;;  %v1624_v17 = vunpack.c.l.b16 %v7712_v15  ;;  %v1208_v1 = vadd.f32 %v7423_v7, %v1207_v54  ;;  %v1784_v36 = vor.u32 %v1782_v50, %v1781_v45 }
 0x1b9   :  { %9233 = vst [vmem:[#allocation68_spill] sm:$0xff] %v7715_v5  ;;  %v6186_v56 = vpop.f32.mrf.mxu0  ;;  %v1791_v23 = vor.u32 %v9235_v4, %v7647_v58  ;;  %v1816_v5 = vrot.slane %v1814_v41, 7  ;;  %v1802_v14 = vrot.slane %v1800_v16, 7  ;;  %v1809_v58 = vrot.slane %v1807_v19, 7 }
 0x1ba   :  { %9234 = vst [vmem:[#allocation69_spill] sm:$0xff] %v7717_v13  ;;  %v1623_v25 = vunpack.c.h.b16 %v7717_v13  ;;  %v1219_v2 = vadd.f32 %v7423_v7, %v6186_v56  ;;  %v5453_v37 = vcombine.low %v9193_v29, %v7717_v13  ;;  %v1372_v45 = vmax.f32 %v1216_v38, 0.0 }
 0x1bb   :  { %v1210_v60 = vpop.f32.mrf.mxu0  ;;  %v9236_v50 = vcombine.low %v7358_v57, %v7362_v22  ;;  %v1817_v4 = vshll.u32 %v7688_v18, 16  ;;  %v1370_v24 = vmax.f32 %v1208_v1, 0.0  ;;  %v1803_v16 = vshll.u32 %v7692_v46, 16 }
 0x1bc   :  { %v1373_v54 = vmax.f32 %v1219_v2, 0.0  ;;  %v1211_v56 = vadd.f32 %v7423_v7, %v1210_v60  ;;  %6223 = vmatprep.mubr.msk.bf16.mxu1 %vm1969_vm6, %v5453_v37  ;;  %v1954_v13 = vpack.c.b16 %v1624_v17, %v1623_v25  ;;  %v9237_v2 = vcombine.low %v7385_v44, %v7616_v6 }
 0x1bd   :  { %6424 = vmatmul.mubr.msk.bf16.gmra.mxu0 %vm1969_vm6, %v9236_v50  ;;  %v6189_v32 = vpop.f32.mrf.mxu0  ;;  %v3975_v19 = vrot.slane %v3973_v53, 7  ;;  %v1810_v17 = vshll.u32 %v7697_v11, 16  ;;  %v3976_v18 = vshll.u32 %v5815_v8, 16  ;;  %v1805_v50 = vor.u32 %v1803_v16, %v1802_v14 }
 0x1be   :  { %v1371_v63 = vmax.f32 %v1211_v56, 0.0  ;;  %6427 = vmatprep.mubr.msk.bf16.mxu0 %vm1969_vm6, %v9237_v2  ;;  %v1232_v41 = vadd.f32 %v7423_v7, %v6189_v32  ;;  %6224 = vmatmul.mubr.msk.bf16.gmra.mxu1 %vm1969_vm6, %v1954_v13  ;;  %v7754_v38 = vpack.c.bf16 %v1373_v54, %v1372_v45  ;;  %v1819_v56 = vor.u32 %v1817_v4, %v1816_v5 }
 0x1bf   :  { %v1223_v25 = vpop.f32.mrf.mxu0  ;;  %v1812_v2 = vor.u32 %v1810_v17, %v1809_v58  ;;  %v7761_v13 = vsel %vm7035_vm5, 0, %v1784_v36  ;;  %v3978_v8 = vor.u32 %v3976_v18, %v3975_v19 }
 0x1c0   :  { %9238 = vst [vmem:[#allocation70_spill] sm:$0xff] %v7754_v38  ;;  %v7756_v1 = vpack.c.bf16 %v1371_v63, %v1370_v24  ;;  %v1376_v37 = vmax.f32 %v1232_v41, 0.0  ;;  %v1224_v60 = vadd.f32 %v7423_v7, %v1223_v25  ;;  %v1625_v63 = vunpack.c.h.b16 %v7712_v15 }
 0x1c1   :  { %v6190_v32 = vpop.f32.mrf.mxu0  ;;  %v1628_v45 = vunpack.c.l.b16 %v7754_v38  ;;  %v5662_v36 = vcombine.low %v7733_v61, %v7761_v13  ;;  %v7775_v25 = vsel %vm7035_vm5, 0, %v1812_v2 }
 0x1c2   :  { %9239 = vst [vmem:[#allocation71_spill] sm:$0xff] %v7756_v1  ;;  %v1626_v46 = vunpack.c.l.b16 %v7756_v1  ;;  %v1627_v11 = vunpack.c.h.b16 %v7756_v1  ;;  %v5776_v53 = vpack.c.bf16 %v1376_v37, %v1376_v37  ;;  %v1374_v54 = vmax.f32 %v1224_v60, 0.0 }
 0x1c3   :  { %v1235_v5 = vadd.f32 %v7423_v7, %v6190_v32  ;;  %v1226_v14 = vpop.f32.mrf.mxu0 }
 0x1c4   :  { %v1835_v58 = vshrl.u32 %v5776_v53, 16  ;;  %v5774_v4 = vpack.c.bf16 %v1374_v54, %v1374_v54  ;;  %v1227_v24 = vadd.f32 %v7423_v7, %v1226_v14  ;;  %v1955_v19 = vpack.c.b16 %v1626_v46, %v1625_v63 }
 0x1c5   :  { %v1377_v41 = vmax.f32 %v1235_v5, 0.0  ;;  %6428 = vmatmul.mubr.msk.bf16.gmra.mxu0 %vm1969_vm6, %v7388_v59  ;;  %v6193_v16 = vpop.f32.mrf.mxu0  ;;  %v1956_v17 = vpack.c.b16 %v1628_v45, %v1627_v11  ;;  %v1838_v60 = vshll.u32 %v5776_v53, 16  ;;  %v7780_v14 = vsel %vm7035_vm5, 0, %v1791_v23 }
 0x1c6   :  { %v1837_v18 = vrot.slane %v1835_v58, 7  ;;  %v1821_v32 = vshrl.u32 %v5774_v4, 16  ;;  %v1375_v38 = vmax.f32 %v1227_v24, 0.0  ;;  %6431 = vmatprep.mubr.msk.bf16.mxu0 %vm1969_vm6, %v5662_v36  ;;  %v1248_v46 = vadd.f32 %v7423_v7, %v6193_v16  ;;  %6227 = vmatprep.mubr.msk.bf16.mxu1 %vm1969_vm6, %v1955_v19 }
 0x1c7   :  { %v7782_v5 = vpack.c.bf16 %v1377_v41, %v1376_v37  ;;  %v5777_v59 = vpack.c.bf16 %v1377_v41, %v1377_v41  ;;  %v1239_v11 = vpop.f32.mrf.mxu0  ;;  %v5663_v2 = vcombine.low %v7780_v14, %v7737_v26  ;;  %6228 = vmatmul.mubr.msk.bf16.gmra.mxu1 %vm1969_vm6, %v1956_v17  ;;  %v7793_v23 = vsel %vm7035_vm5, 0, %v1805_v50 }
 0x1c8   :  { %v7788_v53 = vpack.c.bf16 %v1375_v38, %v1374_v54  ;;  %v5775_v63 = vpack.c.bf16 %v1375_v38, %v1375_v38  ;;  %v7797_v37 = vsel %vm7035_vm5, 0, %v1819_v56  ;;  %v3992_v45 = vsel %vm7035_vm5, 0, %v3978_v8 }
 0x1c9   :  { %v1842_v58 = vshrl.u32 %v5777_v59, 16  ;;  %v9240_v24 = vcombine.low %v7588_v30, %v7189_v3  ;;  %v6194_v38 = vpop.f32.mrf.mxu0  ;;  %v5664_v54 = vcombine.low %v7793_v23, %v7775_v25  ;;  %v1840_v36 = vor.u32 %v1838_v60, %v1837_v18 }
 0x1ca   :  { %v1823_v50 = vrot.slane %v1821_v32, 7  ;;  %v1824_v41 = vshll.u32 %v5774_v4, 16  ;;  %v1828_v16 = vshrl.u32 %v5775_v63, 16  ;;  %v1845_v56 = vshll.u32 %v5777_v59, 16 }
 0x1cb   :  { %6235 = vmatprep.mubr.msk.bf16.mxu1 %vm1969_vm6, %v9240_v24  ;;  %v1844_v19 = vrot.slane %v1842_v58, 7  ;;  %v1380_v17 = vmax.f32 %v1248_v46, 0.0  ;;  %v1240_v1 = vadd.f32 %v7423_v7, %v1239_v11  ;;  %v1242_v8 = vpop.f32.mrf.mxu0  ;;  %v1831_v27 = vshll.u32 %v5775_v63, 16  ;;  %v6643_v11 = vld [vmem:[%s9080_s3 + $0x20] sm:$0xff]  }
 0x1cc   :  { %v1830_v15 = vrot.slane %v1828_v16, 7  ;;  %v1251_v3 = vadd.f32 %v7423_v7, %v6194_v38  ;;  %v1243_v24 = vadd.f32 %v7423_v7, %v1242_v8  ;;  %v5665_v9 = vcombine.low %v7797_v37, %v3992_v45 }
 0x1cd   :  { %v1632_v48 = vunpack.c.l.b16 %v7782_v5  ;;  %v5780_v18 = vpack.c.bf16 %v1380_v17, %v1380_v17  ;;  %v1378_v60 = vmax.f32 %v1240_v1, 0.0  ;;  %6432 = vmatmul.mubr.msk.bf16.gmra.mxu0 %vm1969_vm6, %v5663_v2  ;;  %v1826_v4 = vor.u32 %v1824_v41, %v1823_v50 }
 0x1ce   :  { %v1633_v32 = vunpack.c.h.b16 %v7782_v5  ;;  %v1381_v59 = vmax.f32 %v1251_v3, 0.0  ;;  %v1379_v46 = vmax.f32 %v1243_v24, 0.0  ;;  %6435 = vmatprep.mubr.msk.bf16.mxu0 %vm1969_vm6, %v5664_v54  ;;  %v7820_v7 = vsel %vm7035_vm5, 0, %v1840_v36 }
 0x1cf   :  { %v1847_v63 = vor.u32 %v1845_v56, %v1844_v19  ;;  %v1631_v1 = vunpack.c.h.b16 %v7788_v53  ;;  %v5778_v45 = vpack.c.bf16 %v1378_v60, %v1378_v60  ;;  %v1833_v2 = vor.u32 %v1831_v27, %v1830_v15 }
 0x1d0   :  { %v7823_v58 = vpack.c.bf16 %v1381_v59, %v1380_v17  ;;  %v5816_v38 = vpack.c.bf16 %v1381_v59, %v1381_v59  ;;  %v7825_v50 = vpack.c.bf16 %v1379_v46, %v1378_v60  ;;  %v9241_v54 = vcombine.low %v7204_v43, %v7172_v21  ;;  %v7843_v43 = vld [vmem:[%s9080_s3 + $0x38] sm:$0xff]  }
 0x1d1   :  { %v1863_v41 = vshrl.u32 %v5780_v18, 16  ;;  %v1849_v16 = vshrl.u32 %v5778_v45, 16  ;;  %v1852_v8 = vshll.u32 %v5778_v45, 16  ;;  %v5779_v36 = vpack.c.bf16 %v1379_v46, %v1379_v46 }
 0x1d2   :  { %6236 = vmatmul.mubr.msk.bf16.vlgmr.msra.gmra.mxu1 %vm1969_vm6, %v9241_v54  ;;  %v9242_v19 = vcombine.low %v7178_v33, %v7210_v52  ;;  %v1636_v27 = vunpack.c.l.b16 %v7823_v58  ;;  %v3980_v15 = vshrl.u32 %v5816_v38, 16  ;;  %v1634_v56 = vunpack.c.l.b16 %v7825_v50 }
 0x1d3   :  { %6268 = vmatpush3.bf16.msra.mxu1 %v7394_v28  ;;  %v1923_v21 = vsel %vm7035_vm5, 0, %v1826_v4  ;;  %v1926_v28 = vsel %vm7035_vm5, 0, %v1847_v63  ;;  %v1851_v33 = vrot.slane %v1849_v16, 7  ;;  %v1635_v52 = vunpack.c.h.b16 %v7825_v50 }
 0x1d4   :  { %6239 = vmatprep.mubr.msk.bf16.mxu1 %vm1969_vm6, %v9242_v19  ;;  %6269 = vmatprep.subr.bf16.mxu1 %v6643_v11  ;;  %v1856_v17 = vshrl.u32 %v5779_v36, 16  ;;  %v1866_v3 = vshll.u32 %v5780_v18, 16  ;;  %v1859_v24 = vshll.u32 %v5779_v36, 16  ;;  %v1924_v60 = vsel %vm7035_vm5, 0, %v1833_v2 }
 0x1d5   :  { %v7850_v59 = vpack.c.b16 %v1632_v48, %v1631_v1  ;;  %v1865_v4 = vrot.slane %v1863_v41, 7  ;;  %v1854_v46 = vor.u32 %v1852_v8, %v1851_v33  ;;  %6436 = vmatmul.mubr.msk.bf16.gmra.mxu0 %vm1969_vm6, %v5665_v9  ;;  %v5666_v54 = vcombine.low %v1923_v21, %v1924_v60 }
 0x1d6   :  { %v1858_v45 = vrot.slane %v1856_v17, 7  ;;  %v3982_v19 = vrot.slane %v3980_v15, 7  ;;  %v3983_v63 = vshll.u32 %v5816_v38, 16  ;;  %v7854_v16 = vpack.c.b16 %v1634_v56, %v1633_v32 }
 0x1d7   :  { %6270 = vmatpush3.bf16.msra.mxu1 %v6643_v11  ;;  %v7856_v18 = vpack.c.b16 %v1636_v27, %v1635_v52  ;;  %v5476_v48 = vcombine.low %v7588_v30, %v7598_v31  ;;  %6439 = vmatprep.mubr.msk.bf16.mxu0 %vm1969_vm6, %v5666_v54  ;;  %v1927_v1 = vsel %vm7035_vm5, 0, %v1854_v46  ;;  %v9243_v9 = vcombine.low %v7226_v12, %v7200_v35  ;;  %v9256_v52 = vld [vmem:[#allocation57_spill] sm:$0xff] }
 0x1d8   :  { %6303 = vmatprep.subr.bf16.mxu1 %v7843_v43  ;;  %v1861_v36 = vor.u32 %v1859_v24, %v1858_v45  ;;  %v5667_v11 = vcombine.low %v7820_v7, %v1926_v28  ;;  %v1868_v2 = vor.u32 %v1866_v3, %v1865_v4  ;;  %v3985_v38 = vor.u32 %v3983_v63, %v3982_v19  ;;  %v9258_v24 = vld [vmem:[#allocation23_spill] sm:$0xff]  ;;  %v9260_v63 = vld [vmem:[#allocation28_spill] sm:$0xff] }
 0x1d9   :  { %v5477_v12 = vcombine.low %v7602_v51, %v7358_v57  ;;  %v9244_v27 = vcombine.low %v7362_v22, %v7385_v44  ;;  %v5479_v15 = vcombine.low %v7616_v6, %v7378_v39  ;;  %v5480_v57 = vcombine.low %v7588_v30, %v7733_v61  ;;  %v9246_v51 = vld [vmem:[#allocation53_spill] sm:$0xff]  ;;  %v9248_v61 = vld [vmem:[#allocation18_spill] sm:$0xff]  ;;  %v9259_v45 = vld [vmem:[#allocation11_spill] sm:$0xff] }
 0x1da   :  { %6240 = vmatmul.mubr.msk.bf16.gmra.mxu1 %vm1969_vm6, %v9243_v9  ;;  %v1928_v32 = vsel %vm7035_vm5, 0, %v1861_v36  ;;  %v1929_v41 = vsel %vm7035_vm5, 0, %v1868_v2  ;;  %v3993_v35 = vsel %vm7035_vm5, 0, %v3985_v38  ;;  %v5481_v22 = vcombine.low %v7761_v13, %v7780_v14  ;;  %v9250_v13 = vld [vmem:[#allocation54_spill] sm:$0xff]  ;;  %v9251_v14 = vld [vmem:[#allocation20_spill] sm:$0xff] }
 0x1db   :  { %6243 = vmatprep.mubr.msk.bf16.mxu1 %vm1969_vm6, %v5476_v48  ;;  %v5668_v31 = vcombine.low %v1927_v1, %v1928_v32  ;;  %v5669_v8 = vcombine.low %v1929_v41, %v3993_v35  ;;  %v5482_v44 = vcombine.low %v7737_v26, %v7793_v23  ;;  %v5484_v39 = vcombine.low %v7588_v30, %v1923_v21  ;;  %v9245_v30 = vld [vmem:[#allocation35_spill] sm:$0xff]  ;;  %v6645_v26 = vld [vmem:[%s9080_s3 + $0x30] sm:$0xff]  }
 0x1dc   :  { %v5487_v6 = vcombine.low %v1928_v32, %v1929_v41  ;;  %v9252_v23 = vld [vmem:[#allocation36_spill] sm:$0xff]  ;;  %v9263_v41 = vld [vmem:[#allocation15_spill] sm:$0xff] }
 0x1dd   :  { %6440 = vmatmul.mubr.msk.bf16.gmra.mxu0 %vm1969_vm6, %v5667_v11 }
 0x1de   :  { %6443 = vmatprep.mubr.msk.bf16.mxu0 %vm1969_vm6, %v5668_v31  ;;  %v9262_v31 = vld [vmem:[#allocation9_spill] sm:$0xff] }
 0x1e2   :  { %6244 = vmatmul.mubr.msk.bf16.gmra.mxu1 %vm1969_vm6, %v5477_v12 }
 0x1e3   :  { %6247 = vmatprep.mubr.msk.bf16.mxu1 %vm1969_vm6, %v9244_v27  ;;  %v8027_v27 = vld [vmem:[%s9080_s3 + $0x78] sm:$0xff]  }
 0x1e5   :  { %6444 = vmatmul.mubr.msk.bf16.gmra.mxu0 %vm1969_vm6, %v5669_v8 }
 0x1e6   :  { %6487 = vmatprep.mubr.msk.bf16.mxu0 %vm1969_vm6, %v7159_v49 }
 0x1ea   :  { %6248 = vmatmul.mubr.msk.bf16.gmra.mxu1 %vm1969_vm6, %v5479_v15 }
 0x1eb   :  { %6251 = vmatprep.mubr.msk.bf16.mxu1 %vm1969_vm6, %v5480_v57  ;;  %v9264_v57 = vld [vmem:[#allocation42_spill] sm:$0xff] }
 0x1ed   :  { %6488 = vmatmul.mubr.msk.bf16.vlgmr.msra.gmra.mxu0 %vm1969_vm6, %v7153_v62  ;;  %v5483_v62 = vcombine.low %v7775_v25, %v7797_v37  ;;  %v5511_v25 = vcombine.low %v9193_v29, %v7348_v20  ;;  %v9253_v37 = vld [vmem:[#allocation37_spill] sm:$0xff] }
 0x1ee   :  { %6491 = vmatprep.mubr.msk.bf16.mxu0 %vm1969_vm6, %v7184_v42  ;;  %v5486_v42 = vcombine.low %v1926_v28, %v1927_v1  ;;  %v5513_v28 = vcombine.low %v9193_v29, %v7788_v53  ;;  %v9261_v1 = vld [vmem:[#allocation27_spill] sm:$0xff] }
 0x1ef   :  { %v5793_v9 = vpack.c.bf16 %v9261_v1, %v9261_v1 }
 0x1f1   :  { %v2865_v12 = vshrl.u32 %v5793_v9, 16 }
 0x1f2   :  { %6252 = vmatmul.mubr.msk.bf16.gmra.mxu1 %vm1969_vm6, %v5481_v22  ;;  %v5798_v22 = vpack.c.bf16 %v9264_v57, %v9264_v57 }
 0x1f3   :  { %6255 = vmatprep.mubr.msk.bf16.mxu1 %vm1969_vm6, %v5482_v44 }
 0x1f5   :  { %6492 = vmatmul.mubr.msk.bf16.gmra.mxu0 %vm1969_vm6, %v7182_v40  ;;  %v5485_v40 = vcombine.low %v1924_v60, %v7820_v7  ;;  %v7959_v7 = vpop.f32.mrf.mxu1  ;;  %v5789_v60 = vpack.c.bf16 %v9258_v24, %v9258_v24 }
 0x1f6   :  { %6495 = vmatprep.mubr.msk.bf16.mxu0 %vm1969_vm6, %v7348_v20  ;;  %v5512_v20 = vcombine.low %v9193_v29, %v9246_v51 }
 0x1f7   :  { %v7965_v56 = vpop.f32.mrf.mxu1  ;;  %v2840_v32 = vshll.u32 %v5789_v60, 16 }
 0x1fa   :  { %6256 = vmatmul.mubr.msk.bf16.gmra.mxu1 %vm1969_vm6, %v5483_v62 }
 0x1fb   :  { %6259 = vmatprep.mubr.msk.bf16.mxu1 %vm1969_vm6, %v5484_v39  ;;  %v2867_v39 = vrot.slane %v2865_v12, 7 }
 0x1fd   :  { %6496 = vmatmul.mubr.msk.bf16.gmra.mxu0 %vm1969_vm6, %v7342_v10  ;;  %v5510_v10 = vcombine.low %v9193_v29, %v7159_v49  ;;  %v9249_v49 = vld [vmem:[#allocation19_spill] sm:$0xff]  ;;  %v9257_v29 = vld [vmem:[#allocation24_spill] sm:$0xff] }
 0x1fe   :  { %6499 = vmatprep.mubr.msk.bf16.mxu0 %vm1969_vm6, %v7369_v34  ;;  %v9247_v34 = vld [vmem:[#allocation55_spill] sm:$0xff] }
 0x202   :  { %6260 = vmatmul.mubr.msk.bf16.gmra.mxu1 %vm1969_vm6, %v5485_v40  ;;  %v9265_v40 = vld [vmem:[#allocation41_spill] sm:$0xff] }
 0x203   :  { %6263 = vmatprep.mubr.msk.bf16.mxu1 %vm1969_vm6, %v5486_v42  ;;  %v5797_v42 = vpack.c.bf16 %v9265_v40, %v9265_v40 }
 0x205   :  { %6500 = vmatmul.mubr.msk.bf16.gmra.mxu0 %vm1969_vm6, %v9245_v30 }
 0x206   :  { %6503 = vmatprep.mubr.msk.bf16.mxu0 %vm1969_vm6, %v9246_v51 }
 0x20a   :  { %6264 = vmatmul.mubr.msk.bf16.gmra.mxu1 %vm1969_vm6, %v5487_v6 }
 0x20b   :  { %6271 = vmatprep.mubr.msk.bf16.mxu1 %vm1969_vm6, %v5510_v10  ;;  %v2868_v10 = vshll.u32 %v5793_v9, 16  ;;  %v9272_v9 = vld [vmem:[#allocation29_spill] sm:$0xff] }
 0x20d   :  { %6504 = vmatmul.mubr.msk.bf16.gmra.mxu0 %vm1969_vm6, %v7519_v55  ;;  %v6646_v55 = vld [vmem:[%s9080_s3 + $0x58] sm:$0xff]  }
 0x20e   :  { %6507 = vmatprep.mubr.msk.bf16.mxu0 %vm1969_vm6, %v9247_v34 }
 0x212   :  { %6272 = vmatmul.mubr.msk.bf16.vlgmr.msra.gmra.mxu1 %vm1969_vm6, %v9248_v61  ;;  %v8040_v61 = vpop.f32.mrf.mxu0 }
 0x213   :  { %6304 = vmatpush3.bf16.msra.mxu1 %v7843_v43  ;;  %6275 = vmatprep.mubr.msk.bf16.mxu1 %vm1969_vm6, %v9249_v49  ;;  %v9255_v43 = vld [vmem:[#allocation56_spill] sm:$0xff]  ;;  %9266 = vst [vmem:[#allocation35_spill] sm:$0xff] %v8040_v61  ;;  %v9267_v49 = vld [vmem:[#allocation14_spill] sm:$0xff] }
 0x214   :  { %6305 = vmatprep.subr.bf16.mxu1 %v6645_v26 }
 0x215   :  { %6508 = vmatmul.mubr.msk.bf16.gmra.mxu0 %vm1969_vm6, %v9250_v13  ;;  %v2893_v13 = vshrl.u32 %v5797_v42, 16 }
 0x216   :  { %6511 = vmatprep.mubr.msk.bf16.mxu0 %vm1969_vm6, %v7788_v53  ;;  %v5790_v53 = vpack.c.bf16 %v9257_v29, %v9257_v29 }
 0x217   :  { %6306 = vmatpush3.bf16.msra.mxu1 %v6645_v26  ;;  %v2900_v26 = vshrl.u32 %v5798_v22, 16 }
 0x218   :  { %6375 = vmatprep.subr.bf16.mxu1 %v6646_v55  ;;  %v2844_v46 = vshrl.u32 %v5790_v53, 16  ;;  %v2847_v48 = vshll.u32 %v5790_v53, 16 }
 0x21a   :  { %6276 = vmatmul.mubr.msk.bf16.gmra.mxu1 %vm1969_vm6, %v9251_v14  ;;  %v2846_v19 = vrot.slane %v2844_v46, 7  ;;  %v2902_v14 = vrot.slane %v2900_v26, 7 }
 0x21b   :  { %6279 = vmatprep.mubr.msk.bf16.mxu1 %vm1969_vm6, %v5511_v25 }
 0x21c   :  { %v2849_v2 = vor.u32 %v2847_v48, %v2846_v19 }
 0x21d   :  { %6512 = vmatmul.mubr.msk.bf16.gmra.mxu0 %vm1969_vm6, %v7782_v5  ;;  %v9254_v5 = vld [vmem:[#allocation38_spill] sm:$0xff] }
 0x21e   :  { %6515 = vmatprep.mubr.msk.bf16.mxu0 %vm1969_vm6, %v7825_v50  ;;  %v7970_v50 = vpop.f32.mrf.mxu1  ;;  %v3045_v44 = vsel %vm7035_vm5, 0, %v2849_v2 }
 0x220   :  { %v7972_v21 = vpop.f32.mrf.mxu1 }
 0x222   :  { %6280 = vmatmul.mubr.msk.bf16.gmra.mxu1 %vm1969_vm6, %v9252_v23  ;;  %v9268_v23 = vld [vmem:[#allocation47_spill] sm:$0xff] }
 0x223   :  { %6283 = vmatprep.mubr.msk.bf16.mxu1 %vm1969_vm6, %v9253_v37  ;;  %v5802_v37 = vpack.c.bf16 %v9268_v23, %v9268_v23 }
 0x225   :  { %6516 = vmatmul.mubr.msk.bf16.gmra.mxu0 %vm1969_vm6, %v7823_v58  ;;  %v7978_v58 = vpop.f32.mrf.mxu1 }
 0x227   :  { %v7982_v33 = vpop.f32.mrf.mxu1 }
 0x229   :  { %v7987_v17 = vpop.f32.mrf.mxu1 }
 0x22a   :  { %6284 = vmatmul.mubr.msk.bf16.gmra.mxu1 %vm1969_vm6, %v9254_v5 }
 0x22b   :  { %6287 = vmatprep.mubr.msk.bf16.mxu1 %vm1969_vm6, %v5512_v20  ;;  %v7989_v3 = vpop.f32.mrf.mxu1  ;;  %v8049_v20 = vpop.f32.mrf.mxu0 }
 0x22c   :  { %9269 = vst [vmem:[#allocation53_spill] sm:$0xff] %v8049_v20 }
 0x232   :  { %6288 = vmatmul.mubr.msk.bf16.gmra.mxu1 %vm1969_vm6, %v7567_v0  ;;  %v7995_v0 = vpop.f32.mrf.mxu1 }
 0x233   :  { %6291 = vmatprep.mubr.msk.bf16.mxu1 %vm1969_vm6, %v9255_v43  ;;  %v2895_v43 = vrot.slane %v2893_v13, 7 }
 0x234   :  { %v8001_v4 = vpop.f32.mrf.mxu1 }
 0x236   :  { %v8007_v54 = vpop.f32.mrf.mxu1 }
 0x238   :  { %v8013_v11 = vpop.f32.mrf.mxu1 }
 0x23a   :  { %6292 = vmatmul.mubr.msk.bf16.gmra.mxu1 %vm1969_vm6, %v9256_v52  ;;  %v8022_v8 = vpop.f32.mrf.mxu1  ;;  %v9270_v52 = vld [vmem:[#allocation46_spill] sm:$0xff] }
 0x23b   :  { %6295 = vmatprep.mubr.msk.bf16.mxu1 %vm1969_vm6, %v5513_v28  ;;  %v2903_v28 = vshll.u32 %v5798_v22, 16  ;;  %v5801_v53 = vpack.c.bf16 %v9270_v52, %v9270_v52  ;;  %v2931_v22 = vshll.u32 %v5802_v37, 16 }
 0x23c   :  { %v8035_v30 = vpop.f32.mrf.mxu1 }
 0x23d   :  { %v2905_v19 = vor.u32 %v2903_v28, %v2902_v14 }
 0x23e   :  { %v8045_v25 = vpop.f32.mrf.mxu1 }
 0x23f   :  { %v3053_v12 = vsel %vm7035_vm5, 0, %v2905_v19 }
 0x242   :  { %6296 = vmatmul.mubr.msk.bf16.gmra.mxu1 %vm1969_vm6, %v7850_v59  ;;  %v2837_v59 = vshrl.u32 %v5789_v60, 16  ;;  %v8055_v60 = vpop.f32.mrf.mxu1 }
 0x243   :  { %6299 = vmatprep.mubr.msk.bf16.mxu1 %vm1969_vm6, %v7854_v16  ;;  %v5794_v16 = vpack.c.bf16 %v9260_v63, %v9260_v63 }
 0x244   :  { %v2839_v36 = vrot.slane %v2837_v59, 7  ;;  %v2896_v59 = vshll.u32 %v5797_v42, 16  ;;  %v8061_v48 = vpop.f32.mrf.mxu1 }
 0x245   :  { %v2872_v38 = vshrl.u32 %v5794_v16, 16  ;;  %v2875_v62 = vshll.u32 %v5794_v16, 16  ;;  %v2928_v16 = vshrl.u32 %v5802_v37, 16  ;;  %v9278_v37 = vld [vmem:[#allocation66_spill] sm:$0xff] }
 0x246   :  { %v2842_v35 = vor.u32 %v2840_v32, %v2839_v36  ;;  %v8059_v36 = vpop.f32.mrf.mxu0  ;;  %v2921_v32 = vshrl.u32 %v5801_v53, 16 }
 0x247   :  { %v2874_v15 = vrot.slane %v2872_v38, 7  ;;  %9271 = vst [vmem:[#allocation55_spill] sm:$0xff] %v8059_v36  ;;  %v2930_v2 = vrot.slane %v2928_v16, 7  ;;  %v9273_v38 = vld [vmem:[#allocation61_spill] sm:$0xff] }
 0x248   :  { %v3044_v51 = vsel %vm7035_vm5, 0, %v2842_v35  ;;  %v8070_v35 = vpop.f32.mrf.mxu1 }
 0x249   :  { %v5572_v6 = vcombine.low %v3044_v51, %v3045_v44  ;;  %v2877_v34 = vor.u32 %v2875_v62, %v2874_v15  ;;  %v2923_v15 = vrot.slane %v2921_v32, 7  ;;  %v9275_v44 = vld [vmem:[#allocation60_spill] sm:$0xff]  ;;  %v2924_v51 = vshll.u32 %v5801_v53, 16 }
 0x24a   :  { %6300 = vmatmul.mubr.msk.bf16.gmra.mxu1 %vm1969_vm6, %v7856_v18  ;;  %v6647_v18 = vld [vmem:[%s9080_s3 + $0x50] sm:$0xff]   ;;  %v8080_v26 = vpop.f32.mrf.mxu1 }
 0x24b   :  { %6307 = vmatprep.mubr.msk.bf16.mxu1 %vm1969_vm6, %v9259_v45  ;;  %v3049_v5 = vsel %vm7035_vm5, 0, %v2877_v34 }
 0x24c   :  { %v8089_v28 = vpop.f32.mrf.mxu1 }
 0x24d   :  { %9280 = vst [vmem:[#allocation20_spill] sm:$0xff] %v8089_v28 }
 0x252   :  { %6308 = vmatmul.mubr.msk.bf16.vlgmr.msra.gmra.mxu1 %vm1969_vm6, %v9262_v31  ;;  %v5806_v31 = vpack.c.bf16 %v9273_v38, %v9273_v38 }
 0x253   :  { %6376 = vmatpush3.bf16.msra.mxu1 %v6646_v55  ;;  %6311 = vmatprep.mubr.msk.bf16.mxu1 %vm1969_vm6, %v9263_v41  ;;  %v2870_v55 = vor.u32 %v2868_v10, %v2867_v39  ;;  %v8068_v41 = vpop.f32.mrf.mxu0  ;;  %v5805_v39 = vpack.c.bf16 %v9275_v44, %v9275_v44 }
 0x254   :  { %6377 = vmatprep.subr.bf16.mxu1 %v6647_v18  ;;  %9274 = vst [vmem:[#allocation18_spill] sm:$0xff] %v8068_v41  ;;  %v2956_v10 = vshrl.u32 %v5806_v31, 16 }
 0x255   :  { %v3048_v46 = vsel %vm7035_vm5, 0, %v2870_v55  ;;  %v8078_v34 = vpop.f32.mrf.mxu0  ;;  %v2926_v55 = vor.u32 %v2924_v51, %v2923_v15  ;;  %v2949_v13 = vshrl.u32 %v5805_v39, 16  ;;  %v8099_v15 = vpop.f32.mrf.mxu1 }
 0x256   :  { %v5574_v45 = vcombine.low %v3048_v46, %v3049_v5  ;;  %9276 = vst [vmem:[#allocation19_spill] sm:$0xff] %v8078_v34  ;;  %v2958_v14 = vrot.slane %v2956_v10, 7  ;;  %v5810_v5 = vpack.c.bf16 %v9278_v37, %v9278_v37 }
 0x257   :  { %6378 = vmatpush3.bf16.msra.mxu1 %v6647_v18  ;;  %v2898_v18 = vor.u32 %v2896_v59, %v2895_v43  ;;  %v8087_v43 = vpop.f32.mrf.mxu0  ;;  %v2951_v46 = vrot.slane %v2949_v13, 7  ;;  %v9281_v59 = vld [vmem:[#allocation65_spill] sm:$0xff]  ;;  %v3056_v16 = vsel %vm7035_vm5, 0, %v2926_v55 }
 0x258   :  { %6447 = vmatprep.subr.bf16.mxu1 %v8027_v27  ;;  %9279 = vst [vmem:[#allocation54_spill] sm:$0xff] %v8087_v43  ;;  %v5809_v19 = vpack.c.bf16 %v9281_v59, %v9281_v59 }
 0x259   :  { %v3052_v62 = vsel %vm7035_vm5, 0, %v2898_v18  ;;  %v2952_v18 = vshll.u32 %v5805_v39, 16 }
 0x25a   :  { %6312 = vmatmul.mubr.msk.bf16.gmra.mxu1 %vm1969_vm6, %v9267_v49  ;;  %v5576_v42 = vcombine.low %v3052_v62, %v3053_v12  ;;  %v9277_v49 = vld [vmem:[#allocation32_spill] sm:$0xff]  ;;  %v8097_v12 = vpop.f32.mrf.mxu0  ;;  %v2977_v62 = vshrl.u32 %v5809_v19, 16 }
 0x25b   :  { %6315 = vmatprep.mubr.msk.bf16.mxu1 %vm1969_vm6, %v5572_v6  ;;  %v2933_v6 = vor.u32 %v2931_v22, %v2930_v2  ;;  %v2984_v2 = vshrl.u32 %v5810_v5, 16  ;;  %9282 = vst [vmem:[#allocation36_spill] sm:$0xff] %v8097_v12  ;;  %v9283_v22 = vld [vmem:[#allocation45_spill] sm:$0xff] }
 0x25c   :  { %v8104_v51 = vpop.f32.mrf.mxu0  ;;  %v2979_v10 = vrot.slane %v2977_v62, 7  ;;  %v9290_v62 = vld [vmem:[#allocation64_spill] sm:$0xff] }
 0x25d   :  { %v3057_v53 = vsel %vm7035_vm5, 0, %v2933_v6  ;;  %9284 = vst [vmem:[#allocation37_spill] sm:$0xff] %v8104_v51  ;;  %v8106_v6 = vpop.f32.mrf.mxu1 }
 0x262   :  { %6316 = vmatmul.mubr.msk.bf16.gmra.mxu1 %vm1969_vm6, %v9272_v9  ;;  %v5578_v9 = vcombine.low %v3056_v16, %v3057_v53  ;;  %v9286_v16 = vld [vmem:[#allocation49_spill] sm:$0xff] }
 0x263   :  { %6319 = vmatprep.mubr.msk.bf16.mxu1 %vm1969_vm6, %v5574_v45  ;;  %v2959_v45 = vshll.u32 %v5806_v31, 16  ;;  %v2954_v31 = vor.u32 %v2952_v18, %v2951_v46  ;;  %v8114_v46 = vpop.f32.mrf.mxu1 }
 0x265   :  { %v2961_v32 = vor.u32 %v2959_v45, %v2958_v14  ;;  %v3060_v55 = vsel %vm7035_vm5, 0, %v2954_v31  ;;  %v2980_v14 = vshll.u32 %v5809_v19, 16  ;;  %v8112_v45 = vpop.f32.mrf.mxu0 }
 0x266   :  { %9285 = vst [vmem:[#allocation38_spill] sm:$0xff] %v8112_v45 }
 0x267   :  { %v3061_v39 = vsel %vm7035_vm5, 0, %v2961_v32  ;;  %v8119_v18 = vpop.f32.mrf.mxu0  ;;  %v8121_v32 = vpop.f32.mrf.mxu1 }
 0x268   :  { %v5580_v13 = vcombine.low %v3060_v55, %v3061_v39  ;;  %9287 = vst [vmem:[#allocation56_spill] sm:$0xff] %v8119_v18  ;;  %9288 = vst [vmem:[#allocation57_spill] sm:$0xff] %v8121_v32 }
 0x269   :  { %v8129_v31 = vpop.f32.mrf.mxu0 }
 0x26a   :  { %6320 = vmatmul.mubr.msk.bf16.gmra.mxu1 %vm1969_vm6, %v9277_v49  ;;  %v2987_v49 = vshll.u32 %v5810_v5, 16  ;;  %9289 = vst [vmem:[#allocation24_spill] sm:$0xff] %v8129_v31 }
 0x26b   :  { %6323 = vmatprep.mubr.msk.bf16.mxu1 %vm1969_vm6, %v5576_v42  ;;  %v2986_v42 = vrot.slane %v2984_v2, 7 }
 0x26d   :  { %v2989_v53 = vor.u32 %v2987_v49, %v2986_v42 }
 0x26f   :  { %v3065_v5 = vsel %vm7035_vm5, 0, %v2989_v53  ;;  %v9297_v53 = vld [vmem:[#allocation3_spill] sm:$0xff] }
 0x272   :  { %6324 = vmatmul.mubr.msk.bf16.gmra.mxu1 %vm1969_vm6, %v9283_v22 }
 0x273   :  { %6327 = vmatprep.mubr.msk.bf16.mxu1 %vm1969_vm6, %v5578_v9  ;;  %v2982_v9 = vor.u32 %v2980_v14, %v2979_v10  ;;  %v8138_v10 = vpop.f32.mrf.mxu0  ;;  %v9296_v14 = vld [vmem:[#allocation5_spill] sm:$0xff] }
 0x274   :  { %9293 = vst [vmem:[#allocation28_spill] sm:$0xff] %v8138_v10  ;;  %v9301_v10 = vld [vmem:[#allocation4_spill] sm:$0xff] }
 0x275   :  { %v3064_v19 = vsel %vm7035_vm5, 0, %v2982_v9  ;;  %v8142_v55 = vpop.f32.mrf.mxu0 }
 0x276   :  { %v5582_v22 = vcombine.low %v3064_v19, %v3065_v5  ;;  %9294 = vst [vmem:[#allocation27_spill] sm:$0xff] %v8142_v55 }
 0x277   :  { %v8154_v5 = vpop.f32.mrf.mxu0 }
 0x278   :  { %9299 = vst [vmem:[#allocation9_spill] sm:$0xff] %v8154_v5  ;;  %v9305_v5 = vld [vmem:[#allocation7_spill] sm:$0xff] }
 0x279   :  { %v8163_v55 = vpop.f32.mrf.mxu0 }
 0x27a   :  { %6328 = vmatmul.mubr.msk.bf16.gmra.mxu1 %vm1969_vm6, %v9286_v16  ;;  %v9298_v16 = vpack.c.bf16 %v9296_v14, %v9297_v53  ;;  %9300 = vst [vmem:[#allocation15_spill] sm:$0xff] %v8163_v55  ;;  %v9302_v14 = vld [vmem:[#allocation2_spill] sm:$0xff] }
 0x27b   :  { %6331 = vmatprep.mubr.msk.bf16.mxu1 %vm1969_vm6, %v5580_v13  ;;  %v9295_v13 = vld [vmem:[#allocation68_spill] sm:$0xff]  ;;  %v9303_v53 = vpack.c.bf16 %v9301_v10, %v9302_v14  ;;  %v8178_v45 = vpop.f32.mrf.mxu0 }
 0x27c   :  { %9307 = vst [vmem:[#allocation42_spill] sm:$0xff] %v8178_v45 }
 0x27d   :  { %v8182_v51 = vpop.f32.mrf.mxu0 }
 0x27e   :  { %v8125_v2 = vpop.f32.mrf.mxu1  ;;  %9308 = vst [vmem:[#allocation41_spill] sm:$0xff] %v8182_v51 }
 0x280   :  { %v8133_v42 = vpop.f32.mrf.mxu1 }
 0x281   :  { %9291 = vst [vmem:[#allocation23_spill] sm:$0xff] %v8133_v42 }
 0x282   :  { %6332 = vmatmul.mubr.msk.bf16.gmra.mxu1 %vm1969_vm6, %v9290_v62  ;;  %v8136_v39 = vpop.f32.mrf.mxu1  ;;  %v6649_v62 = vld [vmem:[%s9080_s3 + $0x70] sm:$0xff]  }
 0x283   :  { %6335 = vmatprep.mubr.msk.bf16.mxu1 %vm1969_vm6, %v5582_v22  ;;  %9292 = vst [vmem:[#allocation11_spill] sm:$0xff] %v8136_v39 }
 0x284   :  { %v8140_v49 = vpop.f32.mrf.mxu1 }
 0x287   :  { %v8144_v47 = vpop.f32.mrf.mxu1 }
 0x289   :  { %v8152_v9 = vpop.f32.mrf.mxu1 }
 0x28a   :  { %6336 = vmatmul.mubr.msk.bf16.gmra.mxu1 %vm1969_vm6, %v9295_v13 }
 0x28b   :  { %6379 = vmatprep.mubr.msk.bf16.mxu1 %vm1969_vm6, %v9298_v16  ;;  %v8156_v19 = vpop.f32.mrf.mxu1  ;;  %v9304_v16 = vld [vmem:[#allocation10_spill] sm:$0xff] }
 0x28c   :  { %v9306_v31 = vpack.c.bf16 %v9304_v16, %v9305_v5  ;;  %v8196_v5 = vpop.f32.mrf.mxu0 }
 0x28d   :  { %v8158_v22 = vpop.f32.mrf.mxu1  ;;  %9313 = vst [vmem:[#allocation14_spill] sm:$0xff] %v8196_v5 }
 0x28e   :  { %v8202_v51 = vpop.f32.mrf.mxu0 }
 0x28f   :  { %9314 = vst [vmem:[#allocation47_spill] sm:$0xff] %v8202_v51 }
 0x292   :  { %v8165_v13 = vpop.f32.mrf.mxu1  ;;  %6380 = vmatmul.mubr.msk.bf16.vlgmr.msra.gmra.mxu1 %vm1969_vm6, %v9303_v53  ;;  %v9310_v53 = vld [vmem:[#allocation6_spill] sm:$0xff] }
 0x293   :  { %6448 = vmatpush3.bf16.msra.mxu1 %v8027_v27  ;;  %6383 = vmatprep.mubr.msk.bf16.mxu1 %vm1969_vm6, %v9306_v31  ;;  %v9309_v27 = vld [vmem:[#allocation8_spill] sm:$0xff]  ;;  %v9312_v31 = vpack.c.bf16 %v9257_v29, %v9258_v24  ;;  %v9318_v29 = vpack.c.bf16 %v9260_v63, %v9261_v1  ;;  %v8216_v24 = vpop.f32.mrf.mxu0  ;;  %v9324_v63 = vpack.c.bf16 %v9264_v57, %v9265_v40 }
 0x294   :  { %v8176_v18 = vpop.f32.mrf.mxu1  ;;  %6449 = vmatprep.subr.bf16.mxu1 %v6649_v62  ;;  %v9311_v12 = vpack.c.bf16 %v9309_v27, %v9310_v53  ;;  %v9315_v27 = vld [vmem:[#allocation22_spill] sm:$0xff]  ;;  %v9316_v53 = vld [vmem:[#allocation21_spill] sm:$0xff]  ;;  %9319 = vst [vmem:[#allocation46_spill] sm:$0xff] %v8216_v24  ;;  %v9330_v57 = vpack.c.bf16 %v9268_v23, %v9270_v52  ;;  %v9338_v23 = vpack.c.bf16 %v9273_v38, %v9275_v44 }
 0x295   :  { %v8222_v51 = vpop.f32.mrf.mxu0  ;;  %v9345_v38 = vpack.c.bf16 %v9278_v37, %v9281_v59  ;;  %v9352_v59 = vld [vmem:[#allocation13_spill] sm:$0xff] }
 0x296   :  { %v8180_v55 = vpop.f32.mrf.mxu1  ;;  %9320 = vst [vmem:[#allocation29_spill] sm:$0xff] %v8222_v51 }
 0x297   :  { %6450 = vmatpush3.bf16.msra.mxu1 %v6649_v62  ;;  %v8236_v1 = vpop.f32.mrf.mxu0 }
 0x298   :  { %v8184_v10 = vpop.f32.mrf.mxu1  ;;  %9325 = vst [vmem:[#allocation61_spill] sm:$0xff] %v8236_v1 }
 0x299   :  { %v8242_v51 = vpop.f32.mrf.mxu0 }
 0x29a   :  { %v8186_v14 = vpop.f32.mrf.mxu1  ;;  %6384 = vmatmul.mubr.msk.bf16.gmra.mxu1 %vm1969_vm6, %v9311_v12  ;;  %v9317_v12 = vpack.c.bf16 %v9315_v27, %v9316_v53  ;;  %v9321_v27 = vld [vmem:[#allocation26_spill] sm:$0xff]  ;;  %v9322_v53 = vld [vmem:[#allocation25_spill] sm:$0xff]  ;;  %9326 = vst [vmem:[#allocation60_spill] sm:$0xff] %v8242_v51 }
 0x29b   :  { %6387 = vmatprep.mubr.msk.bf16.mxu1 %vm1969_vm6, %v9312_v31  ;;  %v8256_v40 = vpop.f32.mrf.mxu0 }
 0x29c   :  { %v8198_v16 = vpop.f32.mrf.mxu1  ;;  %9331 = vst [vmem:[#allocation32_spill] sm:$0xff] %v8256_v40 }
 0x29d   :  { %v8260_v1 = vpop.f32.mrf.mxu0 }
 0x29e   :  { %v8200_v62 = vpop.f32.mrf.mxu1  ;;  %9332 = vst [vmem:[#allocation66_spill] sm:$0xff] %v8260_v1 }
 0x29f   :  { %v8266_v32 = vpop.f32.mrf.mxu0 }
 0x2a0   :  { %v8204_v45 = vpop.f32.mrf.mxu1  ;;  %9334 = vst [vmem:[#allocation45_spill] sm:$0xff] %v8266_v32 }
 0x2a2   :  { %v8206_v43 = vpop.f32.mrf.mxu1  ;;  %6388 = vmatmul.mubr.msk.bf16.gmra.mxu1 %vm1969_vm6, %v9317_v12  ;;  %v9323_v12 = vpack.c.bf16 %v9321_v27, %v9322_v53  ;;  %v9327_v27 = vld [vmem:[#allocation40_spill] sm:$0xff]  ;;  %v9328_v53 = vld [vmem:[#allocation39_spill] sm:$0xff] }
 0x2a3   :  { %6391 = vmatprep.mubr.msk.bf16.mxu1 %vm1969_vm6, %v9318_v29 }
 0x2a4   :  { %v8218_v31 = vpop.f32.mrf.mxu1 }
 0x2a6   :  { %v8220_v5 = vpop.f32.mrf.mxu1 }
 0x2a8   :  { %v8224_v34 = vpop.f32.mrf.mxu1 }
 0x2aa   :  { %v8226_v41 = vpop.f32.mrf.mxu1  ;;  %6392 = vmatmul.mubr.msk.bf16.gmra.mxu1 %vm1969_vm6, %v9323_v12  ;;  %v9329_v12 = vpack.c.bf16 %v9327_v27, %v9328_v53  ;;  %v9335_v53 = vld [vmem:[#allocation44_spill] sm:$0xff] }
 0x2ab   :  { %6395 = vmatprep.mubr.msk.bf16.mxu1 %vm1969_vm6, %v9324_v63 }
 0x2ac   :  { %v8238_v29 = vpop.f32.mrf.mxu1 }
 0x2ae   :  { %v8240_v24 = vpop.f32.mrf.mxu1 }
 0x2b0   :  { %v8244_v36 = vpop.f32.mrf.mxu1 }
 0x2b2   :  { %v8246_v20 = vpop.f32.mrf.mxu1  ;;  %6396 = vmatmul.mubr.msk.bf16.gmra.mxu1 %vm1969_vm6, %v9329_v12  ;;  %v9336_v12 = vld [vmem:[#allocation43_spill] sm:$0xff] }
 0x2b3   :  { %6399 = vmatprep.mubr.msk.bf16.mxu1 %vm1969_vm6, %v9330_v57  ;;  %v9337_v28 = vpack.c.bf16 %v9335_v53, %v9336_v12  ;;  %v8280_v57 = vpop.f32.mrf.mxu0  ;;  %v9342_v53 = vld [vmem:[#allocation59_spill] sm:$0xff]  ;;  %v9343_v12 = vld [vmem:[#allocation58_spill] sm:$0xff] }
 0x2b4   :  { %v8258_v63 = vpop.f32.mrf.mxu1  ;;  %9339 = vst [vmem:[#allocation49_spill] sm:$0xff] %v8280_v57 }
 0x2b5   :  { %v8286_v32 = vpop.f32.mrf.mxu0 }
 0x2b6   :  { %v8262_v51 = vpop.f32.mrf.mxu1  ;;  %9341 = vst [vmem:[#allocation68_spill] sm:$0xff] %v8286_v32 }
 0x2b8   :  { %v8264_v61 = vpop.f32.mrf.mxu1 }
 0x2b9   :  { %9333 = vst [vmem:[#allocation65_spill] sm:$0xff] %v8264_v61 }
 0x2ba   :  { %v8268_v27 = vpop.f32.mrf.mxu1  ;;  %6400 = vmatmul.mubr.msk.bf16.gmra.mxu1 %vm1969_vm6, %v9337_v28  ;;  %v9344_v28 = vpack.c.bf16 %v9342_v53, %v9343_v12  ;;  %v9349_v12 = vld [vmem:[#allocation63_spill] sm:$0xff] }
 0x2bb   :  { %6403 = vmatprep.mubr.msk.bf16.mxu1 %vm1969_vm6, %v9338_v23  ;;  %v8300_v23 = vpop.f32.mrf.mxu0 }
 0x2bc   :  { %v8278_v52 = vpop.f32.mrf.mxu1  ;;  %9346 = vst [vmem:[#allocation5_spill] sm:$0xff] %v8300_v23 }
 0x2bd   :  { %v8307_v39 = vpop.f32.mrf.mxu0 }
 0x2be   :  { %v8282_v1 = vpop.f32.mrf.mxu1  ;;  %9348 = vst [vmem:[#allocation4_spill] sm:$0xff] %v8307_v39 }
 0x2c0   :  { %v8284_v40 = vpop.f32.mrf.mxu1 }
 0x2c1   :  { %9340 = vst [vmem:[#allocation64_spill] sm:$0xff] %v8284_v40 }
 0x2c2   :  { %v8288_v61 = vpop.f32.mrf.mxu1  ;;  %6404 = vmatmul.mubr.msk.bf16.gmra.mxu1 %vm1969_vm6, %v9344_v28  ;;  %v9350_v28 = vld [vmem:[#allocation62_spill] sm:$0xff] }
 0x2c3   :  { %6407 = vmatprep.mubr.msk.bf16.mxu1 %vm1969_vm6, %v9345_v38  ;;  %v9351_v42 = vpack.c.bf16 %v9349_v12, %v9350_v28  ;;  %v9354_v28 = vld [vmem:[#allocation12_spill] sm:$0xff] }
 0x2c4   :  { %v8298_v44 = vpop.f32.mrf.mxu1 }
 0x2c6   :  { %v8302_v57 = vpop.f32.mrf.mxu1 }
 0x2c8   :  { %v2446_v40 = vpop.f32.mrf.mxu1 }
 0x2c9   :  { %v8305_v32 = vadd.f32 %v2446_v40, %v8140_v49  ;;  %v8321_v49 = vpop.f32.mrf.mxu0 }
 0x2ca   :  { %v6265_v53 = vpop.f32.mrf.mxu1  ;;  %6408 = vmatmul.mubr.msk.bf16.gmra.mxu1 %vm1969_vm6, %v9351_v42  ;;  %v2356_v42 = vadd.f32 %v8165_v13, %v7959_v7  ;;  %v2359_v7 = vadd.f32 %v8180_v55, %v7970_v50  ;;  %v9356_v50 = vld [vmem:[#allocation16_spill] sm:$0xff]  ;;  %v2364_v55 = vadd.f32 %v8198_v16, %v7982_v33  ;;  %v2388_v16 = vadd.f32 %v8206_v43, %v7995_v0 }
 0x2cb   :  { %9347 = vst [vmem:[#allocation3_spill] sm:$0xff] %v8305_v32  ;;  %v8314_v37 = vadd.f32 %v6265_v53, %v8144_v47  ;;  %6451 = vmatprep.mubr.msk.bf16.mxu1 %vm1969_vm6, %v9352_v59  ;;  %v8331_v53 = vpop.f32.mrf.mxu0  ;;  %v2391_v0 = vadd.f32 %v8220_v5, %v8007_v54  ;;  %v9360_v54 = vld [vmem:[#allocation33_spill] sm:$0xff]  ;;  %v2396_v5 = vadd.f32 %v8238_v29, %v8035_v30 }
 0x2cc   :  { %v2459_v38 = vpop.f32.mrf.mxu1  ;;  %9353 = vst [vmem:[#allocation2_spill] sm:$0xff] %v8331_v53  ;;  %v2420_v29 = vadd.f32 %v8246_v20, %v8061_v48  ;;  %v2423_v20 = vadd.f32 %v8262_v51, %v8080_v26  ;;  %v2428_v26 = vadd.f32 %v8278_v52, %v8106_v6  ;;  %v2452_v6 = vadd.f32 %v8288_v61, %v8125_v2 }
 0x2cd   :  { %v8319_v23 = vadd.f32 %v2459_v38, %v8152_v9  ;;  %v2348_v9 = vadd.f32 %v8176_v18, %v7965_v56  ;;  %v2372_v18 = vadd.f32 %v8186_v14, %v7978_v58  ;;  %v2375_v58 = vadd.f32 %v8200_v62, %v7987_v17  ;;  %v9358_v17 = vld [vmem:[#allocation30_spill] sm:$0xff] }
 0x2ce   :  { %v6266_v40 = vpop.f32.mrf.mxu1  ;;  %v2380_v62 = vadd.f32 %v8218_v31, %v8001_v4  ;;  %v2404_v31 = vadd.f32 %v8226_v41, %v8022_v8  ;;  %v2407_v8 = vadd.f32 %v8240_v24, %v8045_v25  ;;  %v9362_v25 = vld [vmem:[#allocation48_spill] sm:$0xff]  ;;  %v2412_v24 = vadd.f32 %v8258_v63, %v8070_v35 }
 0x2cf   :  { %v8324_v39 = vadd.f32 %v6266_v40, %v8156_v19  ;;  %v9355_v19 = vld [vmem:[#allocation17_spill] sm:$0xff]  ;;  %v2351_v40 = vadd.f32 %v8184_v10, %v7972_v21  ;;  %v9357_v21 = vld [vmem:[#allocation31_spill] sm:$0xff]  ;;  %v2436_v35 = vadd.f32 %v8268_v27, %v8099_v15 }
 0x2d0   :  { %v2462_v32 = vpop.f32.mrf.mxu1 }
 0x2d1   :  { %v8329_v47 = vadd.f32 %v2462_v32, %v8158_v22  ;;  %v8345_v22 = vpop.f32.mrf.mxu0 }
 0x2d2   :  { %v6273_v12 = vpop.f32.mrf.mxu1  ;;  %6452 = vmatmul.mubr.msk.bf16.vlgmr.msra.gmra.mxu1 %vm1969_vm6, %v9354_v28 }
 0x2d3   :  { %v8337_v59 = vadd.f32 %v6273_v12, %v2356_v42  ;;  %6455 = vmatprep.mubr.msk.bf16.mxu1 %vm1969_vm6, %v9355_v19  ;;  %v8355_v12 = vpop.f32.mrf.mxu0 }
 0x2d4   :  { %v2589_v38 = vpop.f32.mrf.mxu1 }
 0x2d5   :  { %v8343_v32 = vadd.f32 %v2589_v38, %v2348_v9  ;;  %v8369_v38 = vpop.f32.mrf.mxu0 }
 0x2d6   :  { %v6274_v13 = vpop.f32.mrf.mxu1 }
 0x2d7   :  { %v8349_v28 = vadd.f32 %v6274_v13, %v2359_v7  ;;  %v2367_v13 = vadd.f32 %v8204_v45, %v7989_v3  ;;  %v9359_v3 = vld [vmem:[#allocation34_spill] sm:$0xff] }
 0x2d8   :  { %v2592_v56 = vpop.f32.mrf.mxu1 }
 0x2d9   :  { %v8353_v42 = vadd.f32 %v2592_v56, %v2351_v40 }
 0x2da   :  { %v6277_v19 = vpop.f32.mrf.mxu1  ;;  %6456 = vmatmul.mubr.msk.bf16.gmra.mxu1 %vm1969_vm6, %v9356_v50 }
 0x2db   :  { %v8361_v9 = vadd.f32 %v6277_v19, %v2372_v18  ;;  %6459 = vmatprep.mubr.msk.bf16.mxu1 %vm1969_vm6, %v9357_v21  ;;  %v8379_v18 = vpop.f32.mrf.mxu0 }
 0x2dc   :  { %v2605_v10 = vpop.f32.mrf.mxu1 }
 0x2dd   :  { %v8367_v14 = vadd.f32 %v2605_v10, %v2364_v55  ;;  %v8393_v55 = vpop.f32.mrf.mxu0  ;;  %v2383_v10 = vadd.f32 %v8224_v34, %v8013_v11  ;;  %v9361_v11 = vld [vmem:[#allocation50_spill] sm:$0xff] }
 0x2de   :  { %v6278_v7 = vpop.f32.mrf.mxu1 }
 0x2df   :  { %v8373_v40 = vadd.f32 %v6278_v7, %v2375_v58 }
 0x2e0   :  { %v2608_v33 = vpop.f32.mrf.mxu1 }
 0x2e1   :  { %v8377_v56 = vadd.f32 %v2608_v33, %v2367_v13  ;;  %v8403_v13 = vpop.f32.mrf.mxu0 }
 0x2e2   :  { %v6281_v19 = vpop.f32.mrf.mxu1  ;;  %6460 = vmatmul.mubr.msk.bf16.gmra.mxu1 %vm1969_vm6, %v9358_v17 }
 0x2e3   :  { %v8385_v50 = vadd.f32 %v6281_v19, %v2388_v16  ;;  %6463 = vmatprep.mubr.msk.bf16.mxu1 %vm1969_vm6, %v9359_v3  ;;  %v8417_v19 = vpop.f32.mrf.mxu0 }
 0x2e4   :  { %v2621_v45 = vpop.f32.mrf.mxu1 }
 0x2e5   :  { %v8391_v43 = vadd.f32 %v2621_v45, %v2380_v62  ;;  %v2399_v62 = vadd.f32 %v8244_v36, %v8055_v60  ;;  %v9363_v60 = vld [vmem:[#allocation52_spill] sm:$0xff] }
 0x2e6   :  { %v6282_v21 = vpop.f32.mrf.mxu1 }
 0x2e7   :  { %v8397_v58 = vadd.f32 %v6282_v21, %v2391_v0  ;;  %v8427_v0 = vpop.f32.mrf.mxu0 }
 0x2e8   :  { %v2624_v4 = vpop.f32.mrf.mxu1 }
 0x2e9   :  { %v8401_v7 = vadd.f32 %v2624_v4, %v2383_v10  ;;  %v8441_v4 = vpop.f32.mrf.mxu0 }
 0x2ea   :  { %v6285_v33 = vpop.f32.mrf.mxu1  ;;  %6464 = vmatmul.mubr.msk.bf16.gmra.mxu1 %vm1969_vm6, %v9360_v54 }
 0x2eb   :  { %v8409_v16 = vadd.f32 %v6285_v33, %v2404_v31  ;;  %6467 = vmatprep.mubr.msk.bf16.mxu1 %vm1969_vm6, %v9361_v11  ;;  %v8449_v63 = vpop.f32.mrf.mxu0  ;;  %v9364_v11 = vld [vmem:[#allocation51_spill] sm:$0xff] }
 0x2ec   :  { %v2637_v34 = vpop.f32.mrf.mxu1 }
 0x2ed   :  { %v8415_v41 = vadd.f32 %v2637_v34, %v2396_v5  ;;  %v9365_v34 = vld [vmem:[#allocation69_spill] sm:$0xff]  ;;  %v8463_v15 = vpop.f32.mrf.mxu0 }
 0x2ee   :  { %v6286_v17 = vpop.f32.mrf.mxu1 }
 0x2ef   :  { %v8421_v3 = vadd.f32 %v6286_v17, %v2407_v8  ;;  %v2439_v17 = vadd.f32 %v8282_v1, %v8114_v46  ;;  %v8471_v52 = vpop.f32.mrf.mxu0 }
 0x2f0   :  { %v2640_v30 = vpop.f32.mrf.mxu1 }
 0x2f1   :  { %v8425_v45 = vadd.f32 %v2640_v30, %v2399_v62  ;;  %v8485_v61 = vpop.f32.mrf.mxu0 }
 0x2f2   :  { %v6289_v21 = vpop.f32.mrf.mxu1  ;;  %6468 = vmatmul.mubr.msk.bf16.gmra.mxu1 %vm1969_vm6, %v9362_v25  ;;  %v9366_v25 = vld [vmem:[#allocation67_spill] sm:$0xff]  ;;  %9370 = vst [vmem:[#allocation10_spill] sm:$0xff] %v8485_v61 }
 0x2f3   :  { %v8433_v10 = vadd.f32 %v6289_v21, %v2420_v29  ;;  %6471 = vmatprep.mubr.msk.bf16.mxu1 %vm1969_vm6, %v9363_v60  ;;  %v9368_v60 = vld [vmem:[#allocation71_spill] sm:$0xff] }
 0x2f4   :  { %v2653_v36 = vpop.f32.mrf.mxu1 }
 0x2f5   :  { %v8439_v48 = vadd.f32 %v2653_v36, %v2412_v24  ;;  %v9367_v24 = vld [vmem:[#allocation23_spill] sm:$0xff] }
 0x2f6   :  { %v6290_v31 = vpop.f32.mrf.mxu1  ;;  %v2444_v46 = vadd.f32 %v8298_v44, %v9367_v24 }
 0x2f7   :  { %v8443_v33 = vadd.f32 %v6290_v31, %v2423_v20  ;;  %v9369_v20 = vld [vmem:[#allocation11_spill] sm:$0xff] }
 0x2f8   :  { %v8445_v54 = vpop.f32.mrf.mxu1  ;;  %v2455_v31 = vadd.f32 %v8302_v57, %v9369_v20 }
 0x2fa   :  { %v6293_v5 = vpop.f32.mrf.mxu1  ;;  %6472 = vmatmul.mubr.msk.bf16.gmra.mxu1 %vm1969_vm6, %v9364_v11 }
 0x2fb   :  { %v8455_v51 = vadd.f32 %v6293_v5, %v2436_v35  ;;  %6475 = vmatprep.mubr.msk.bf16.mxu1 %vm1969_vm6, %v9365_v34  ;;  %v9372_v34 = vld [vmem:[#allocation70_spill] sm:$0xff] }
 0x2fc   :  { %v2669_v8 = vpop.f32.mrf.mxu1 }
 0x2fd   :  { %v8461_v62 = vadd.f32 %v2669_v8, %v2428_v26  ;;  %v8491_v26 = vpop.f32.mrf.mxu0 }
 0x2fe   :  { %v6294_v27 = vpop.f32.mrf.mxu1  ;;  %9371 = vst [vmem:[#allocation7_spill] sm:$0xff] %v8491_v26 }
 0x2ff   :  { %v8465_v30 = vadd.f32 %v6294_v27, %v2439_v17  ;;  %v8501_v27 = vpop.f32.mrf.mxu0 }
 0x300   :  { %v8467_v29 = vpop.f32.mrf.mxu1  ;;  %9373 = vst [vmem:[#allocation8_spill] sm:$0xff] %v8501_v27 }
 0x302   :  { %v6297_v21 = vpop.f32.mrf.mxu1  ;;  %6476 = vmatmul.mubr.msk.bf16.gmra.mxu1 %vm1969_vm6, %v9366_v25 }
 0x303   :  { %v8477_v1 = vadd.f32 %v6297_v21, %v2452_v6  ;;  %6479 = vmatprep.mubr.msk.bf16.mxu1 %vm1969_vm6, %v9368_v60 }
 0x304   :  { %v2685_v36 = vpop.f32.mrf.mxu1 }
 0x305   :  { %v8483_v35 = vadd.f32 %v2685_v36, %v2444_v46  ;;  %v8509_v46 = vpop.f32.mrf.mxu0 }
 0x306   :  { %v6298_v2 = vpop.f32.mrf.mxu1  ;;  %9374 = vst [vmem:[#allocation6_spill] sm:$0xff] %v8509_v46 }
 0x307   :  { %v8487_v5 = vadd.f32 %v6298_v2, %v2455_v31  ;;  %v8517_v20 = vpop.f32.mrf.mxu0 }
 0x308   :  { %v8489_v11 = vpop.f32.mrf.mxu1  ;;  %9375 = vst [vmem:[#allocation22_spill] sm:$0xff] %v8517_v20 }
 0x30a   :  { %v6301_v44 = vpop.f32.mrf.mxu1  ;;  %6480 = vmatmul.mubr.msk.bf16.gmra.mxu1 %vm1969_vm6, %v9372_v34 }
 0x30b   :  { %v8496_v8 = vadd.f32 %v6301_v44, %v8314_v37  ;;  %v8525_v44 = vpop.f32.mrf.mxu0 }
 0x30c   :  { %v2701_v17 = vpop.f32.mrf.mxu1  ;;  %9376 = vst [vmem:[#allocation21_spill] sm:$0xff] %v8525_v44 }
 0x30d   :  { %v8499_v57 = vadd.f32 %v2701_v17, %v8319_v23 }
 0x30e   :  { %v6302_v6 = vpop.f32.mrf.mxu1 }
 0x30f   :  { %v8504_v21 = vadd.f32 %v6302_v6, %v8324_v39  ;;  %v8533_v6 = vpop.f32.mrf.mxu0 }
 0x310   :  { %v2704_v25 = vpop.f32.mrf.mxu1  ;;  %9377 = vst [vmem:[#allocation26_spill] sm:$0xff] %v8533_v6  ;;  %v9383_v6 = vld [vmem:[#allocation20_spill] sm:$0xff] }
 0x311   :  { %v8507_v24 = vadd.f32 %v2704_v25, %v8329_v47 }
 0x312   :  { %v6309_v60 = vpop.f32.mrf.mxu1 }
 0x313   :  { %v8512_v37 = vadd.f32 %v6309_v60, %v8337_v59 }
 0x314   :  { %v3247_v36 = vpop.f32.mrf.mxu1 }
 0x315   :  { %v8515_v23 = vadd.f32 %v3247_v36, %v8343_v32  ;;  %v8541_v36 = vpop.f32.mrf.mxu0 }
 0x316   :  { %v6310_v31 = vpop.f32.mrf.mxu1  ;;  %9378 = vst [vmem:[#allocation25_spill] sm:$0xff] %v8541_v36 }
 0x317   :  { %v8520_v39 = vadd.f32 %v6310_v31, %v8349_v28 }
 0x318   :  { %v3250_v2 = vpop.f32.mrf.mxu1 }
 0x319   :  { %v8523_v47 = vadd.f32 %v3250_v2, %v8353_v42 }
 0x31a   :  { %v6313_v34 = vpop.f32.mrf.mxu1 }
 0x31b   :  { %v8528_v59 = vadd.f32 %v6313_v34, %v8361_v9  ;;  %v8549_v34 = vpop.f32.mrf.mxu0 }
 0x31c   :  { %v3263_v17 = vpop.f32.mrf.mxu1  ;;  %9379 = vst [vmem:[#allocation40_spill] sm:$0xff] %v8549_v34 }
 0x31d   :  { %v8531_v32 = vadd.f32 %v3263_v17, %v8367_v14 }
 0x31e   :  { %v6314_v25 = vpop.f32.mrf.mxu1 }
 0x31f   :  { %v8536_v28 = vadd.f32 %v6314_v25, %v8373_v40 }
 0x320   :  { %v3266_v60 = vpop.f32.mrf.mxu1 }
 0x321   :  { %v8539_v42 = vadd.f32 %v3266_v60, %v8377_v56  ;;  %v8557_v60 = vpop.f32.mrf.mxu0 }
 0x322   :  { %v6317_v31 = vpop.f32.mrf.mxu1  ;;  %9380 = vst [vmem:[#allocation39_spill] sm:$0xff] %v8557_v60 }
 0x323   :  { %v8544_v9 = vadd.f32 %v6317_v31, %v8385_v50 }
 0x324   :  { %v3279_v2 = vpop.f32.mrf.mxu1 }
 0x325   :  { %v8547_v14 = vadd.f32 %v3279_v2, %v8391_v43  ;;  %v8565_v2 = vpop.f32.mrf.mxu0 }
 0x326   :  { %v6318_v17 = vpop.f32.mrf.mxu1  ;;  %9381 = vst [vmem:[#allocation44_spill] sm:$0xff] %v8565_v2 }
 0x327   :  { %v8552_v40 = vadd.f32 %v6318_v17, %v8397_v58 }
 0x328   :  { %v3282_v25 = vpop.f32.mrf.mxu1 }
 0x329   :  { %v8555_v56 = vadd.f32 %v3282_v25, %v8401_v7  ;;  %v8573_v25 = vpop.f32.mrf.mxu0 }
 0x32a   :  { %v6321_v36 = vpop.f32.mrf.mxu1  ;;  %9382 = vst [vmem:[#allocation43_spill] sm:$0xff] %v8573_v25 }
 0x32b   :  { %v8560_v50 = vadd.f32 %v6321_v36, %v8409_v16  ;;  %v8583_v44 = vpop.f32.mrf.mxu0 }
 0x32c   :  { %v3295_v31 = vpop.f32.mrf.mxu1  ;;  %9385 = vst [vmem:[#allocation59_spill] sm:$0xff] %v8583_v44 }
 0x32d   :  { %v8563_v43 = vadd.f32 %v3295_v31, %v8415_v41  ;;  %v9384_v41 = vld [vmem:[#allocation65_spill] sm:$0xff] }
 0x32e   :  { %v6322_v34 = vpop.f32.mrf.mxu1  ;;  %v2415_v31 = vadd.f32 %v9384_v41, %v9383_v6 }
 0x32f   :  { %v8568_v58 = vadd.f32 %v6322_v34, %v8421_v3 }
 0x330   :  { %v3298_v17 = vpop.f32.mrf.mxu1  ;;  %v2733_v34 = vadd.f32 %v8445_v54, %v2415_v31 }
 0x331   :  { %v8571_v7 = vadd.f32 %v3298_v17, %v8425_v45 }
 0x332   :  { %v6325_v60 = vpop.f32.mrf.mxu1 }
 0x333   :  { %v8576_v16 = vadd.f32 %v6325_v60, %v8433_v10  ;;  %v8591_v10 = vpop.f32.mrf.mxu0 }
 0x334   :  { %v3311_v36 = vpop.f32.mrf.mxu1 }
 0x335   :  { %v8581_v2 = vadd.f32 %v3311_v36, %v8439_v48  ;;  %v9386_v48 = vld [vmem:[#allocation57_spill] sm:$0xff]  ;;  %v9387_v36 = vld [vmem:[#allocation64_spill] sm:$0xff]  ;;  %v8601_v54 = vpop.f32.mrf.mxu0 }
 0x336   :  { %v6326_v3 = vpop.f32.mrf.mxu1  ;;  %v2431_v41 = vadd.f32 %v9387_v36, %v9386_v48  ;;  %9388 = vst [vmem:[#allocation58_spill] sm:$0xff] %v8601_v54 }
 0x337   :  { %v8587_v45 = vadd.f32 %v6326_v3, %v8443_v33 }
 0x338   :  { %v3314_v17 = vpop.f32.mrf.mxu1  ;;  %v2737_v31 = vadd.f32 %v8467_v29, %v2431_v41  ;;  %v9391_v29 = vld [vmem:[#allocation3_spill] sm:$0xff] }
 0x339   :  { %v8589_v25 = vadd.f32 %v3314_v17, %v2733_v34 }
 0x33a   :  { %v6329_v60 = vpop.f32.mrf.mxu1 }
 0x33b   :  { %v8594_v20 = vadd.f32 %v6329_v60, %v8455_v51  ;;  %v8609_v51 = vpop.f32.mrf.mxu0 }
 0x33c   :  { %v3327_v6 = vpop.f32.mrf.mxu1  ;;  %9389 = vst [vmem:[#allocation63_spill] sm:$0xff] %v8609_v51 }
 0x33d   :  { %v8599_v44 = vadd.f32 %v3327_v6, %v8461_v62  ;;  %v8617_v6 = vpop.f32.mrf.mxu0 }
 0x33e   :  { %v6330_v33 = vpop.f32.mrf.mxu1  ;;  %9390 = vst [vmem:[#allocation62_spill] sm:$0xff] %v8617_v6 }
 0x33f   :  { %v8605_v3 = vadd.f32 %v6330_v33, %v8465_v30  ;;  %v2741_v30 = vadd.f32 %v8489_v11, %v9391_v29  ;;  %v9397_v29 = vld [vmem:[#allocation35_spill] sm:$0xff] }
 0x340   :  { %v3330_v34 = vpop.f32.mrf.mxu1 }
 0x341   :  { %v8607_v17 = vadd.f32 %v3330_v34, %v2737_v31  ;;  %v8626_v34 = vpop.f32.mrf.mxu0 }
 0x342   :  { %v6333_v60 = vpop.f32.mrf.mxu1  ;;  %9393 = vst [vmem:[#allocation12_spill] sm:$0xff] %v8626_v34 }
 0x343   :  { %v8612_v46 = vadd.f32 %v6333_v60, %v8477_v1  ;;  %v8634_v6 = vpop.f32.mrf.mxu0 }
 0x344   :  { %v3343_v48 = vpop.f32.mrf.mxu1  ;;  %9395 = vst [vmem:[#allocation16_spill] sm:$0xff] %v8634_v6  ;;  %v9157_v6 = vmov 0.0  }
 0x345   :  { %v8615_v62 = vadd.f32 %v3343_v48, %v8483_v35  ;;  %6519 = vmatprep.subr.bf16.mxu1 %v9157_v6 }
 0x346   :  { %v6334_v36 = vpop.f32.mrf.mxu1 }
 0x347   :  { %v8622_v41 = vadd.f32 %v6334_v36, %v8487_v5 }
 0x348   :  { %v3346_v33 = vpop.f32.mrf.mxu1 }
 0x349   :  { %v8624_v31 = vadd.f32 %v3346_v33, %v2741_v30  ;;  %v3650_v30 = vadd.f32 %v9397_v29, %v8512_v37  ;;  %v8644_v33 = vpop.f32.mrf.mxu0  ;;  %v9400_v37 = vld [vmem:[#allocation55_spill] sm:$0xff] }
 0x34a   :  { %v6337_v1 = vpop.f32.mrf.mxu1  ;;  %9398 = vst [vmem:[#allocation30_spill] sm:$0xff] %v8644_v33 }
 0x34b   :  { %9392 = vst [vmem:[#allocation13_spill] sm:$0xff] %v8624_v31  ;;  %v8629_v60 = vadd.f32 %v6337_v1, %v8496_v8  ;;  %v8658_v29 = vpop.f32.mrf.mxu0 }
 0x34c   :  { %v3359_v35 = vpop.f32.mrf.mxu1 }
 0x34d   :  { %v8632_v48 = vadd.f32 %v3359_v35, %v8499_v57  ;;  %v9399_v57 = vld [vmem:[#allocation53_spill] sm:$0xff]  ;;  %v8669_v54 = vpop.f32.mrf.mxu0 }
 0x34e   :  { %v6338_v51 = vpop.f32.mrf.mxu1  ;;  %v3648_v35 = vadd.f32 %v9399_v57, %v8515_v23 }
 0x34f   :  { %9394 = vst [vmem:[#allocation17_spill] sm:$0xff] %v8632_v48  ;;  %v8637_v11 = vadd.f32 %v6338_v51, %v8504_v21  ;;  %v6650_v21 = vld [vmem:[%s9082_s5 + $0x18] sm:$0xff]  }
 0x350   :  { %v3362_v5 = vpop.f32.mrf.mxu1  ;;  %6520 = vmatpush3.bf16.msra.mxu1 %v6650_v21 }
 0x351   :  { %v8640_v36 = vadd.f32 %v3362_v5, %v8507_v24  ;;  %v3651_v5 = vadd.f32 %v9400_v37, %v8520_v39  ;;  %6521 = vmatprep.subr.bf16.mxu1 %v9157_v6  ;;  %v9403_v37 = vld [vmem:[#allocation54_spill] sm:$0xff] }
 0x352   :  { %v6381_v8 = vpop.f32.mrf.mxu1  ;;  %v3652_v27 = vadd.f32 %v9403_v37, %v8531_v32 }
 0x353   :  { %9396 = vst [vmem:[#allocation31_spill] sm:$0xff] %v8640_v36  ;;  %v8646_v1 = vadd.f32 %v6381_v8, %v3650_v30  ;;  %v9401_v8 = vld [vmem:[#allocation18_spill] sm:$0xff] }
 0x354   :  { %v3795_v24 = vpop.f32.mrf.mxu1  ;;  %v3649_v57 = vadd.f32 %v9401_v8, %v8523_v47  ;;  %v8679_v8 = vpop.f32.mrf.mxu0 }
 0x355   :  { %v8654_v51 = vadd.f32 %v3795_v24, %v3648_v35  ;;  %v9402_v35 = vld [vmem:[#allocation19_spill] sm:$0xff] }
 0x356   :  { %v6382_v30 = vpop.f32.mrf.mxu1  ;;  %v3654_v24 = vadd.f32 %v9402_v35, %v8528_v59  ;;  %v9405_v59 = vld [vmem:[#allocation37_spill] sm:$0xff]  ;;  %v8689_v37 = vpop.f32.mrf.mxu0 }
 0x357   :  { %v8661_v23 = vadd.f32 %v6382_v30, %v3651_v5  ;;  %v9404_v30 = vld [vmem:[#allocation36_spill] sm:$0xff]  ;;  %v3653_v35 = vadd.f32 %v9405_v59, %v8539_v42 }
 0x358   :  { %v3798_v33 = vpop.f32.mrf.mxu1  ;;  %v3655_v47 = vadd.f32 %v9404_v30, %v8536_v28  ;;  %v9407_v28 = vld [vmem:[#allocation56_spill] sm:$0xff] }
 0x359   :  { %v8665_v34 = vadd.f32 %v3798_v33, %v3649_v57  ;;  %v3656_v30 = vadd.f32 %v9407_v28, %v8547_v14  ;;  %v9410_v14 = vld [vmem:[#allocation28_spill] sm:$0xff] }
 0x35a   :  { %v6385_v39 = vpop.f32.mrf.mxu1 }
 0x35b   :  { %v8671_v21 = vadd.f32 %v6385_v39, %v3654_v24  ;;  %v9406_v39 = vld [vmem:[#allocation38_spill] sm:$0xff] }
 0x35c   :  { %v3811_v6 = vpop.f32.mrf.mxu1  ;;  %v3658_v32 = vadd.f32 %v9406_v39, %v8544_v9  ;;  %v8702_v9 = vpop.f32.mrf.mxu0  ;;  %v9409_v39 = vmov 0.0  }
 0x35d   :  { %v8675_v5 = vadd.f32 %v3811_v6, %v3652_v27  ;;  %6527 = vmatprep.mubr.msk.bf16.mxu1 %vm6669_vm7, %v9409_v39 }
 0x35e   :  { %v6386_v33 = vpop.f32.mrf.mxu1  ;;  %v8713_v48 = vpop.f32.mrf.mxu0 }
 0x35f   :  { %v8681_v57 = vadd.f32 %v6386_v33, %v3655_v47  ;;  %v6651_v47 = vld [vmem:[%s9082_s5 + $0x10] sm:$0xff]  }
 0x360   :  { %v3814_v53 = vpop.f32.mrf.mxu1  ;;  %6522 = vmatpush3.bf16.msra.mxu1 %v6651_v47 }
 0x361   :  { %v8685_v24 = vadd.f32 %v3814_v53, %v3653_v35  ;;  %v9408_v53 = vld [vmem:[#allocation24_spill] sm:$0xff]  ;;  %6523 = vmatprep.subr.bf16.mxu1 %v9409_v39 }
 0x362   :  { %v6389_v27 = vpop.f32.mrf.mxu1  ;;  %v3659_v59 = vadd.f32 %v9408_v53, %v8552_v40  ;;  %v9412_v53 = vld [vmem:[#allocation9_spill] sm:$0xff] }
 0x363   :  { %v8691_v6 = vadd.f32 %v6389_v27, %v3658_v32  ;;  %v3657_v27 = vadd.f32 %v9410_v14, %v8555_v56  ;;  %v3660_v26 = vadd.f32 %v9412_v53, %v8563_v43  ;;  %v8723_v14 = vpop.f32.mrf.mxu0 }
 0x364   :  { %v3827_v33 = vpop.f32.mrf.mxu1 }
 0x365   :  { %v8698_v42 = vadd.f32 %v3827_v33, %v3656_v30  ;;  %v9411_v30 = vld [vmem:[#allocation27_spill] sm:$0xff]  ;;  %v8733_v53 = vpop.f32.mrf.mxu0 }
 0x366   :  { %v6390_v35 = vpop.f32.mrf.mxu1  ;;  %v3662_v33 = vadd.f32 %v9411_v30, %v8560_v50  ;;  %v9414_v50 = vld [vmem:[#allocation42_spill] sm:$0xff] }
 0x367   :  { %v8705_v32 = vadd.f32 %v6390_v35, %v3659_v59  ;;  %v9413_v35 = vld [vmem:[#allocation15_spill] sm:$0xff]  ;;  %v3661_v30 = vadd.f32 %v9414_v50, %v8571_v7  ;;  %v6653_v7 = vld [vmem:[%s9082_s5] sm:$0xff]  }
 0x368   :  { %v3830_v28 = vpop.f32.mrf.mxu1  ;;  %v3663_v56 = vadd.f32 %v9413_v35, %v8568_v58  ;;  %v6652_v58 = vld [vmem:[%s9082_s5 + $0x8] sm:$0xff]   ;;  %v9417_v35 = vld [vmem:[#allocation14_spill] sm:$0xff] }
 0x369   :  { %v8709_v36 = vadd.f32 %v3830_v28, %v3657_v27  ;;  %6524 = vmatpush3.bf16.msra.mxu1 %v6652_v58 }
 0x36a   :  { %v6393_v40 = vpop.f32.mrf.mxu1  ;;  %6525 = vmatprep.subr.bf16.mxu1 %v9409_v39 }
 0x36b   :  { %v8715_v47 = vadd.f32 %v6393_v40, %v3662_v33  ;;  %v9415_v40 = vld [vmem:[#allocation41_spill] sm:$0xff] }
 0x36c   :  { %v3843_v31 = vpop.f32.mrf.mxu1  ;;  %v3666_v43 = vadd.f32 %v9415_v40, %v8576_v16 }
 0x36d   :  { %v8719_v59 = vadd.f32 %v3843_v31, %v3660_v26  ;;  %6526 = vmatpush3.bf16.msra.mxu1 %v6653_v7 }
 0x36e   :  { %v6394_v27 = vpop.f32.mrf.mxu1  ;;  %6531 = vmatprep.subr.bf16.mxu1 %v9409_v39 }
 0x36f   :  { %v8725_v28 = vadd.f32 %v6394_v27, %v3663_v56  ;;  %v3664_v56 = vadd.f32 %v9417_v35, %v8581_v2  ;;  %v9419_v27 = vld [vmem:[#allocation47_spill] sm:$0xff] }
 0x370   :  { %v3846_v61 = vpop.f32.mrf.mxu1  ;;  %v3667_v50 = vadd.f32 %v9419_v27, %v8587_v45 }
 0x371   :  { %v8729_v33 = vadd.f32 %v3846_v61, %v3661_v30  ;;  %v8752_v30 = vpop.f32.mrf.mxu0 }
 0x372   :  { %v6397_v26 = vpop.f32.mrf.mxu1 }
 0x373   :  { %v8738_v31 = vadd.f32 %v6397_v26, %v3666_v43  ;;  %v9421_v43 = vld [vmem:[#allocation46_spill] sm:$0xff]  ;;  %v8763_v45 = vpop.f32.mrf.mxu0 }
 0x374   :  { %v3859_v61 = vpop.f32.mrf.mxu1  ;;  %v3665_v26 = vadd.f32 %v9421_v43, %v8589_v25  ;;  %v9425_v25 = vld [vmem:[#allocation60_spill] sm:$0xff] }
 0x375   :  { %9416 = vst [vmem:[#allocation34_spill] sm:$0xff] %v8738_v31  ;;  %v8747_v16 = vadd.f32 %v3859_v61, %v3664_v56  ;;  %v9422_v56 = vld [vmem:[#allocation29_spill] sm:$0xff]  ;;  %v3671_v7 = vadd.f32 %v9425_v25, %v8605_v3  ;;  %v8773_v43 = vpop.f32.mrf.mxu0 }
 0x376   :  { %v6398_v2 = vpop.f32.mrf.mxu1  ;;  %v3670_v61 = vadd.f32 %v9422_v56, %v8594_v20  ;;  %v9429_v3 = vld [vmem:[#allocation45_spill] sm:$0xff] }
 0x377   :  { %9418 = vst [vmem:[#allocation33_spill] sm:$0xff] %v8747_v16  ;;  %v8754_v40 = vadd.f32 %v6398_v2, %v3667_v50  ;;  %v9423_v50 = vld [vmem:[#allocation61_spill] sm:$0xff]  ;;  %v3672_v25 = vadd.f32 %v9429_v3, %v8615_v62 }
 0x378   :  { %v3862_v58 = vpop.f32.mrf.mxu1  ;;  %v3668_v2 = vadd.f32 %v9423_v50, %v8599_v44  ;;  %v8783_v50 = vpop.f32.mrf.mxu0 }
 0x379   :  { %9420 = vst [vmem:[#allocation50_spill] sm:$0xff] %v8754_v40  ;;  %v8758_v35 = vadd.f32 %v3862_v58, %v3665_v26  ;;  %v9427_v58 = vld [vmem:[#allocation32_spill] sm:$0xff] }
 0x37a   :  { %v6401_v27 = vpop.f32.mrf.mxu1  ;;  %v3669_v56 = vadd.f32 %v9427_v58, %v8607_v17  ;;  %v8791_v17 = vpop.f32.mrf.mxu0 }
 0x37b   :  { %v8765_v16 = vadd.f32 %v6401_v27, %v3670_v61  ;;  %v9428_v27 = vld [vmem:[#allocation66_spill] sm:$0xff] }
 0x37c   :  { %v3875_v40 = vpop.f32.mrf.mxu1  ;;  %v3674_v44 = vadd.f32 %v9428_v27, %v8612_v46  ;;  %v9432_v27 = vld [vmem:[#allocation5_spill] sm:$0xff] }
 0x37d   :  { %v8769_v31 = vadd.f32 %v3875_v40, %v3668_v2 }
 0x37e   :  { %v6402_v26 = vpop.f32.mrf.mxu1 }
 0x37f   :  { %9424 = vst [vmem:[#allocation48_spill] sm:$0xff] %v8769_v31  ;;  %v8775_v20 = vadd.f32 %v6402_v26, %v3671_v7  ;;  %v9430_v26 = vld [vmem:[#allocation49_spill] sm:$0xff] }
 0x380   :  { %v3878_v39 = vpop.f32.mrf.mxu1 }
 0x381   :  { %9426 = vst [vmem:[#allocation52_spill] sm:$0xff] %v8775_v20  ;;  %v8779_v61 = vadd.f32 %v3878_v39, %v3669_v56  ;;  %v3675_v20 = vadd.f32 %v9430_v26, %v8622_v41  ;;  %v3679_v41 = vadd.f32 %v8321_v49, %v8637_v11  ;;  %v4247_v49 = vadd.f32 %v8369_v38, %v8661_v23 }
 0x382   :  { %v6405_v40 = vpop.f32.mrf.mxu1 }
 0x383   :  { %v8785_v2 = vadd.f32 %v6405_v40, %v3674_v44  ;;  %v3678_v44 = vadd.f32 %v9432_v27, %v8629_v60  ;;  %v8802_v40 = vpop.f32.mrf.mxu0  ;;  %v4246_v60 = vadd.f32 %v8345_v22, %v8646_v1  ;;  %v4245_v1 = vadd.f32 %v8379_v18, %v8665_v34 }
 0x384   :  { %v3891_v31 = vpop.f32.mrf.mxu1  ;;  %v4248_v34 = vadd.f32 %v8403_v13, %v8675_v5  ;;  %v4249_v13 = vadd.f32 %v8427_v0, %v8685_v24 }
 0x385   :  { %v3946_v7 = vadd.f32 %v3891_v31, %v3672_v25 }
 0x386   :  { %v6406_v39 = vpop.f32.mrf.mxu1 }
 0x387   :  { %v8793_v58 = vadd.f32 %v6406_v39, %v3675_v20  ;;  %v8796_v46 = vadd.f32 %v8591_v10, %v3946_v7  ;;  %v8810_v20 = vpop.f32.mrf.mxu0 }
 0x388   :  { %v8798_v56 = vpop.f32.mrf.mxu1 }
 0x389   :  { %9431 = vst [vmem:[#allocation51_spill] sm:$0xff] %v8796_v46  ;;  %v8818_v26 = vpop.f32.mrf.mxu0 }
 0x38a   :  { %v6409_v62 = vpop.f32.mrf.mxu1 }
 0x38b   :  { %v8804_v31 = vadd.f32 %v6409_v62, %v3678_v44  ;;  %v4244_v44 = vadd.f32 %v8355_v12, %v8654_v51  ;;  %v8824_v11 = vpop.f32.mrf.mxu0  ;;  %v8833_v12 = vld [vmem:[%s9084_s4] ss:$0 sm:$0xff] }
 0x38c   :  { %v8806_v3 = vpop.f32.mrf.mxu1 }
 0x38e   :  { %v6410_v25 = vpop.f32.mrf.mxu1 }
 0x38f   :  { %v8812_v10 = vadd.f32 %v6410_v25, %v3679_v41 }
 0x390   :  { %v8814_v7 = vpop.f32.mrf.mxu1 }
 0x391   :  { %9433 = vst [vmem:[#allocation69_spill] sm:$0xff] %v8812_v10 }
 0x392   :  { %v6453_v39 = vpop.f32.mrf.mxu1 }
 0x393   :  { %v4520_v27 = vadd.f32 %v6453_v39, %v4246_v60  ;;  %v8837_v39 = vpop.f32.mrf.mxu0 }
 0x394   :  { %v4391_v62 = vpop.f32.mrf.mxu1 }
 0x395   :  { %v4518_v46 = vadd.f32 %v4391_v62, %v4244_v44  ;;  %v4794_v25 = vadd.f32 %v8658_v29, %v4520_v27 }
 0x396   :  { %v6454_v41 = vpop.f32.mrf.mxu1 }
 0x397   :  { %v4792_v10 = vadd.f32 %v8669_v54, %v4518_v46  ;;  %v4521_v22 = vadd.f32 %v6454_v41, %v4247_v49  ;;  %v4250_v54 = vadd.f32 %v8393_v55, %v8671_v21  ;;  %v4833_v46 = vadd.f32 %v8833_v12, %v4794_v25  ;;  %v8849_v55 = vpop.f32.mrf.mxu0 }
 0x398   :  { %v4394_v51 = vpop.f32.mrf.mxu1  ;;  %v4251_v41 = vadd.f32 %v8417_v19, %v8681_v57  ;;  %v4254_v19 = vadd.f32 %v8441_v4, %v8691_v6  ;;  %v4252_v6 = vadd.f32 %v8449_v63, %v8698_v42 }
 0x399   :  { %v4831_v60 = vadd.f32 %v8833_v12, %v4792_v10  ;;  %v4795_v38 = vadd.f32 %v8679_v8, %v4521_v22  ;;  %v4519_v23 = vadd.f32 %v4394_v51, %v4245_v1  ;;  %v4865_v5 = vmax.f32 %v4833_v46, 0.0  ;;  %v8861_v0 = vpop.f32.mrf.mxu0 }
 0x39a   :  { %v6457_v29 = vpop.f32.mrf.mxu1 }
 0x39b   :  { %v4793_v18 = vadd.f32 %v8689_v37, %v4519_v23  ;;  %v4863_v27 = vmax.f32 %v4831_v60, 0.0  ;;  %v4834_v44 = vadd.f32 %v8833_v12, %v4795_v38  ;;  %v4524_v10 = vadd.f32 %v6457_v29, %v4250_v54 }
 0x39c   :  { %v4407_v62 = vpop.f32.mrf.mxu1  ;;  %v4899_v46 = vsel %vm4895_vm8, %v4865_v5, 0.0 }
 0x39d   :  { %v4832_v8 = vadd.f32 %v8833_v12, %v4793_v18  ;;  %v4522_v49 = vadd.f32 %v4407_v62, %v4248_v34  ;;  %v4798_v21 = vadd.f32 %v8702_v9, %v4524_v10  ;;  %v4896_v51 = vsel %vm4895_vm8, %v4863_v27, 0.0 }
 0x39e   :  { %v6458_v37 = vpop.f32.mrf.mxu1  ;;  %v4866_v60 = vmax.f32 %v4834_v44, 0.0 }
 0x39f   :  { %v4864_v25 = vmax.f32 %v4832_v8, 0.0  ;;  %v4796_v22 = vadd.f32 %v8713_v48, %v4522_v49  ;;  %v4525_v1 = vadd.f32 %v6458_v37, %v4251_v41  ;;  %v4837_v48 = vadd.f32 %v8833_v12, %v4798_v21  ;;  %v8873_v49 = vpop.f32.mrf.mxu0 }
 0x3a0   :  { %v4410_v38 = vpop.f32.mrf.mxu1  ;;  %v4255_v8 = vadd.f32 %v8463_v15, %v8705_v32  ;;  %v9434_v15 = vld [vmem:[#allocation10_spill] sm:$0xff] }
 0x3a1   :  { %v4897_v57 = vsel %vm4895_vm8, %v4864_v25, 0.0  ;;  %v4835_v9 = vadd.f32 %v8833_v12, %v4796_v22  ;;  %v4799_v23 = vadd.f32 %v8723_v14, %v4525_v1  ;;  %v4523_v54 = vadd.f32 %v4410_v38, %v4249_v13 }
 0x3a2   :  { %v4898_v24 = vadd.f32 %v4897_v57, %v4896_v51  ;;  %v6461_v29 = vpop.f32.mrf.mxu1  ;;  %v4901_v14 = vsel %vm4895_vm8, %v4866_v60, 0.0  ;;  %v4869_v41 = vmax.f32 %v4837_v48, 0.0  ;;  %v4253_v13 = vadd.f32 %v8471_v52, %v8709_v36  ;;  %v8884_v52 = vpop.f32.mrf.mxu0  ;;  %v9435_v36 = vld [vmem:[#allocation13_spill] sm:$0xff] }
 0x3a3   :  { %v4867_v18 = vmax.f32 %v4835_v9, 0.0  ;;  %v4797_v34 = vadd.f32 %v8733_v53, %v4523_v54  ;;  %v4528_v27 = vadd.f32 %v6461_v29, %v4254_v19  ;;  %v4838_v10 = vadd.f32 %v8833_v12, %v4799_v23  ;;  %v9436_v9 = vld [vmem:[#allocation68_spill] sm:$0xff] }
 0x3a4   :  { %v4900_v4 = vadd.f32 %v4899_v46, %v4898_v24  ;;  %v4423_v44 = vpop.f32.mrf.mxu1  ;;  %v4258_v32 = vadd.f32 %v9434_v15, %v8715_v47  ;;  %v8888_v23 = vadd.f32 %v9436_v9, %v9435_v36  ;;  %v9437_v24 = vld [vmem:[#allocation7_spill] sm:$0xff]  ;;  %v4907_v47 = vsel %vm4895_vm8, %v4869_v41, 0.0  ;;  %v9444_v15 = vld [vmem:[#allocation34_spill] sm:$0xff]  ;;  %v9446_v9 = vld [vmem:[#allocation33_spill] sm:$0xff] }
 0x3a5   :  { %v4836_v62 = vadd.f32 %v8833_v12, %v4797_v34  ;;  %v4526_v53 = vadd.f32 %v4423_v44, %v4252_v6  ;;  %v4903_v63 = vsel %vm4895_vm8, %v4867_v18, 0.0  ;;  %v4802_v5 = vadd.f32 %v8752_v30, %v4528_v27  ;;  %v9438_v18 = vld [vmem:[#allocation17_spill] sm:$0xff]  ;;  %v9439_v34 = vld [vmem:[#allocation4_spill] sm:$0xff]  ;;  %v9441_v6 = vld [vmem:[#allocation2_spill] sm:$0xff] }
 0x3a6   :  { %v4902_v21 = vadd.f32 %v4901_v14, %v4900_v4  ;;  %v6462_v37 = vpop.f32.mrf.mxu1  ;;  %v4870_v60 = vmax.f32 %v4838_v10, 0.0  ;;  %v4256_v48 = vadd.f32 %v9437_v24, %v8719_v59  ;;  %v8898_v27 = vadd.f32 %v9439_v34, %v9438_v18  ;;  %v9440_v4 = vld [vmem:[#allocation31_spill] sm:$0xff] }
 0x3a7   :  { %v4868_v42 = vmax.f32 %v4836_v62, 0.0  ;;  %v4529_v25 = vadd.f32 %v6462_v37, %v4255_v8  ;;  %v4800_v1 = vadd.f32 %v8763_v45, %v4526_v53  ;;  %v4841_v29 = vadd.f32 %v8833_v12, %v4802_v5  ;;  %v9443_v5 = vld [vmem:[#allocation6_spill] sm:$0xff] }
 0x3a8   :  { %v4904_v22 = vadd.f32 %v4903_v63, %v4902_v21  ;;  %v4426_v51 = vpop.f32.mrf.mxu1  ;;  %v8902_v44 = vadd.f32 %v9441_v6, %v9440_v4  ;;  %v4909_v59 = vsel %vm4895_vm8, %v4870_v60, 0.0 }
 0x3a9   :  { %v4905_v38 = vsel %vm4895_vm8, %v4868_v42, 0.0  ;;  %v4803_v19 = vadd.f32 %v8773_v43, %v4529_v25  ;;  %v4527_v57 = vadd.f32 %v4426_v51, %v4253_v13  ;;  %v4839_v54 = vadd.f32 %v8833_v12, %v4800_v1  ;;  %v9442_v13 = vld [vmem:[#allocation8_spill] sm:$0xff] }
 0x3aa   :  { %v4906_v30 = vadd.f32 %v4905_v38, %v4904_v22  ;;  %v6465_v45 = vpop.f32.mrf.mxu1  ;;  %v4259_v63 = vadd.f32 %v9442_v13, %v8725_v28  ;;  %v4257_v25 = vadd.f32 %v9443_v5, %v8729_v33  ;;  %v4873_v22 = vmax.f32 %v4841_v29, 0.0 }
 0x3ab   :  { %v4801_v43 = vadd.f32 %v8783_v50, %v4527_v57  ;;  %v4532_v46 = vadd.f32 %v6465_v45, %v4258_v32  ;;  %v4842_v10 = vadd.f32 %v8833_v12, %v4803_v19  ;;  %v4871_v8 = vmax.f32 %v4839_v54, 0.0  ;;  %v8907_v50 = vpop.f32.mrf.mxu0  ;;  %v9445_v32 = vld [vmem:[#allocation22_spill] sm:$0xff] }
 0x3ac   :  { %v4908_v14 = vadd.f32 %v4907_v47, %v4906_v30  ;;  %v4439_v62 = vpop.f32.mrf.mxu1  ;;  %v4262_v60 = vadd.f32 %v9445_v32, %v9444_v15 }
 0x3ad   :  { %v4840_v41 = vadd.f32 %v8833_v12, %v4801_v43  ;;  %v4530_v21 = vadd.f32 %v4439_v62, %v4256_v48  ;;  %v4806_v37 = vadd.f32 %v8791_v17, %v4532_v46  ;;  %v4874_v19 = vmax.f32 %v4842_v10, 0.0  ;;  %v9447_v17 = vld [vmem:[#allocation21_spill] sm:$0xff]  ;;  %v8922_v24 = vpop.f32.mrf.mxu0  ;;  %v9448_v62 = vld [vmem:[#allocation50_spill] sm:$0xff] }
 0x3ae   :  { %v4910_v53 = vadd.f32 %v4909_v59, %v4908_v14  ;;  %v6466_v42 = vpop.f32.mrf.mxu1  ;;  %v4260_v30 = vadd.f32 %v9447_v17, %v9446_v9  ;;  %v4917_v28 = vsel %vm4895_vm8, %v4871_v8, 0.0  ;;  %v4920_v46 = vsel %vm4895_vm8, %v4873_v22, 0.0  ;;  %v9449_v59 = vld [vmem:[#allocation26_spill] sm:$0xff]  ;;  %v9454_v17 = vld [vmem:[#allocation52_spill] sm:$0xff] }
 0x3af   :  { %v4872_v1 = vmax.f32 %v4840_v41, 0.0  ;;  %v4804_v51 = vadd.f32 %v8802_v40, %v4530_v21  ;;  %v4533_v57 = vadd.f32 %v6466_v42, %v4259_v63  ;;  %v4845_v47 = vadd.f32 %v8833_v12, %v4806_v37  ;;  %v9450_v41 = vld [vmem:[#allocation25_spill] sm:$0xff]  ;;  %v8935_v63 = vpop.f32.mrf.mxu0 }
 0x3b0   :  { %v4911_v38 = vrot.slane %v4910_v53, 4  ;;  %v4442_v36 = vpop.f32.mrf.mxu1  ;;  %v4263_v8 = vadd.f32 %v9449_v59, %v9448_v62  ;;  %v4261_v21 = vadd.f32 %v9450_v41, %v8758_v35  ;;  %v9458_v62 = vld [vmem:[#allocation58_spill] sm:$0xff] }
 0x3b1   :  { %v4918_v54 = vsel %vm4895_vm8, %v4872_v1, 0.0  ;;  %v4843_v33 = vadd.f32 %v8833_v12, %v4804_v51  ;;  %v4531_v45 = vadd.f32 %v4442_v36, %v4257_v25  ;;  %v4807_v29 = vadd.f32 %v8810_v20, %v4533_v57  ;;  %v9452_v57 = vld [vmem:[#allocation48_spill] sm:$0xff]  ;;  %v9453_v36 = vld [vmem:[#allocation39_spill] sm:$0xff] }
 0x3b2   :  { %v4912_v40 = vadd.f32 %v4911_v38, %v4910_v53  ;;  %v4919_v48 = vadd.f32 %v4918_v54, %v4917_v28  ;;  %v6469_v43 = vpop.f32.mrf.mxu1  ;;  %v4922_v53 = vsel %vm4895_vm8, %v4874_v19, 0.0  ;;  %v9451_v38 = vld [vmem:[#allocation40_spill] sm:$0xff]  ;;  %v4264_v9 = vadd.f32 %v9453_v36, %v9452_v57 }
 0x3b3   :  { %v4875_v18 = vmax.f32 %v4843_v33, 0.0  ;;  %v4805_v34 = vadd.f32 %v8818_v26, %v4531_v45  ;;  %v4536_v4 = vadd.f32 %v6469_v43, %v4262_v60  ;;  %v4846_v20 = vadd.f32 %v8833_v12, %v4807_v29  ;;  %v9456_v45 = vld [vmem:[#allocation43_spill] sm:$0xff] }
 0x3b4   :  { %v4913_v6 = vrot.slane %v4912_v40, 2  ;;  %v4921_v14 = vadd.f32 %v4920_v46, %v4919_v48  ;;  %v4455_v10 = vpop.f32.mrf.mxu1  ;;  %v4877_v26 = vmax.f32 %v4845_v47, 0.0  ;;  %v4266_v19 = vadd.f32 %v9451_v38, %v8765_v16  ;;  %v9461_v38 = vld [vmem:[#allocation12_spill] sm:$0xff] }
 0x3b5   :  { %v4844_v37 = vadd.f32 %v8833_v12, %v4805_v34  ;;  %v4534_v13 = vadd.f32 %v4455_v10, %v4260_v30  ;;  %v4924_v5 = vsel %vm4895_vm8, %v4875_v18, 0.0  ;;  %v4810_v25 = vadd.f32 %v8824_v11, %v4536_v4  ;;  %v9455_v30 = vld [vmem:[#allocation44_spill] sm:$0xff]  ;;  %v9457_v4 = vld [vmem:[#allocation59_spill] sm:$0xff] }
 0x3b6   :  { %v4923_v42 = vadd.f32 %v4922_v53, %v4921_v14  ;;  %v6470_v22 = vpop.f32.mrf.mxu1  ;;  %v4914_v1 = vadd.f32 %v4913_v6, %v4912_v40  ;;  %v4267_v28 = vadd.f32 %v9455_v30, %v9454_v17  ;;  %v4878_v54 = vmax.f32 %v4846_v20, 0.0  ;;  %v8950_v40 = vpop.f32.mrf.mxu0 }
 0x3b7   :  { %v4876_v51 = vmax.f32 %v4844_v37, 0.0  ;;  %v4808_v35 = vadd.f32 %v8837_v39, %v4534_v13  ;;  %v4537_v15 = vadd.f32 %v6470_v22, %v4263_v8  ;;  %v4265_v39 = vadd.f32 %v9456_v45, %v8779_v61 }
 0x3b8   :  { %v4925_v32 = vadd.f32 %v4924_v5, %v4923_v42  ;;  %v4458_v60 = vpop.f32.mrf.mxu1  ;;  %v4849_v47 = vadd.f32 %v8833_v12, %v4810_v25  ;;  %v4915_v46 = vrot.slane %v4914_v1, 1  ;;  %v4928_v18 = vsel %vm4895_vm8, %v4877_v26, 0.0  ;;  %v6514_v20 = vpop.f32.mrf.mxu0  ;;  %v9459_v25 = vld [vmem:[#allocation63_spill] sm:$0xff] }
 0x3b9   :  { %v4926_v11 = vsel %vm4895_vm8, %v4876_v51, 0.0  ;;  %v4811_v33 = vadd.f32 %v8849_v55, %v4537_v15  ;;  %v4847_v16 = vadd.f32 %v8833_v12, %v4808_v35  ;;  %v4535_v29 = vadd.f32 %v4458_v60, %v4261_v21  ;;  %v9460_v51 = vld [vmem:[#allocation62_spill] sm:$0xff] }
 0x3ba   :  { %v4927_v48 = vadd.f32 %v4926_v11, %v4925_v32  ;;  %v6473_v43 = vpop.f32.mrf.mxu1  ;;  %v4270_v6 = vadd.f32 %v9457_v4, %v8785_v2  ;;  %v3947_v55 = vadd.f32 %v8798_v56, %v8888_v23  ;;  %v4271_v59 = vadd.f32 %v9458_v62, %v8793_v58 }
 0x3bb   :  { %v4540_v34 = vadd.f32 %v6473_v43, %v4266_v19  ;;  %v4809_v14 = vadd.f32 %v8861_v0, %v4535_v29  ;;  %v3950_v8 = vadd.f32 %v8806_v3, %v8898_v27  ;;  %v4930_v41 = vsel %vm4895_vm8, %v4878_v54, 0.0 }
 0x3bc   :  { %v4929_v61 = vadd.f32 %v4928_v18, %v4927_v48  ;;  %v4471_v10 = vpop.f32.mrf.mxu1  ;;  %v4850_v21 = vadd.f32 %v8833_v12, %v4811_v33  ;;  %v4881_v37 = vmax.f32 %v4849_v47, 0.0  ;;  %v4879_v13 = vmax.f32 %v4847_v16, 0.0 }
 0x3bd   :  { %v4538_v53 = vadd.f32 %v4471_v10, %v4264_v9  ;;  %v4848_v56 = vadd.f32 %v8833_v12, %v4809_v14  ;;  %v4916_v0 = vadd.f32 %v4915_v46, %v4914_v1  ;;  %v4814_v26 = vadd.f32 %v8873_v49, %v4540_v34  ;;  %v4764_v1 = vpop.f32.mrf.mxu0 }
 0x3be   :  { %v4931_v2 = vadd.f32 %v4930_v41, %v4929_v61  ;;  %v6474_v23 = vpop.f32.mrf.mxu1  ;;  %v4269_v22 = vadd.f32 %v9459_v25, %v3947_v55  ;;  %v4274_v35 = vadd.f32 %v9460_v51, %v8804_v31  ;;  %v4882_v15 = vmax.f32 %v4850_v21, 0.0 }
 0x3bf   :  { %v4812_v58 = vadd.f32 %v8884_v52, %v4538_v53  ;;  %v4541_v42 = vadd.f32 %v6474_v23, %v4267_v28  ;;  %v4880_v3 = vmax.f32 %v4848_v56, 0.0  ;;  %v8974_v19 = vadd.f32 %v9461_v38, %v3950_v8  ;;  %v6517_v43 = vpop.f32.mrf.mxu0 }
 0x3c0   :  { %v4932_v5 = vrot.slane %v4931_v2, 4  ;;  %v4474_v27 = vpop.f32.mrf.mxu1  ;;  %v4938_v52 = vsel %vm4895_vm8, %v4879_v13, 0.0  ;;  %v4981_v17 = vmul.f32 0.015625, %v4916_v0  ;;  %v4941_v30 = vsel %vm4895_vm8, %v4881_v37, 0.0 }
 0x3c1   :  { %v4851_v32 = vadd.f32 %v8833_v12, %v4812_v58  ;;  %v4539_v60 = vadd.f32 %v4474_v27, %v4265_v39  ;;  %v4939_v57 = vsel %vm4895_vm8, %v4880_v3, 0.0  ;;  %v4815_v36 = vadd.f32 %v8907_v50, %v4541_v42  ;;  %v9462_v50 = vld [vmem:[#allocation51_spill] sm:$0xff]  ;;  %v4777_v37 = vpop.f32.mrf.mxu0  ;;  %v9463_v58 = vld [vmem:[#allocation69_spill] sm:$0xff]  ;;  %v9464_v42 = vld [vmem:[#allocation16_spill] sm:$0xff] }
 0x3c2   :  { %v4933_v49 = vadd.f32 %v4932_v5, %v4931_v2  ;;  %v6477_v9 = vpop.f32.mrf.mxu1  ;;  %v4940_v31 = vadd.f32 %v4939_v57, %v4938_v52  ;;  %v4853_v28 = vadd.f32 %v8833_v12, %v4814_v26  ;;  %v3951_v48 = vadd.f32 %v8814_v7, %v8902_v44 }
 0x3c3   :  { %v4883_v11 = vmax.f32 %v4851_v32, 0.0  ;;  %v4813_v33 = vadd.f32 %v8922_v24, %v4539_v60  ;;  %v4544_v45 = vadd.f32 %v6477_v9, %v4270_v6  ;;  %v4943_v47 = vsel %vm4895_vm8, %v4882_v15, 0.0  ;;  %v9465_v60 = vld [vmem:[#allocation30_spill] sm:$0xff] }
 0x3c4   :  { %v4934_v54 = vrot.slane %v4933_v49, 2  ;;  %v4487_v39 = vpop.f32.mrf.mxu1  ;;  %v4942_v16 = vadd.f32 %v4941_v30, %v4940_v31  ;;  %v4854_v18 = vadd.f32 %v8833_v12, %v4815_v36  ;;  %v4885_v24 = vmax.f32 %v4853_v28, 0.0 }
 0x3c5   :  { %v4542_v29 = vadd.f32 %v4487_v39, %v9462_v50  ;;  %v4852_v34 = vadd.f32 %v8833_v12, %v4813_v33  ;;  %v4818_v4 = vadd.f32 %v8935_v63, %v4544_v45  ;;  %v4985_v44 = vpack.c.bf16 %v4981_v17, %v4981_v17 }
 0x3c6   :  { %v4935_v46 = vadd.f32 %v4934_v54, %v4933_v49  ;;  %v6478_v55 = vpop.f32.mrf.mxu1  ;;  %v4944_v6 = vadd.f32 %v4943_v47, %v4942_v16  ;;  %v4945_v10 = vsel %vm4895_vm8, %v4883_v11, 0.0  ;;  %v4886_v13 = vmax.f32 %v4854_v18, 0.0  ;;  %v6518_v49 = vpop.f32.mrf.mxu0 }
 0x3c7   :  { %v4816_v61 = vadd.f32 %v8950_v40, %v4542_v29  ;;  %v4545_v7 = vadd.f32 %v6478_v55, %v4271_v59  ;;  %v4884_v62 = vmax.f32 %v4852_v34, 0.0  ;;  %v4857_v23 = vadd.f32 %v8833_v12, %v4818_v4 }
 0x3c8   :  { %v4936_v14 = vrot.slane %v4935_v46, 1  ;;  %v4490_v8 = vpop.f32.mrf.mxu1  ;;  %v4946_v41 = vadd.f32 %v4945_v10, %v4944_v6  ;;  %v4949_v59 = vsel %vm4895_vm8, %v4885_v24, 0.0  ;;  %v4275_v5 = vadd.f32 %v9464_v42, %v9463_v58  ;;  %v4780_v50 = vpop.f32.mrf.mxu0 }
 0x3c9   :  { %v4855_v21 = vadd.f32 %v8833_v12, %v4816_v61  ;;  %v4819_v53 = vadd.f32 %v6514_v20, %v4545_v7  ;;  %v4543_v2 = vadd.f32 %v4490_v8, %v4269_v22  ;;  %v4947_v56 = vsel %vm4895_vm8, %v4884_v62, 0.0 }
 0x3ca   :  { %v4937_v63 = vadd.f32 %v4936_v14, %v4935_v46  ;;  %v6481_v40 = vpop.f32.mrf.mxu1  ;;  %v4948_v0 = vadd.f32 %v4947_v56, %v4946_v41  ;;  %v5008_v51 = vunpack.c.l.b16 %v4985_v44  ;;  %v4273_v38 = vadd.f32 %v9465_v60, %v3951_v48  ;;  %v6654_v60 = vld [vmem:[%s9083_s7 + $0x10] sm:$0xff]  }
 0x3cb   :  { %v4817_v26 = vadd.f32 %v4764_v1, %v4543_v2  ;;  %v4887_v27 = vmax.f32 %v4855_v21, 0.0  ;;  %v4858_v20 = vadd.f32 %v8833_v12, %v4819_v53  ;;  %v4548_v25 = vadd.f32 %v6481_v40, %v4274_v35 }
 0x3cc   :  { %v4982_v3 = vmul.f32 0.015625, %v4937_v63  ;;  %v4503_v22 = vpop.f32.mrf.mxu1  ;;  %v4950_v15 = vadd.f32 %v4949_v59, %v4948_v0  ;;  %v4951_v57 = vsel %vm4895_vm8, %v4886_v13, 0.0  ;;  %v4889_v1 = vmax.f32 %v4857_v23, 0.0 }
 0x3cd   :  { %v4856_v32 = vadd.f32 %v8833_v12, %v4817_v26  ;;  %v4546_v36 = vadd.f32 %v4503_v22, %v8974_v19  ;;  %v4822_v31 = vadd.f32 %v6517_v43, %v4548_v25  ;;  %v4959_v54 = vsel %vm4895_vm8, %v4887_v27, 0.0 }
 0x3ce   :  { %v4986_v52 = vpack.c.bf16 %v4982_v3, %v4982_v3  ;;  %v6482_v9 = vpop.f32.mrf.mxu1  ;;  %v4952_v17 = vadd.f32 %v4951_v57, %v4950_v15  ;;  %v4890_v11 = vmax.f32 %v4858_v20, 0.0  ;;  %v4962_v43 = vsel %vm4895_vm8, %v4889_v1, 0.0  ;;  %v6656_v57 = vld [vmem:[%s9083_s7] sm:$0xff]  }
 0x3cf   :  { %v4888_v30 = vmax.f32 %v4856_v32, 0.0  ;;  %v4549_v28 = vadd.f32 %v6482_v9, %v4275_v5  ;;  %v4820_v33 = vadd.f32 %v4777_v37, %v4546_v36  ;;  %v4861_v34 = vadd.f32 %v8833_v12, %v4822_v31  ;;  %v5733_v1 = vld [vmem:[%s9086_s6] ss:$0 sm:$0xff] }
 0x3d0   :  { %v5009_v35 = vunpack.c.l.b16 %v4986_v52  ;;  %v4506_v45 = vpop.f32.mrf.mxu1  ;;  %v4953_v39 = vrot.slane %v4952_v17, 4  ;;  %v4964_v61 = vsel %vm4895_vm8, %v4890_v11, 0.0  ;;  %v9466_v52 = vmov 0.0   ;;  %v6659_v11 = vld [vmem:[%s9085_s9 + $0x28] sm:$0xff]  }
 0x3d1   :  { %v4960_v48 = vsel %vm4895_vm8, %v4888_v30, 0.0  ;;  %v4823_v47 = vadd.f32 %v6518_v49, %v4549_v28  ;;  %v4547_v16 = vadd.f32 %v4506_v45, %v4273_v38  ;;  %v4859_v46 = vadd.f32 %v8833_v12, %v4820_v33  ;;  %v6655_v49 = vld [vmem:[%s9083_s7 + $0x8] sm:$0xff]   ;;  %v6657_v30 = vld [vmem:[%s9085_s9 + $0x38] sm:$0xff]   ;;  %v6660_v33 = vld [vmem:[%s9085_s9 + $0x20] sm:$0xff]  }
 0x3d2   :  { %v5013_v29 = vsel %vm5012_vm9, %v5009_v35, %v5008_v51  ;;  %v4961_v19 = vadd.f32 %v4960_v48, %v4959_v54  ;;  %v4954_v18 = vadd.f32 %v4953_v39, %v4952_v17  ;;  %v4893_v62 = vmax.f32 %v4861_v34, 0.0  ;;  %v6658_v54 = vld [vmem:[%s9085_s9 + $0x30] sm:$0xff]   ;;  %v6661_v45 = vld [vmem:[%s9085_s9 + $0x18] sm:$0xff]   ;;  %v6663_v48 = vld [vmem:[%s9085_s9 + $0x8] sm:$0xff]  }
 0x3d3   :  { %v4821_v4 = vadd.f32 %v4780_v50, %v4547_v16  ;;  %v4891_v24 = vmax.f32 %v4859_v46, 0.0  ;;  %v4862_v7 = vadd.f32 %v8833_v12, %v4823_v47  ;;  %v6662_v39 = vld [vmem:[%s9085_s9 + $0x10] sm:$0xff]   ;;  %v6664_v47 = vld [vmem:[%s9085_s9] sm:$0xff]   ;;  %s6670_s9 = smov 48  }
 0x3d4   :  { %v4963_v55 = vadd.f32 %v4962_v43, %v4961_v19  ;;  %v4955_v6 = vrot.slane %v4954_v18, 2  ;;  %v4970_v56 = vsel %vm4895_vm8, %v4893_v62, 0.0  ;;  %v5739_v16 = vld [vmem:[%s9088_s8] ss:$0 sm:$0xff] }
 0x3d5   :  { %v4860_v44 = vadd.f32 %v8833_v12, %v4821_v4  ;;  %v4966_v8 = vsel %vm4895_vm8, %v4891_v24, 0.0  ;;  %v4894_v2 = vmax.f32 %v4862_v7, 0.0  ;;  %v5744_v4 = vld [vmem:[%s9089_s10] ss:$0 sm:$0xff] }
 0x3d6   :  { %v4965_v14 = vadd.f32 %v4964_v61, %v4963_v55  ;;  %v4956_v10 = vadd.f32 %v4955_v6, %v4954_v18 }
 0x3d7   :  { %v4892_v41 = vmax.f32 %v4860_v44, 0.0  ;;  %v4972_v59 = vsel %vm4895_vm8, %v4894_v2, 0.0 }
 0x3d8   :  { %v4967_v21 = vadd.f32 %v4966_v8, %v4965_v14  ;;  %v4957_v53 = vrot.slane %v4956_v10, 1 }
 0x3d9   :  { %v4968_v37 = vsel %vm4895_vm8, %v4892_v41, 0.0 }
 0x3da   :  { %v4969_v63 = vadd.f32 %v4968_v37, %v4967_v21  ;;  %v4958_v13 = vadd.f32 %v4957_v53, %v4956_v10 }
 0x3dc   :  { %v4971_v23 = vadd.f32 %v4970_v56, %v4969_v63  ;;  %v4983_v40 = vmul.f32 0.015625, %v4958_v13 }
 0x3de   :  { %v4973_v12 = vadd.f32 %v4972_v59, %v4971_v23  ;;  %v4987_v0 = vpack.c.bf16 %v4983_v40, %v4983_v40 }
 0x3e0   :  { %v4974_v26 = vrot.slane %v4973_v12, 4  ;;  %v5010_v58 = vunpack.c.l.b16 %v4987_v0 }
 0x3e2   :  { %v4975_v42 = vadd.f32 %v4974_v26, %v4973_v12  ;;  %v5015_v5 = vsel %vm5014_vm10, %v5010_v58, %v5013_v29 }
 0x3e4   :  { %v4976_v3 = vrot.slane %v4975_v42, 2 }
 0x3e6   :  { %v4977_v27 = vadd.f32 %v4976_v3, %v4975_v42 }
 0x3e8   :  { %v4978_v20 = vrot.slane %v4977_v27, 1 }
 0x3ea   :  { %v4979_v25 = vadd.f32 %v4978_v20, %v4977_v27 }
 0x3ec   :  { %v4984_v22 = vmul.f32 0.015625, %v4979_v25 }
 0x3ee   :  { %v4988_v51 = vpack.c.bf16 %v4984_v22, %v4984_v22 }
 0x3f0   :  { %v5011_v15 = vunpack.c.l.b16 %v4988_v51 }
 0x3f2   :  { %v5017_v32 = vsel %vm5016_vm11, %v5011_v15, %v5015_v5 }
 0x3f3   :  { %v5018_v38 = vpack.c.b16 %v5017_v32, %v5017_v32 }
 0x3f5   :  { %6528 = vmatmul.mubr.msk.bf16.vlgmr.msra.gmra.mxu1 %vm4895_vm8, %v5018_v38 }
 0x3f6   :  { %6532 = vmatpush3.bf16.msra.mxu1 %v6654_v60  ;;  %6537 = vmatprep.mubr.msk.bf16.mxu1 %vm6669_vm7, %v9466_v52 }
 0x3f7   :  { %6533 = vmatprep.subr.bf16.mxu1 %v9466_v52 }
 0x3fa   :  { %6534 = vmatpush3.bf16.msra.mxu1 %v6655_v49 }
 0x3fb   :  { %6535 = vmatprep.subr.bf16.mxu1 %v9466_v52 }
 0x3fe   :  { %6536 = vmatpush3.bf16.msra.mxu1 %v6656_v57 }
 0x3ff   :  { %6541 = vmatprep.subr.bf16.mxu1 %v9466_v52 }
 0x4b5   :  { %v5080_v36 = vpop.f32.mrf.mxu1 }
 0x4b6   :  { %v5081_v9 = vadd.f32 %v5733_v1, %v5080_v36 }
 0x4b7   :  { %v6529_v17 = vpop.f32.mrf.mxu1 }
 0x4b8   :  { %v5086_v31 = vpack.c.bf16 %v5081_v9, %v5081_v9  ;;  %5276 = vst.msk [vmem:[%s9087_s11] sm:$0xf] %vm5275_vm12, %v5081_v9 }
 0x4b9   :  { %v5083_v28 = vpop.f32.mrf.mxu1 }
 0x4ba   :  { %6538 = vmatmul.mubr.msk.bf16.vlgmr.msra.gmra.mxu1 %vm5118_vm13, %v5086_v31 }
 0x4bb   :  { %v6530_v35 = vpop.f32.mrf.mxu1  ;;  %6542 = vmatpush3.bf16.msra.mxu1 %v6657_v30  ;;  %6557 = vmatprep.mubr.msk.bf16.mxu1 %vm6669_vm7, %v9466_v52 }
 0x4bc   :  { %6543 = vmatprep.subr.bf16.mxu1 %v9466_v52 }
 0x4bf   :  { %6544 = vmatpush3.bf16.msra.mxu1 %v6658_v54 }
 0x4c0   :  { %6545 = vmatprep.subr.bf16.mxu1 %v9466_v52 }
 0x4c3   :  { %6546 = vmatpush3.bf16.msra.mxu1 %v6659_v11 }
 0x4c4   :  { %6547 = vmatprep.subr.bf16.mxu1 %v9466_v52 }
 0x4c7   :  { %6548 = vmatpush3.bf16.msra.mxu1 %v6660_v33 }
 0x4c8   :  { %6549 = vmatprep.subr.bf16.mxu1 %v9466_v52 }
 0x4cb   :  { %6550 = vmatpush3.bf16.msra.mxu1 %v6661_v45 }
 0x4cc   :  { %6551 = vmatprep.subr.bf16.mxu1 %v9466_v52 }
 0x4cf   :  { %6552 = vmatpush3.bf16.msra.mxu1 %v6662_v39 }
 0x4d0   :  { %6553 = vmatprep.subr.bf16.mxu1 %v9466_v52 }
 0x4d3   :  { %6554 = vmatpush3.bf16.msra.mxu1 %v6663_v48 }
 0x4d4   :  { %6555 = vmatprep.subr.bf16.mxu1 %v9466_v52 }
 0x4d7   :  { %6556 = vmatpush3.bf16.msra.mxu1 %v6664_v47 }
 0x57a   :  { %v5156_v50 = vpop.f32.mrf.mxu1 }
 0x57b   :  { %v5157_v29 = vadd.f32 %v5739_v16, %v5156_v50 }
 0x57c   :  { %v6539_v19 = vpop.f32.mrf.mxu1 }
 0x57d   :  { %v5162_v46 = vmax.f32 %v5157_v29, 0.0 }
 0x57e   :  { %v5159_v18 = vpop.f32.mrf.mxu1 }
 0x57f   :  { %v5163_v43 = vpack.c.bf16 %v5162_v46, %v5162_v46 }
 0x580   :  { %v6540_v34 = vpop.f32.mrf.mxu1 }
 0x581   :  { %6558 = vmatmul.mubr.bf16.vlgmr.msra.gmra.mxu1 %v5163_v43 }
 0x641   :  { %v5269_v55 = vpop.f32.mrf.mxu1 }
 0x642   :  { %v5270_v24 = vadd.f32 %v5744_v4, %v5269_v55 }
 0x643   :  { %v6559_v6 = vpop.f32.mrf.mxu1 }
 0x644   :  { %5278 = vrot.lane.b32.xlu0 %v5270_v24, %s6670_s9 }
 0x645   :  { %v5272_v61 = vpop.f32.mrf.mxu1 }
 0x647   :  { %v6560_v7 = vpop.f32.mrf.mxu1 }
 0x6b6   :  { %v5279_v44 = vpop.permute.xlu0 %5278 }
 0x6b7   :  { %5282 = vst.msk [vmem:[%s9087_s11] sm:$0xf] %vm5281_vm14, %v5279_v44 }

</bundles_post_ra>
